<compile_context>
chip_gen: v5e
topology: v5e:2x2
jax: 0.10.0
libtpu: 0.0.40
codegen_flags: <defaults>
</compile_context>

<pallas_src>
import functools

import jax
import jax.numpy as jnp
import numpy as np
from jax.experimental import pallas as pl
from jax.experimental.pallas import tpu as pltpu

NEG = -1.0e30        # finite stand-in for -inf (keeps log-sum-exp NaN free)
BIG = 1.0e29         # "alignment infeasible" threshold (zero_infinity)
NSUB = 8             # utterances packed per program (one per sublane)
S_PAD = 128          # padded extended-label length (one lane row)


def _ctc_kernel(gmax_ref,                        # scalar prefetch (SMEM): (G,) max h_len per group
                x_ref, ext_ref, hl_ref, yl_ref,  # VMEM inputs
                o_ref,                           # VMEM output: (8, 128) per group
                alpha_ref,                       # VMEM scratch: (8, S_PAD) alpha carry
                oh_ref,                          # VMEM scratch: (8, D, S_PAD) one-hot
                m1_ref, m2_ref,                  # VMEM scratch: (8, S_PAD) masks
                *, blank):
    bb = pl.program_id(0)
    t_idx = pl.program_id(1)
    n_t = pl.num_programs(1)
    _, nsub, tt, d = x_ref.shape
    s_pad = ext_ref.shape[2]

    lane = jax.lax.broadcasted_iota(jnp.int32, (nsub, s_pad), 1)

    # Per-group setup: "virtual" alpha before any frame (all mass at s == 0),
    # one-hot of the extended labels and the two recursion masks.  Built once
    # per group and reused across every time tile.
    @pl.when(t_idx == 0)
    def _init():
        alpha_ref[...] = jnp.where(lane == 0, 0.0, NEG).astype(jnp.float32)

        ext = ext_ref[0]                                        # (8, S) int32
        d_iota = jax.lax.broadcasted_iota(jnp.int32, (nsub, d, s_pad), 1)
        oh_ref[...] = (d_iota == ext[:, None, :]).astype(jnp.float32)

        m1_ref[...] = jnp.where(lane >= 1, 0.0, NEG).astype(jnp.float32)
        ext_m2 = pltpu.roll(ext, shift=2, axis=1)               # ext[s-2]
        allowed = (lane >= 2) & (ext != blank) & (ext != ext_m2)
        m2_ref[...] = jnp.where(allowed, 0.0, NEG).astype(jnp.float32)

    # Skip whole time tiles that lie beyond every utterance of this group.
    @pl.when(t_idx * tt < gmax_ref[bb])
    def _compute():
        x = x_ref[0].astype(jnp.float32)                        # (8, TT, D)

        # log-softmax normalizer only (gather below uses raw logits)
        m = jnp.max(x, axis=-1, keepdims=True)
        lse = m + jnp.log(jnp.sum(jnp.exp(x - m), axis=-1, keepdims=True))

        # gathered log-probs: g[n, t, s] = logit[n, t, ext[n, s]] - lse[n, t]
        g = jnp.einsum("ntd,nds->nts", x, oh_ref[...],
                       precision=jax.lax.Precision.HIGHEST,
                       preferred_element_type=jnp.float32)
        g = g - lse                                             # (8, TT, S)

        mask1_add = m1_ref[...]
        mask2_add = m2_ref[...]
        t_in = hl_ref[0]                                        # (8, 1) int32
        alpha = alpha_ref[...]                                  # (8, S)
        for i in range(tt):                                     # static unroll
            g_t = g[:, i, :]                                    # (8, S)
            t_g = t_idx * tt + i
            a1 = pltpu.roll(alpha, shift=1, axis=1) + mask1_add  # alpha[s-1]
            a2 = pltpu.roll(alpha, shift=2, axis=1) + mask2_add  # alpha[s-2]
            mx = jnp.maximum(jnp.maximum(alpha, a1), a2)
            new = mx + jnp.log(jnp.exp(alpha - mx) + jnp.exp(a1 - mx)
                               + jnp.exp(a2 - mx)) + g_t
            # advance only for valid frames of each packed utterance
            alpha = jnp.where(t_g < t_in, new, alpha)
        alpha_ref[...] = alpha

    @pl.when(t_idx == n_t - 1)
    def _finalize():
        alpha = alpha_ref[...]
        t_in = hl_ref[0]                                        # (8, 1)
        lab = yl_ref[0]                                         # (8, 1)
        p_last = jnp.max(jnp.where(lane == 2 * lab, alpha, NEG),
                         axis=1, keepdims=True)
        p_prev = jnp.max(jnp.where((lane == 2 * lab - 1) & (lab > 0),
                                   alpha, NEG),
                         axis=1, keepdims=True)
        mx = jnp.maximum(p_last, p_prev)
        ll = mx + jnp.log(jnp.exp(p_last - mx) + jnp.exp(p_prev - mx))
        loss = -ll                                              # (8, 1)
        # zero_infinity=True; also zero padded / zero-input-length rows
        loss = jnp.where((t_in > 0) & (loss < BIG), loss, 0.0)
        o_ref[...] = jnp.broadcast_to(loss, o_ref.shape)


def _round_up(a, m):
    return ((a + m - 1) // m) * m


def ctc_loss(hs_pad, h_lens, ys_pad, ys_lens, blank=0, time_tile=32):
    """Equivalent of CTC.forward: sum_b ctc_loss_b / B."""
    B, T, D = hs_pad.shape
    Lmax = ys_pad.shape[1]
    assert 2 * Lmax + 1 <= S_PAD, "extended label length must fit in one lane row"

    # time tile: multiple of 8 (sublane tiling), no larger than the padded T
    TT = max(8, min(_round_up(int(time_tile), 8), _round_up(T, 8)))

    B_pad = _round_up(B, NSUB)
    n_groups = B_pad // NSUB
    T_pad = _round_up(T, TT)
    n_t = T_pad // TT

    # ---- plain-JAX glue: pad batch/time, build extended labels -------------
    hs = jnp.zeros((B_pad, T_pad, D), jnp.float32).at[:B, :T].set(
        hs_pad.astype(jnp.float32))
    hl = jnp.zeros((B_pad,), jnp.int32).at[:B].set(h_lens.astype(jnp.int32))
    yl = jnp.zeros((B_pad,), jnp.int32).at[:B].set(ys_lens.astype(jnp.int32))
    ys = jnp.full((B_pad, Lmax), blank, jnp.int32).at[:B].set(
        ys_pad.astype(jnp.int32))

    s_idx = jnp.arange(S_PAD)
    is_label = (s_idx % 2 == 1) & (s_idx < 2 * Lmax + 1)
    label_pos = jnp.clip((s_idx - 1) // 2, 0, Lmax - 1)
    ext = jnp.where(is_label[None, :], ys[:, label_pos], blank).astype(jnp.int32)

    x_in = hs.reshape(n_groups, NSUB, T_pad, D)
    ext_in = ext.reshape(n_groups, NSUB, S_PAD)
    hl_in = hl.reshape(n_groups, NSUB, 1)
    yl_in = yl.reshape(n_groups, NSUB, 1)
    gmax = jnp.max(hl.reshape(n_groups, NSUB), axis=1).astype(jnp.int32)

    grid_spec = pltpu.PrefetchScalarGridSpec(
        num_scalar_prefetch=1,
        grid=(n_groups, n_t),
        in_specs=[
            pl.BlockSpec((1, NSUB, TT, D), lambda b, t, gm: (b, 0, t, 0)),
            pl.BlockSpec((1, NSUB, S_PAD), lambda b, t, gm: (b, 0, 0)),
            pl.BlockSpec((1, NSUB, 1), lambda b, t, gm: (b, 0, 0)),
            pl.BlockSpec((1, NSUB, 1), lambda b, t, gm: (b, 0, 0)),
        ],
        out_specs=pl.BlockSpec((NSUB, 128), lambda b, t, gm: (b, 0)),
        scratch_shapes=[
            pltpu.VMEM((NSUB, S_PAD), jnp.float32),       # alpha carry
            pltpu.VMEM((NSUB, D, S_PAD), jnp.float32),    # one-hot (per group)
            pltpu.VMEM((NSUB, S_PAD), jnp.float32),       # s-1 mask
            pltpu.VMEM((NSUB, S_PAD), jnp.float32),       # s-2 skip mask
        ],
    )

    out = pl.pallas_call(
        functools.partial(_ctc_kernel, blank=blank),
        out_shape=jax.ShapeDtypeStruct((B_pad, 128), jnp.float32),
        grid_spec=grid_spec,
        compiler_params=pltpu.CompilerParams(
            dimension_semantics=("parallel", "arbitrary")),
    )(gmax, x_in, ext_in, hl_in, yl_in)

    per_sample = out[:B, 0]                  # padded rows are exactly 0
    # reduction='sum' over batch, then the module divides by ys_hat.size(1) == B
    return jnp.sum(per_sample) / B


# ---------------- pure numpy reference (for a sanity check) -----------------
def ctc_loss_ref(hs, h_lens, ys, ys_lens, blank=0):
    hs = np.asarray(hs, np.float64)
    B = hs.shape[0]
    total = 0.0
    for b in range(B):
        Tb = int(h_lens[b]); Lb = int(ys_lens[b])
        x = hs[b, :Tb]
        m = x.max(-1, keepdims=True)
        logp = x - (m + np.log(np.exp(x - m).sum(-1, keepdims=True)))
        y = np.asarray(ys[b, :Lb])
        S = 2 * Lb + 1
        ext = np.full(S, blank, np.int64)
        ext[1::2] = y

        def lse(vs):
            vs = np.asarray(vs, np.float64)
            mm = vs.max()
            return mm + np.log(np.exp(vs - mm).sum())

        alpha = np.full(S, NEG)
        alpha[0] = logp[0, ext[0]]
        if S > 1:
            alpha[1] = logp[0, ext[1]]
        for t in range(1, Tb):
            new = np.empty(S)
            for s in range(S):
                terms = [alpha[s]]
                if s >= 1:
                    terms.append(alpha[s - 1])
                if s >= 2 and ext[s] != blank and ext[s] != ext[s - 2]:
                    terms.append(alpha[s - 2])
                new[s] = lse(terms) + logp[t, ext[s]]
            alpha = new
        ll = lse([alpha[S - 1], alpha[S - 2]]) if S > 1 else alpha[S - 1]
        loss_b = -ll
        if not np.isfinite(loss_b) or loss_b > BIG:
            loss_b = 0.0  # zero_infinity
        total += loss_b
    return total / B


if __name__ == "__main__":
    key = jax.random.PRNGKey(0)
    B, Tmax, D, Lmax = 2, 16, 128, 4
    k1, k2 = jax.random.split(key)

    hs_pad = jax.random.normal(k1, (B, Tmax, D), dtype=jnp.float32)    # (B, Tmax, D)
    h_lens = jnp.array([16, 12], dtype=jnp.int32)                      # (B,)
    ys_pad = jax.random.randint(k2, (B, Lmax), 1, D, dtype=jnp.int32)  # (B, Lmax), no blanks
    ys_lens = jnp.array([4, 3], dtype=jnp.int32)                       # (B,)

    loss = ctc_loss(hs_pad, h_lens, ys_pad, ys_lens)
    loss = jax.block_until_ready(loss)

    ref = ctc_loss_ref(np.asarray(hs_pad), np.asarray(h_lens),
                       np.asarray(ys_pad), np.asarray(ys_lens))
    np.testing.assert_allclose(float(loss), ref, rtol=1e-2, atol=1e-2)
    print("KERNEL_OK")
</pallas_src>

<mosaic_0001>
module attributes {stable_mosaic.version = 11 : i64} {
  func.func @_ctc_kernel(%arg0: i32, %arg1: i32, %arg2: memref<1xi32, #tpu.memory_space<smem>>, %arg3: memref<1x8x16x128xf32, #tpu.memory_space<vmem>>, %arg4: memref<1x8x128xi32, #tpu.memory_space<vmem>>, %arg5: memref<1x8x1xi32, #tpu.memory_space<vmem>>, %arg6: memref<1x8x1xi32, #tpu.memory_space<vmem>>, %arg7: memref<8x128xf32, #tpu.memory_space<vmem>>, %arg8: memref<8x128xf32, #tpu.memory_space<vmem>>, %arg9: memref<8x128x128xf32, #tpu.memory_space<vmem>>, %arg10: memref<8x128xf32, #tpu.memory_space<vmem>>, %arg11: memref<8x128xf32, #tpu.memory_space<vmem>>) attributes {dimension_semantics = [#tpu.dimension_semantics<parallel>, #tpu.dimension_semantics<arbitrary>], iteration_bounds = array<i64: 1, 1>, scalar_prefetch = 1 : i64, scratch_operands = 4 : i64, tpu.core_type = #tpu.core_type<tc>, window_params = [{transform_indices = @transform_0, window_bounds = array<i64: 1, 8, 16, 128>}, {transform_indices = @transform_1, window_bounds = array<i64: 1, 8, 128>}, {transform_indices = @transform_2, window_bounds = array<i64: 1, 8, 1>}, {transform_indices = @transform_3, window_bounds = array<i64: 1, 8, 1>}, {transform_indices = @transform_4, window_bounds = array<i64: 8, 128>}]} {
    %0 = tpu.iota {dimensions = array<i32: 1>} : vector<8x128xi32>
    %c0_i32 = arith.constant 0 : i32
    %1 = arith.cmpi eq, %arg1, %c0_i32 : i32
    %2 = arith.extui %1 : i1 to i32
    %c0_i32_0 = arith.constant 0 : i32
    %3 = arith.cmpi ne, %2, %c0_i32_0 : i32
    scf.if %3 {
      %c0_i32_4 = arith.constant 0 : i32
      %13 = vector.broadcast %c0_i32_4 : i32 to vector<8x128xi32>
      %14 = arith.cmpi eq, %0, %13 : vector<8x128xi32>
      %cst = arith.constant 0.000000e+00 : f32
      %cst_5 = arith.constant -1.000000e+30 : f32
      %15 = vector.broadcast %cst : f32 to vector<8x128xf32>
      %16 = vector.broadcast %cst_5 : f32 to vector<8x128xf32>
      %17 = arith.select %14, %15, %16 : vector<8x128xi1>, vector<8x128xf32>
      %c0 = arith.constant 0 : index
      %c0_6 = arith.constant 0 : index
      %18 = vector.load %arg8[%c0, %c0_6] : memref<8x128xf32, #tpu.memory_space<vmem>>, vector<8x128xf32>
      tpu.vector_store %arg8[%c0, %c0_6], %17 {strides = array<i32>} : memref<8x128xf32, #tpu.memory_space<vmem>>, vector<8x128xf32>,
      %c0_7 = arith.constant 0 : index
      %c0_8 = arith.constant 0 : index
      %c0_9 = arith.constant 0 : index
      %19 = vector.load %arg4[%c0_7, %c0_8, %c0_9] : memref<1x8x128xi32, #tpu.memory_space<vmem>>, vector<1x8x128xi32>
      %20 = vector.shape_cast %19 : vector<1x8x128xi32> to vector<8x128xi32>
      %21 = tpu.iota {dimensions = array<i32: 1>} : vector<8x128x128xi32>
      %22 = vector.shape_cast %20 : vector<8x128xi32> to vector<8x1x128xi32>
      %23 = vector.broadcast %22 : vector<8x1x128xi32> to vector<8x128x128xi32>
      %24 = arith.cmpi eq, %21, %23 : vector<8x128x128xi32>
      %25 = arith.extui %24 : vector<8x128x128xi1> to vector<8x128x128xi32>
      %26 = arith.sitofp %25 : vector<8x128x128xi32> to vector<8x128x128xf32>
      %c0_10 = arith.constant 0 : index
      %c0_11 = arith.constant 0 : index
      %c0_12 = arith.constant 0 : index
      %27 = vector.load %arg9[%c0_10, %c0_11, %c0_12] : memref<8x128x128xf32, #tpu.memory_space<vmem>>, vector<8x128x128xf32>
      tpu.vector_store %arg9[%c0_10, %c0_11, %c0_12], %26 {strides = array<i32>} : memref<8x128x128xf32, #tpu.memory_space<vmem>>, vector<8x128x128xf32>,
      %c1_i32 = arith.constant 1 : i32
      %28 = vector.broadcast %c1_i32 : i32 to vector<8x128xi32>
      %29 = arith.cmpi sge, %0, %28 : vector<8x128xi32>
      %cst_13 = arith.constant 0.000000e+00 : f32
      %cst_14 = arith.constant -1.000000e+30 : f32
      %30 = vector.broadcast %cst_13 : f32 to vector<8x128xf32>
      %31 = vector.broadcast %cst_14 : f32 to vector<8x128xf32>
      %32 = arith.select %29, %30, %31 : vector<8x128xi1>, vector<8x128xf32>
      %c0_15 = arith.constant 0 : index
      %c0_16 = arith.constant 0 : index
      %33 = vector.load %arg10[%c0_15, %c0_16] : memref<8x128xf32, #tpu.memory_space<vmem>>, vector<8x128xf32>
      tpu.vector_store %arg10[%c0_15, %c0_16], %32 {strides = array<i32>} : memref<8x128xf32, #tpu.memory_space<vmem>>, vector<8x128xf32>,
      %c2_i32 = arith.constant 2 : i32
      %34 = tpu.dynamic_rotate %20 by %c2_i32 dim 1 : vector<8x128xi32>, i32 -> vector<8x128xi32>
      %c2_i32_17 = arith.constant 2 : i32
      %35 = vector.broadcast %c2_i32_17 : i32 to vector<8x128xi32>
      %36 = arith.cmpi sge, %0, %35 : vector<8x128xi32>
      %c0_i32_18 = arith.constant 0 : i32
      %37 = vector.broadcast %c0_i32_18 : i32 to vector<8x128xi32>
      %38 = arith.cmpi ne, %20, %37 : vector<8x128xi32>
      %39 = arith.andi %36, %38 : vector<8x128xi1>
      %40 = arith.cmpi ne, %20, %34 : vector<8x128xi32>
      %41 = arith.andi %39, %40 : vector<8x128xi1>
      %cst_19 = arith.constant 0.000000e+00 : f32
      %cst_20 = arith.constant -1.000000e+30 : f32
      %42 = vector.broadcast %cst_19 : f32 to vector<8x128xf32>
      %43 = vector.broadcast %cst_20 : f32 to vector<8x128xf32>
      %44 = arith.select %41, %42, %43 : vector<8x128xi1>, vector<8x128xf32>
      %c0_21 = arith.constant 0 : index
      %c0_22 = arith.constant 0 : index
      %45 = vector.load %arg11[%c0_21, %c0_22] : memref<8x128xf32, #tpu.memory_space<vmem>>, vector<8x128xf32>
      tpu.vector_store %arg11[%c0_21, %c0_22], %44 {strides = array<i32>} : memref<8x128xf32, #tpu.memory_space<vmem>>, vector<8x128xf32>,
    } else {
    }
    %c16_i32 = arith.constant 16 : i32
    %4 = arith.muli %arg1, %c16_i32 : i32
    %5 = arith.index_cast %arg0 : i32 to index
    %6 = memref.load %arg2[%5] : memref<1xi32, #tpu.memory_space<smem>>
    %7 = arith.cmpi slt, %4, %6 : i32
    %8 = arith.extui %7 : i1 to i32
    %c0_i32_1 = arith.constant 0 : i32
    %9 = arith.cmpi ne, %8, %c0_i32_1 : i32
    scf.if %9 {
      %c0 = arith.constant 0 : index
      %c0_4 = arith.constant 0 : index
      %c0_5 = arith.constant 0 : index
      %c0_6 = arith.constant 0 : index
      %13 = vector.load %arg3[%c0, %c0_4, %c0_5, %c0_6] : memref<1x8x16x128xf32, #tpu.memory_space<vmem>>, vector<1x8x16x128xf32>
      %14 = vector.shape_cast %13 : vector<1x8x16x128xf32> to vector<8x16x128xf32>
      %cst = arith.constant dense<0xFF800000> : vector<8x16xf32>
      %15 = vector.multi_reduction <maximumf>, %14, %cst [2] : vector<8x16x128xf32> to vector<8x16xf32>
      %16 = vector.shape_cast %15 : vector<8x16xf32> to vector<8x16x1xf32>
      %17 = vector.broadcast %16 : vector<8x16x1xf32> to vector<8x16x128xf32>
      %18 = arith.subf %14, %17 : vector<8x16x128xf32>
      %19 = math.exp %18 : vector<8x16x128xf32>
      %cst_7 = arith.constant dense<0.000000e+00> : vector<8x16xf32>
      %20 = vector.multi_reduction <add>, %19, %cst_7 [2] : vector<8x16x128xf32> to vector<8x16xf32>
      %21 = vector.shape_cast %20 : vector<8x16xf32> to vector<8x16x1xf32>
      %22 = math.log %21 : vector<8x16x1xf32>
      %23 = arith.addf %16, %22 : vector<8x16x1xf32>
      %c0_8 = arith.constant 0 : index
      %c0_9 = arith.constant 0 : index
      %c0_10 = arith.constant 0 : index
      %24 = vector.load %arg9[%c0_8, %c0_9, %c0_10] : memref<8x128x128xf32, #tpu.memory_space<vmem>>, vector<8x128x128xf32>
      "tpu.trace_start"() <{level = 10 : i32, message = "ntd,nds->nts"}> : () -> ()
      %cst_11 = arith.constant dense<0.000000e+00> : vector<8x16x128xf32>
      %25 = tpu.matmul %14, %24, %cst_11 {dimension_numbers = #tpu.dot_dimension_numbers<[2], [1], [1], [2], [0, 0, 0, 1, 1, 2], [0], [0]>, precision = #tpu.contract_precision<fp32>} : vector<8x16x128xf32>, vector<8x128x128xf32>, vector<8x16x128xf32> -> vector<8x16x128xf32>
      "tpu.trace_stop"() : () -> ()
      %26 = vector.broadcast %23 : vector<8x16x1xf32> to vector<8x16x128xf32>
      %27 = arith.subf %25, %26 : vector<8x16x128xf32>
      %c0_12 = arith.constant 0 : index
      %c0_13 = arith.constant 0 : index
      %28 = vector.load %arg10[%c0_12, %c0_13] : memref<8x128xf32, #tpu.memory_space<vmem>>, vector<8x128xf32>
      %c0_14 = arith.constant 0 : index
      %c0_15 = arith.constant 0 : index
      %29 = vector.load %arg11[%c0_14, %c0_15] : memref<8x128xf32, #tpu.memory_space<vmem>>, vector<8x128xf32>
      %c0_16 = arith.constant 0 : index
      %c0_17 = arith.constant 0 : index
      %c0_18 = arith.constant 0 : index
      %30 = vector.load %arg5[%c0_16, %c0_17, %c0_18] : memref<1x8x1xi32, #tpu.memory_space<vmem>>, vector<1x8x1xi32>
      %31 = vector.shape_cast %30 : vector<1x8x1xi32> to vector<8x1xi32>
      %c0_19 = arith.constant 0 : index
      %c0_20 = arith.constant 0 : index
      %32 = vector.load %arg8[%c0_19, %c0_20] : memref<8x128xf32, #tpu.memory_space<vmem>>, vector<8x128xf32>
      %33 = vector.extract_strided_slice %27 {offsets = [0, 0, 0], sizes = [8, 1, 128], strides = [1, 1, 1]} : vector<8x16x128xf32> to vector<8x1x128xf32>
      %34 = vector.shape_cast %33 : vector<8x1x128xf32> to vector<8x128xf32>
      %c16_i32_21 = arith.constant 16 : i32
      %35 = arith.muli %arg1, %c16_i32_21 : i32
      %c0_i32_22 = arith.constant 0 : i32
      %36 = arith.addi %35, %c0_i32_22 : i32
      %c1_i32 = arith.constant 1 : i32
      %37 = tpu.dynamic_rotate %32 by %c1_i32 dim 1 : vector<8x128xf32>, i32 -> vector<8x128xf32>
      %38 = arith.addf %37, %28 : vector<8x128xf32>
      %c2_i32 = arith.constant 2 : i32
      %39 = tpu.dynamic_rotate %32 by %c2_i32 dim 1 : vector<8x128xf32>, i32 -> vector<8x128xf32>
      %40 = arith.addf %39, %29 : vector<8x128xf32>
      %41 = arith.maximumf %32, %38 : vector<8x128xf32>
      %42 = arith.maximumf %41, %40 : vector<8x128xf32>
      %43 = arith.subf %32, %42 : vector<8x128xf32>
      %44 = math.exp %43 : vector<8x128xf32>
      %45 = arith.subf %38, %42 : vector<8x128xf32>
      %46 = math.exp %45 : vector<8x128xf32>
      %47 = arith.addf %44, %46 : vector<8x128xf32>
      %48 = arith.subf %40, %42 : vector<8x128xf32>
      %49 = math.exp %48 : vector<8x128xf32>
      %50 = arith.addf %47, %49 : vector<8x128xf32>
      %51 = math.log %50 : vector<8x128xf32>
      %52 = arith.addf %42, %51 : vector<8x128xf32>
      %53 = arith.addf %52, %34 : vector<8x128xf32>
      %54 = vector.broadcast %36 : i32 to vector<8x1xi32>
      %55 = arith.cmpi slt, %54, %31 : vector<8x1xi32>
      %56 = vector.shape_cast %55 : vector<8x1xi1> to vector<8x1xi1>
      %57 = vector.broadcast %56 : vector<8x1xi1> to vector<8x128xi1>
      %58 = arith.select %57, %53, %32 : vector<8x128xi1>, vector<8x128xf32>
      %59 = vector.extract_strided_slice %27 {offsets = [0, 1, 0], sizes = [8, 1, 128], strides = [1, 1, 1]} : vector<8x16x128xf32> to vector<8x1x128xf32>
      %60 = vector.shape_cast %59 : vector<8x1x128xf32> to vector<8x128xf32>
      %c16_i32_23 = arith.constant 16 : i32
      %61 = arith.muli %arg1, %c16_i32_23 : i32
      %c1_i32_24 = arith.constant 1 : i32
      %62 = arith.addi %61, %c1_i32_24 : i32
      %c1_i32_25 = arith.constant 1 : i32
      %63 = tpu.dynamic_rotate %58 by %c1_i32_25 dim 1 : vector<8x128xf32>, i32 -> vector<8x128xf32>
      %64 = arith.addf %63, %28 : vector<8x128xf32>
      %c2_i32_26 = arith.constant 2 : i32
      %65 = tpu.dynamic_rotate %58 by %c2_i32_26 dim 1 : vector<8x128xf32>, i32 -> vector<8x128xf32>
      %66 = arith.addf %65, %29 : vector<8x128xf32>
      %67 = arith.maximumf %58, %64 : vector<8x128xf32>
      %68 = arith.maximumf %67, %66 : vector<8x128xf32>
      %69 = arith.subf %58, %68 : vector<8x128xf32>
      %70 = math.exp %69 : vector<8x128xf32>
      %71 = arith.subf %64, %68 : vector<8x128xf32>
      %72 = math.exp %71 : vector<8x128xf32>
      %73 = arith.addf %70, %72 : vector<8x128xf32>
      %74 = arith.subf %66, %68 : vector<8x128xf32>
      %75 = math.exp %74 : vector<8x128xf32>
      %76 = arith.addf %73, %75 : vector<8x128xf32>
      %77 = math.log %76 : vector<8x128xf32>
      %78 = arith.addf %68, %77 : vector<8x128xf32>
      %79 = arith.addf %78, %60 : vector<8x128xf32>
      %80 = vector.broadcast %62 : i32 to vector<8x1xi32>
      %81 = arith.cmpi slt, %80, %31 : vector<8x1xi32>
      %82 = vector.shape_cast %81 : vector<8x1xi1> to vector<8x1xi1>
      %83 = vector.broadcast %82 : vector<8x1xi1> to vector<8x128xi1>
      %84 = arith.select %83, %79, %58 : vector<8x128xi1>, vector<8x128xf32>
      %85 = vector.extract_strided_slice %27 {offsets = [0, 2, 0], sizes = [8, 1, 128], strides = [1, 1, 1]} : vector<8x16x128xf32> to vector<8x1x128xf32>
      %86 = vector.shape_cast %85 : vector<8x1x128xf32> to vector<8x128xf32>
      %c16_i32_27 = arith.constant 16 : i32
      %87 = arith.muli %arg1, %c16_i32_27 : i32
      %c2_i32_28 = arith.constant 2 : i32
      %88 = arith.addi %87, %c2_i32_28 : i32
      %c1_i32_29 = arith.constant 1 : i32
      %89 = tpu.dynamic_rotate %84 by %c1_i32_29 dim 1 : vector<8x128xf32>, i32 -> vector<8x128xf32>
      %90 = arith.addf %89, %28 : vector<8x128xf32>
      %c2_i32_30 = arith.constant 2 : i32
      %91 = tpu.dynamic_rotate %84 by %c2_i32_30 dim 1 : vector<8x128xf32>, i32 -> vector<8x128xf32>
      %92 = arith.addf %91, %29 : vector<8x128xf32>
      %93 = arith.maximumf %84, %90 : vector<8x128xf32>
      %94 = arith.maximumf %93, %92 : vector<8x128xf32>
      %95 = arith.subf %84, %94 : vector<8x128xf32>
      %96 = math.exp %95 : vector<8x128xf32>
      %97 = arith.subf %90, %94 : vector<8x128xf32>
      %98 = math.exp %97 : vector<8x128xf32>
      %99 = arith.addf %96, %98 : vector<8x128xf32>
      %100 = arith.subf %92, %94 : vector<8x128xf32>
      %101 = math.exp %100 : vector<8x128xf32>
      %102 = arith.addf %99, %101 : vector<8x128xf32>
      %103 = math.log %102 : vector<8x128xf32>
      %104 = arith.addf %94, %103 : vector<8x128xf32>
      %105 = arith.addf %104, %86 : vector<8x128xf32>
      %106 = vector.broadcast %88 : i32 to vector<8x1xi32>
      %107 = arith.cmpi slt, %106, %31 : vector<8x1xi32>
      %108 = vector.shape_cast %107 : vector<8x1xi1> to vector<8x1xi1>
      %109 = vector.broadcast %108 : vector<8x1xi1> to vector<8x128xi1>
      %110 = arith.select %109, %105, %84 : vector<8x128xi1>, vector<8x128xf32>
      %111 = vector.extract_strided_slice %27 {offsets = [0, 3, 0], sizes = [8, 1, 128], strides = [1, 1, 1]} : vector<8x16x128xf32> to vector<8x1x128xf32>
      %112 = vector.shape_cast %111 : vector<8x1x128xf32> to vector<8x128xf32>
      %c16_i32_31 = arith.constant 16 : i32
      %113 = arith.muli %arg1, %c16_i32_31 : i32
      %c3_i32 = arith.constant 3 : i32
      %114 = arith.addi %113, %c3_i32 : i32
      %c1_i32_32 = arith.constant 1 : i32
      %115 = tpu.dynamic_rotate %110 by %c1_i32_32 dim 1 : vector<8x128xf32>, i32 -> vector<8x128xf32>
      %116 = arith.addf %115, %28 : vector<8x128xf32>
      %c2_i32_33 = arith.constant 2 : i32
      %117 = tpu.dynamic_rotate %110 by %c2_i32_33 dim 1 : vector<8x128xf32>, i32 -> vector<8x128xf32>
      %118 = arith.addf %117, %29 : vector<8x128xf32>
      %119 = arith.maximumf %110, %116 : vector<8x128xf32>
      %120 = arith.maximumf %119, %118 : vector<8x128xf32>
      %121 = arith.subf %110, %120 : vector<8x128xf32>
      %122 = math.exp %121 : vector<8x128xf32>
      %123 = arith.subf %116, %120 : vector<8x128xf32>
      %124 = math.exp %123 : vector<8x128xf32>
      %125 = arith.addf %122, %124 : vector<8x128xf32>
      %126 = arith.subf %118, %120 : vector<8x128xf32>
      %127 = math.exp %126 : vector<8x128xf32>
      %128 = arith.addf %125, %127 : vector<8x128xf32>
      %129 = math.log %128 : vector<8x128xf32>
      %130 = arith.addf %120, %129 : vector<8x128xf32>
      %131 = arith.addf %130, %112 : vector<8x128xf32>
      %132 = vector.broadcast %114 : i32 to vector<8x1xi32>
      %133 = arith.cmpi slt, %132, %31 : vector<8x1xi32>
      %134 = vector.shape_cast %133 : vector<8x1xi1> to vector<8x1xi1>
      %135 = vector.broadcast %134 : vector<8x1xi1> to vector<8x128xi1>
      %136 = arith.select %135, %131, %110 : vector<8x128xi1>, vector<8x128xf32>
      %137 = vector.extract_strided_slice %27 {offsets = [0, 4, 0], sizes = [8, 1, 128], strides = [1, 1, 1]} : vector<8x16x128xf32> to vector<8x1x128xf32>
      %138 = vector.shape_cast %137 : vector<8x1x128xf32> to vector<8x128xf32>
      %c16_i32_34 = arith.constant 16 : i32
      %139 = arith.muli %arg1, %c16_i32_34 : i32
      %c4_i32 = arith.constant 4 : i32
      %140 = arith.addi %139, %c4_i32 : i32
      %c1_i32_35 = arith.constant 1 : i32
      %141 = tpu.dynamic_rotate %136 by %c1_i32_35 dim 1 : vector<8x128xf32>, i32 -> vector<8x128xf32>
      %142 = arith.addf %141, %28 : vector<8x128xf32>
      %c2_i32_36 = arith.constant 2 : i32
      %143 = tpu.dynamic_rotate %136 by %c2_i32_36 dim 1 : vector<8x128xf32>, i32 -> vector<8x128xf32>
      %144 = arith.addf %143, %29 : vector<8x128xf32>
      %145 = arith.maximumf %136, %142 : vector<8x128xf32>
      %146 = arith.maximumf %145, %144 : vector<8x128xf32>
      %147 = arith.subf %136, %146 : vector<8x128xf32>
      %148 = math.exp %147 : vector<8x128xf32>
      %149 = arith.subf %142, %146 : vector<8x128xf32>
      %150 = math.exp %149 : vector<8x128xf32>
      %151 = arith.addf %148, %150 : vector<8x128xf32>
      %152 = arith.subf %144, %146 : vector<8x128xf32>
      %153 = math.exp %152 : vector<8x128xf32>
      %154 = arith.addf %151, %153 : vector<8x128xf32>
      %155 = math.log %154 : vector<8x128xf32>
      %156 = arith.addf %146, %155 : vector<8x128xf32>
      %157 = arith.addf %156, %138 : vector<8x128xf32>
      %158 = vector.broadcast %140 : i32 to vector<8x1xi32>
      %159 = arith.cmpi slt, %158, %31 : vector<8x1xi32>
      %160 = vector.shape_cast %159 : vector<8x1xi1> to vector<8x1xi1>
      %161 = vector.broadcast %160 : vector<8x1xi1> to vector<8x128xi1>
      %162 = arith.select %161, %157, %136 : vector<8x128xi1>, vector<8x128xf32>
      %163 = vector.extract_strided_slice %27 {offsets = [0, 5, 0], sizes = [8, 1, 128], strides = [1, 1, 1]} : vector<8x16x128xf32> to vector<8x1x128xf32>
      %164 = vector.shape_cast %163 : vector<8x1x128xf32> to vector<8x128xf32>
      %c16_i32_37 = arith.constant 16 : i32
      %165 = arith.muli %arg1, %c16_i32_37 : i32
      %c5_i32 = arith.constant 5 : i32
      %166 = arith.addi %165, %c5_i32 : i32
      %c1_i32_38 = arith.constant 1 : i32
      %167 = tpu.dynamic_rotate %162 by %c1_i32_38 dim 1 : vector<8x128xf32>, i32 -> vector<8x128xf32>
      %168 = arith.addf %167, %28 : vector<8x128xf32>
      %c2_i32_39 = arith.constant 2 : i32
      %169 = tpu.dynamic_rotate %162 by %c2_i32_39 dim 1 : vector<8x128xf32>, i32 -> vector<8x128xf32>
      %170 = arith.addf %169, %29 : vector<8x128xf32>
      %171 = arith.maximumf %162, %168 : vector<8x128xf32>
      %172 = arith.maximumf %171, %170 : vector<8x128xf32>
      %173 = arith.subf %162, %172 : vector<8x128xf32>
      %174 = math.exp %173 : vector<8x128xf32>
      %175 = arith.subf %168, %172 : vector<8x128xf32>
      %176 = math.exp %175 : vector<8x128xf32>
      %177 = arith.addf %174, %176 : vector<8x128xf32>
      %178 = arith.subf %170, %172 : vector<8x128xf32>
      %179 = math.exp %178 : vector<8x128xf32>
      %180 = arith.addf %177, %179 : vector<8x128xf32>
      %181 = math.log %180 : vector<8x128xf32>
      %182 = arith.addf %172, %181 : vector<8x128xf32>
      %183 = arith.addf %182, %164 : vector<8x128xf32>
      %184 = vector.broadcast %166 : i32 to vector<8x1xi32>
      %185 = arith.cmpi slt, %184, %31 : vector<8x1xi32>
      %186 = vector.shape_cast %185 : vector<8x1xi1> to vector<8x1xi1>
      %187 = vector.broadcast %186 : vector<8x1xi1> to vector<8x128xi1>
      %188 = arith.select %187, %183, %162 : vector<8x128xi1>, vector<8x128xf32>
      %189 = vector.extract_strided_slice %27 {offsets = [0, 6, 0], sizes = [8, 1, 128], strides = [1, 1, 1]} : vector<8x16x128xf32> to vector<8x1x128xf32>
      %190 = vector.shape_cast %189 : vector<8x1x128xf32> to vector<8x128xf32>
      %c16_i32_40 = arith.constant 16 : i32
      %191 = arith.muli %arg1, %c16_i32_40 : i32
      %c6_i32 = arith.constant 6 : i32
      %192 = arith.addi %191, %c6_i32 : i32
      %c1_i32_41 = arith.constant 1 : i32
      %193 = tpu.dynamic_rotate %188 by %c1_i32_41 dim 1 : vector<8x128xf32>, i32 -> vector<8x128xf32>
      %194 = arith.addf %193, %28 : vector<8x128xf32>
      %c2_i32_42 = arith.constant 2 : i32
      %195 = tpu.dynamic_rotate %188 by %c2_i32_42 dim 1 : vector<8x128xf32>, i32 -> vector<8x128xf32>
      %196 = arith.addf %195, %29 : vector<8x128xf32>
      %197 = arith.maximumf %188, %194 : vector<8x128xf32>
      %198 = arith.maximumf %197, %196 : vector<8x128xf32>
      %199 = arith.subf %188, %198 : vector<8x128xf32>
      %200 = math.exp %199 : vector<8x128xf32>
      %201 = arith.subf %194, %198 : vector<8x128xf32>
      %202 = math.exp %201 : vector<8x128xf32>
      %203 = arith.addf %200, %202 : vector<8x128xf32>
      %204 = arith.subf %196, %198 : vector<8x128xf32>
      %205 = math.exp %204 : vector<8x128xf32>
      %206 = arith.addf %203, %205 : vector<8x128xf32>
      %207 = math.log %206 : vector<8x128xf32>
      %208 = arith.addf %198, %207 : vector<8x128xf32>
      %209 = arith.addf %208, %190 : vector<8x128xf32>
      %210 = vector.broadcast %192 : i32 to vector<8x1xi32>
      %211 = arith.cmpi slt, %210, %31 : vector<8x1xi32>
      %212 = vector.shape_cast %211 : vector<8x1xi1> to vector<8x1xi1>
      %213 = vector.broadcast %212 : vector<8x1xi1> to vector<8x128xi1>
      %214 = arith.select %213, %209, %188 : vector<8x128xi1>, vector<8x128xf32>
      %215 = vector.extract_strided_slice %27 {offsets = [0, 7, 0], sizes = [8, 1, 128], strides = [1, 1, 1]} : vector<8x16x128xf32> to vector<8x1x128xf32>
      %216 = vector.shape_cast %215 : vector<8x1x128xf32> to vector<8x128xf32>
      %c16_i32_43 = arith.constant 16 : i32
      %217 = arith.muli %arg1, %c16_i32_43 : i32
      %c7_i32 = arith.constant 7 : i32
      %218 = arith.addi %217, %c7_i32 : i32
      %c1_i32_44 = arith.constant 1 : i32
      %219 = tpu.dynamic_rotate %214 by %c1_i32_44 dim 1 : vector<8x128xf32>, i32 -> vector<8x128xf32>
      %220 = arith.addf %219, %28 : vector<8x128xf32>
      %c2_i32_45 = arith.constant 2 : i32
      %221 = tpu.dynamic_rotate %214 by %c2_i32_45 dim 1 : vector<8x128xf32>, i32 -> vector<8x128xf32>
      %222 = arith.addf %221, %29 : vector<8x128xf32>
      %223 = arith.maximumf %214, %220 : vector<8x128xf32>
      %224 = arith.maximumf %223, %222 : vector<8x128xf32>
      %225 = arith.subf %214, %224 : vector<8x128xf32>
      %226 = math.exp %225 : vector<8x128xf32>
      %227 = arith.subf %220, %224 : vector<8x128xf32>
      %228 = math.exp %227 : vector<8x128xf32>
      %229 = arith.addf %226, %228 : vector<8x128xf32>
      %230 = arith.subf %222, %224 : vector<8x128xf32>
      %231 = math.exp %230 : vector<8x128xf32>
      %232 = arith.addf %229, %231 : vector<8x128xf32>
      %233 = math.log %232 : vector<8x128xf32>
      %234 = arith.addf %224, %233 : vector<8x128xf32>
      %235 = arith.addf %234, %216 : vector<8x128xf32>
      %236 = vector.broadcast %218 : i32 to vector<8x1xi32>
      %237 = arith.cmpi slt, %236, %31 : vector<8x1xi32>
      %238 = vector.shape_cast %237 : vector<8x1xi1> to vector<8x1xi1>
      %239 = vector.broadcast %238 : vector<8x1xi1> to vector<8x128xi1>
      %240 = arith.select %239, %235, %214 : vector<8x128xi1>, vector<8x128xf32>
      %241 = vector.extract_strided_slice %27 {offsets = [0, 8, 0], sizes = [8, 1, 128], strides = [1, 1, 1]} : vector<8x16x128xf32> to vector<8x1x128xf32>
      %242 = vector.shape_cast %241 : vector<8x1x128xf32> to vector<8x128xf32>
      %c16_i32_46 = arith.constant 16 : i32
      %243 = arith.muli %arg1, %c16_i32_46 : i32
      %c8_i32 = arith.constant 8 : i32
      %244 = arith.addi %243, %c8_i32 : i32
      %c1_i32_47 = arith.constant 1 : i32
      %245 = tpu.dynamic_rotate %240 by %c1_i32_47 dim 1 : vector<8x128xf32>, i32 -> vector<8x128xf32>
      %246 = arith.addf %245, %28 : vector<8x128xf32>
      %c2_i32_48 = arith.constant 2 : i32
      %247 = tpu.dynamic_rotate %240 by %c2_i32_48 dim 1 : vector<8x128xf32>, i32 -> vector<8x128xf32>
      %248 = arith.addf %247, %29 : vector<8x128xf32>
      %249 = arith.maximumf %240, %246 : vector<8x128xf32>
      %250 = arith.maximumf %249, %248 : vector<8x128xf32>
      %251 = arith.subf %240, %250 : vector<8x128xf32>
      %252 = math.exp %251 : vector<8x128xf32>
      %253 = arith.subf %246, %250 : vector<8x128xf32>
      %254 = math.exp %253 : vector<8x128xf32>
      %255 = arith.addf %252, %254 : vector<8x128xf32>
      %256 = arith.subf %248, %250 : vector<8x128xf32>
      %257 = math.exp %256 : vector<8x128xf32>
      %258 = arith.addf %255, %257 : vector<8x128xf32>
      %259 = math.log %258 : vector<8x128xf32>
      %260 = arith.addf %250, %259 : vector<8x128xf32>
      %261 = arith.addf %260, %242 : vector<8x128xf32>
      %262 = vector.broadcast %244 : i32 to vector<8x1xi32>
      %263 = arith.cmpi slt, %262, %31 : vector<8x1xi32>
      %264 = vector.shape_cast %263 : vector<8x1xi1> to vector<8x1xi1>
      %265 = vector.broadcast %264 : vector<8x1xi1> to vector<8x128xi1>
      %266 = arith.select %265, %261, %240 : vector<8x128xi1>, vector<8x128xf32>
      %267 = vector.extract_strided_slice %27 {offsets = [0, 9, 0], sizes = [8, 1, 128], strides = [1, 1, 1]} : vector<8x16x128xf32> to vector<8x1x128xf32>
      %268 = vector.shape_cast %267 : vector<8x1x128xf32> to vector<8x128xf32>
      %c16_i32_49 = arith.constant 16 : i32
      %269 = arith.muli %arg1, %c16_i32_49 : i32
      %c9_i32 = arith.constant 9 : i32
      %270 = arith.addi %269, %c9_i32 : i32
      %c1_i32_50 = arith.constant 1 : i32
      %271 = tpu.dynamic_rotate %266 by %c1_i32_50 dim 1 : vector<8x128xf32>, i32 -> vector<8x128xf32>
      %272 = arith.addf %271, %28 : vector<8x128xf32>
      %c2_i32_51 = arith.constant 2 : i32
      %273 = tpu.dynamic_rotate %266 by %c2_i32_51 dim 1 : vector<8x128xf32>, i32 -> vector<8x128xf32>
      %274 = arith.addf %273, %29 : vector<8x128xf32>
      %275 = arith.maximumf %266, %272 : vector<8x128xf32>
      %276 = arith.maximumf %275, %274 : vector<8x128xf32>
      %277 = arith.subf %266, %276 : vector<8x128xf32>
      %278 = math.exp %277 : vector<8x128xf32>
      %279 = arith.subf %272, %276 : vector<8x128xf32>
      %280 = math.exp %279 : vector<8x128xf32>
      %281 = arith.addf %278, %280 : vector<8x128xf32>
      %282 = arith.subf %274, %276 : vector<8x128xf32>
      %283 = math.exp %282 : vector<8x128xf32>
      %284 = arith.addf %281, %283 : vector<8x128xf32>
      %285 = math.log %284 : vector<8x128xf32>
      %286 = arith.addf %276, %285 : vector<8x128xf32>
      %287 = arith.addf %286, %268 : vector<8x128xf32>
      %288 = vector.broadcast %270 : i32 to vector<8x1xi32>
      %289 = arith.cmpi slt, %288, %31 : vector<8x1xi32>
      %290 = vector.shape_cast %289 : vector<8x1xi1> to vector<8x1xi1>
      %291 = vector.broadcast %290 : vector<8x1xi1> to vector<8x128xi1>
      %292 = arith.select %291, %287, %266 : vector<8x128xi1>, vector<8x128xf32>
      %293 = vector.extract_strided_slice %27 {offsets = [0, 10, 0], sizes = [8, 1, 128], strides = [1, 1, 1]} : vector<8x16x128xf32> to vector<8x1x128xf32>
      %294 = vector.shape_cast %293 : vector<8x1x128xf32> to vector<8x128xf32>
      %c16_i32_52 = arith.constant 16 : i32
      %295 = arith.muli %arg1, %c16_i32_52 : i32
      %c10_i32 = arith.constant 10 : i32
      %296 = arith.addi %295, %c10_i32 : i32
      %c1_i32_53 = arith.constant 1 : i32
      %297 = tpu.dynamic_rotate %292 by %c1_i32_53 dim 1 : vector<8x128xf32>, i32 -> vector<8x128xf32>
      %298 = arith.addf %297, %28 : vector<8x128xf32>
      %c2_i32_54 = arith.constant 2 : i32
      %299 = tpu.dynamic_rotate %292 by %c2_i32_54 dim 1 : vector<8x128xf32>, i32 -> vector<8x128xf32>
      %300 = arith.addf %299, %29 : vector<8x128xf32>
      %301 = arith.maximumf %292, %298 : vector<8x128xf32>
      %302 = arith.maximumf %301, %300 : vector<8x128xf32>
      %303 = arith.subf %292, %302 : vector<8x128xf32>
      %304 = math.exp %303 : vector<8x128xf32>
      %305 = arith.subf %298, %302 : vector<8x128xf32>
      %306 = math.exp %305 : vector<8x128xf32>
      %307 = arith.addf %304, %306 : vector<8x128xf32>
      %308 = arith.subf %300, %302 : vector<8x128xf32>
      %309 = math.exp %308 : vector<8x128xf32>
      %310 = arith.addf %307, %309 : vector<8x128xf32>
      %311 = math.log %310 : vector<8x128xf32>
      %312 = arith.addf %302, %311 : vector<8x128xf32>
      %313 = arith.addf %312, %294 : vector<8x128xf32>
      %314 = vector.broadcast %296 : i32 to vector<8x1xi32>
      %315 = arith.cmpi slt, %314, %31 : vector<8x1xi32>
      %316 = vector.shape_cast %315 : vector<8x1xi1> to vector<8x1xi1>
      %317 = vector.broadcast %316 : vector<8x1xi1> to vector<8x128xi1>
      %318 = arith.select %317, %313, %292 : vector<8x128xi1>, vector<8x128xf32>
      %319 = vector.extract_strided_slice %27 {offsets = [0, 11, 0], sizes = [8, 1, 128], strides = [1, 1, 1]} : vector<8x16x128xf32> to vector<8x1x128xf32>
      %320 = vector.shape_cast %319 : vector<8x1x128xf32> to vector<8x128xf32>
      %c16_i32_55 = arith.constant 16 : i32
      %321 = arith.muli %arg1, %c16_i32_55 : i32
      %c11_i32 = arith.constant 11 : i32
      %322 = arith.addi %321, %c11_i32 : i32
      %c1_i32_56 = arith.constant 1 : i32
      %323 = tpu.dynamic_rotate %318 by %c1_i32_56 dim 1 : vector<8x128xf32>, i32 -> vector<8x128xf32>
      %324 = arith.addf %323, %28 : vector<8x128xf32>
      %c2_i32_57 = arith.constant 2 : i32
      %325 = tpu.dynamic_rotate %318 by %c2_i32_57 dim 1 : vector<8x128xf32>, i32 -> vector<8x128xf32>
      %326 = arith.addf %325, %29 : vector<8x128xf32>
      %327 = arith.maximumf %318, %324 : vector<8x128xf32>
      %328 = arith.maximumf %327, %326 : vector<8x128xf32>
      %329 = arith.subf %318, %328 : vector<8x128xf32>
      %330 = math.exp %329 : vector<8x128xf32>
      %331 = arith.subf %324, %328 : vector<8x128xf32>
      %332 = math.exp %331 : vector<8x128xf32>
      %333 = arith.addf %330, %332 : vector<8x128xf32>
      %334 = arith.subf %326, %328 : vector<8x128xf32>
      %335 = math.exp %334 : vector<8x128xf32>
      %336 = arith.addf %333, %335 : vector<8x128xf32>
      %337 = math.log %336 : vector<8x128xf32>
      %338 = arith.addf %328, %337 : vector<8x128xf32>
      %339 = arith.addf %338, %320 : vector<8x128xf32>
      %340 = vector.broadcast %322 : i32 to vector<8x1xi32>
      %341 = arith.cmpi slt, %340, %31 : vector<8x1xi32>
      %342 = vector.shape_cast %341 : vector<8x1xi1> to vector<8x1xi1>
      %343 = vector.broadcast %342 : vector<8x1xi1> to vector<8x128xi1>
      %344 = arith.select %343, %339, %318 : vector<8x128xi1>, vector<8x128xf32>
      %345 = vector.extract_strided_slice %27 {offsets = [0, 12, 0], sizes = [8, 1, 128], strides = [1, 1, 1]} : vector<8x16x128xf32> to vector<8x1x128xf32>
      %346 = vector.shape_cast %345 : vector<8x1x128xf32> to vector<8x128xf32>
      %c16_i32_58 = arith.constant 16 : i32
      %347 = arith.muli %arg1, %c16_i32_58 : i32
      %c12_i32 = arith.constant 12 : i32
      %348 = arith.addi %347, %c12_i32 : i32
      %c1_i32_59 = arith.constant 1 : i32
      %349 = tpu.dynamic_rotate %344 by %c1_i32_59 dim 1 : vector<8x128xf32>, i32 -> vector<8x128xf32>
      %350 = arith.addf %349, %28 : vector<8x128xf32>
      %c2_i32_60 = arith.constant 2 : i32
      %351 = tpu.dynamic_rotate %344 by %c2_i32_60 dim 1 : vector<8x128xf32>, i32 -> vector<8x128xf32>
      %352 = arith.addf %351, %29 : vector<8x128xf32>
      %353 = arith.maximumf %344, %350 : vector<8x128xf32>
      %354 = arith.maximumf %353, %352 : vector<8x128xf32>
      %355 = arith.subf %344, %354 : vector<8x128xf32>
      %356 = math.exp %355 : vector<8x128xf32>
      %357 = arith.subf %350, %354 : vector<8x128xf32>
      %358 = math.exp %357 : vector<8x128xf32>
      %359 = arith.addf %356, %358 : vector<8x128xf32>
      %360 = arith.subf %352, %354 : vector<8x128xf32>
      %361 = math.exp %360 : vector<8x128xf32>
      %362 = arith.addf %359, %361 : vector<8x128xf32>
      %363 = math.log %362 : vector<8x128xf32>
      %364 = arith.addf %354, %363 : vector<8x128xf32>
      %365 = arith.addf %364, %346 : vector<8x128xf32>
      %366 = vector.broadcast %348 : i32 to vector<8x1xi32>
      %367 = arith.cmpi slt, %366, %31 : vector<8x1xi32>
      %368 = vector.shape_cast %367 : vector<8x1xi1> to vector<8x1xi1>
      %369 = vector.broadcast %368 : vector<8x1xi1> to vector<8x128xi1>
      %370 = arith.select %369, %365, %344 : vector<8x128xi1>, vector<8x128xf32>
      %371 = vector.extract_strided_slice %27 {offsets = [0, 13, 0], sizes = [8, 1, 128], strides = [1, 1, 1]} : vector<8x16x128xf32> to vector<8x1x128xf32>
      %372 = vector.shape_cast %371 : vector<8x1x128xf32> to vector<8x128xf32>
      %c16_i32_61 = arith.constant 16 : i32
      %373 = arith.muli %arg1, %c16_i32_61 : i32
      %c13_i32 = arith.constant 13 : i32
      %374 = arith.addi %373, %c13_i32 : i32
      %c1_i32_62 = arith.constant 1 : i32
      %375 = tpu.dynamic_rotate %370 by %c1_i32_62 dim 1 : vector<8x128xf32>, i32 -> vector<8x128xf32>
      %376 = arith.addf %375, %28 : vector<8x128xf32>
      %c2_i32_63 = arith.constant 2 : i32
      %377 = tpu.dynamic_rotate %370 by %c2_i32_63 dim 1 : vector<8x128xf32>, i32 -> vector<8x128xf32>
      %378 = arith.addf %377, %29 : vector<8x128xf32>
      %379 = arith.maximumf %370, %376 : vector<8x128xf32>
      %380 = arith.maximumf %379, %378 : vector<8x128xf32>
      %381 = arith.subf %370, %380 : vector<8x128xf32>
      %382 = math.exp %381 : vector<8x128xf32>
      %383 = arith.subf %376, %380 : vector<8x128xf32>
      %384 = math.exp %383 : vector<8x128xf32>
      %385 = arith.addf %382, %384 : vector<8x128xf32>
      %386 = arith.subf %378, %380 : vector<8x128xf32>
      %387 = math.exp %386 : vector<8x128xf32>
      %388 = arith.addf %385, %387 : vector<8x128xf32>
      %389 = math.log %388 : vector<8x128xf32>
      %390 = arith.addf %380, %389 : vector<8x128xf32>
      %391 = arith.addf %390, %372 : vector<8x128xf32>
      %392 = vector.broadcast %374 : i32 to vector<8x1xi32>
      %393 = arith.cmpi slt, %392, %31 : vector<8x1xi32>
      %394 = vector.shape_cast %393 : vector<8x1xi1> to vector<8x1xi1>
      %395 = vector.broadcast %394 : vector<8x1xi1> to vector<8x128xi1>
      %396 = arith.select %395, %391, %370 : vector<8x128xi1>, vector<8x128xf32>
      %397 = vector.extract_strided_slice %27 {offsets = [0, 14, 0], sizes = [8, 1, 128], strides = [1, 1, 1]} : vector<8x16x128xf32> to vector<8x1x128xf32>
      %398 = vector.shape_cast %397 : vector<8x1x128xf32> to vector<8x128xf32>
      %c16_i32_64 = arith.constant 16 : i32
      %399 = arith.muli %arg1, %c16_i32_64 : i32
      %c14_i32 = arith.constant 14 : i32
      %400 = arith.addi %399, %c14_i32 : i32
      %c1_i32_65 = arith.constant 1 : i32
      %401 = tpu.dynamic_rotate %396 by %c1_i32_65 dim 1 : vector<8x128xf32>, i32 -> vector<8x128xf32>
      %402 = arith.addf %401, %28 : vector<8x128xf32>
      %c2_i32_66 = arith.constant 2 : i32
      %403 = tpu.dynamic_rotate %396 by %c2_i32_66 dim 1 : vector<8x128xf32>, i32 -> vector<8x128xf32>
      %404 = arith.addf %403, %29 : vector<8x128xf32>
      %405 = arith.maximumf %396, %402 : vector<8x128xf32>
      %406 = arith.maximumf %405, %404 : vector<8x128xf32>
      %407 = arith.subf %396, %406 : vector<8x128xf32>
      %408 = math.exp %407 : vector<8x128xf32>
      %409 = arith.subf %402, %406 : vector<8x128xf32>
      %410 = math.exp %409 : vector<8x128xf32>
      %411 = arith.addf %408, %410 : vector<8x128xf32>
      %412 = arith.subf %404, %406 : vector<8x128xf32>
      %413 = math.exp %412 : vector<8x128xf32>
      %414 = arith.addf %411, %413 : vector<8x128xf32>
      %415 = math.log %414 : vector<8x128xf32>
      %416 = arith.addf %406, %415 : vector<8x128xf32>
      %417 = arith.addf %416, %398 : vector<8x128xf32>
      %418 = vector.broadcast %400 : i32 to vector<8x1xi32>
      %419 = arith.cmpi slt, %418, %31 : vector<8x1xi32>
      %420 = vector.shape_cast %419 : vector<8x1xi1> to vector<8x1xi1>
      %421 = vector.broadcast %420 : vector<8x1xi1> to vector<8x128xi1>
      %422 = arith.select %421, %417, %396 : vector<8x128xi1>, vector<8x128xf32>
      %423 = vector.extract_strided_slice %27 {offsets = [0, 15, 0], sizes = [8, 1, 128], strides = [1, 1, 1]} : vector<8x16x128xf32> to vector<8x1x128xf32>
      %424 = vector.shape_cast %423 : vector<8x1x128xf32> to vector<8x128xf32>
      %c16_i32_67 = arith.constant 16 : i32
      %425 = arith.muli %arg1, %c16_i32_67 : i32
      %c15_i32 = arith.constant 15 : i32
      %426 = arith.addi %425, %c15_i32 : i32
      %c1_i32_68 = arith.constant 1 : i32
      %427 = tpu.dynamic_rotate %422 by %c1_i32_68 dim 1 : vector<8x128xf32>, i32 -> vector<8x128xf32>
      %428 = arith.addf %427, %28 : vector<8x128xf32>
      %c2_i32_69 = arith.constant 2 : i32
      %429 = tpu.dynamic_rotate %422 by %c2_i32_69 dim 1 : vector<8x128xf32>, i32 -> vector<8x128xf32>
      %430 = arith.addf %429, %29 : vector<8x128xf32>
      %431 = arith.maximumf %422, %428 : vector<8x128xf32>
      %432 = arith.maximumf %431, %430 : vector<8x128xf32>
      %433 = arith.subf %422, %432 : vector<8x128xf32>
      %434 = math.exp %433 : vector<8x128xf32>
      %435 = arith.subf %428, %432 : vector<8x128xf32>
      %436 = math.exp %435 : vector<8x128xf32>
      %437 = arith.addf %434, %436 : vector<8x128xf32>
      %438 = arith.subf %430, %432 : vector<8x128xf32>
      %439 = math.exp %438 : vector<8x128xf32>
      %440 = arith.addf %437, %439 : vector<8x128xf32>
      %441 = math.log %440 : vector<8x128xf32>
      %442 = arith.addf %432, %441 : vector<8x128xf32>
      %443 = arith.addf %442, %424 : vector<8x128xf32>
      %444 = vector.broadcast %426 : i32 to vector<8x1xi32>
      %445 = arith.cmpi slt, %444, %31 : vector<8x1xi32>
      %446 = vector.shape_cast %445 : vector<8x1xi1> to vector<8x1xi1>
      %447 = vector.broadcast %446 : vector<8x1xi1> to vector<8x128xi1>
      %448 = arith.select %447, %443, %422 : vector<8x128xi1>, vector<8x128xf32>
      %c0_70 = arith.constant 0 : index
      %c0_71 = arith.constant 0 : index
      %449 = vector.load %arg8[%c0_70, %c0_71] : memref<8x128xf32, #tpu.memory_space<vmem>>, vector<8x128xf32>
      tpu.vector_store %arg8[%c0_70, %c0_71], %448 {strides = array<i32>} : memref<8x128xf32, #tpu.memory_space<vmem>>, vector<8x128xf32>,
    } else {
    }
    %c0_i32_2 = arith.constant 0 : i32
    %10 = arith.cmpi eq, %arg1, %c0_i32_2 : i32
    %11 = arith.extui %10 : i1 to i32
    %c0_i32_3 = arith.constant 0 : i32
    %12 = arith.cmpi ne, %11, %c0_i32_3 : i32
    scf.if %12 {
      %c0 = arith.constant 0 : index
      %c0_4 = arith.constant 0 : index
      %13 = vector.load %arg8[%c0, %c0_4] : memref<8x128xf32, #tpu.memory_space<vmem>>, vector<8x128xf32>
      %c0_5 = arith.constant 0 : index
      %c0_6 = arith.constant 0 : index
      %c0_7 = arith.constant 0 : index
      %14 = vector.load %arg5[%c0_5, %c0_6, %c0_7] : memref<1x8x1xi32, #tpu.memory_space<vmem>>, vector<1x8x1xi32>
      %15 = vector.shape_cast %14 : vector<1x8x1xi32> to vector<8x1xi32>
      %c0_8 = arith.constant 0 : index
      %c0_9 = arith.constant 0 : index
      %c0_10 = arith.constant 0 : index
      %16 = vector.load %arg6[%c0_8, %c0_9, %c0_10] : memref<1x8x1xi32, #tpu.memory_space<vmem>>, vector<1x8x1xi32>
      %17 = vector.shape_cast %16 : vector<1x8x1xi32> to vector<8x1xi32>
      %c2_i32 = arith.constant 2 : i32
      %18 = vector.broadcast %c2_i32 : i32 to vector<8x1xi32>
      %19 = arith.muli %18, %17 : vector<8x1xi32>
      %20 = vector.broadcast %19 : vector<8x1xi32> to vector<8x128xi32>
      %21 = arith.cmpi eq, %0, %20 : vector<8x128xi32>
      %cst = arith.constant -1.000000e+30 : f32
      %22 = vector.broadcast %cst : f32 to vector<8x128xf32>
      %23 = arith.select %21, %13, %22 : vector<8x128xi1>, vector<8x128xf32>
      %cst_11 = arith.constant dense<0xFF800000> : vector<8xf32>
      %24 = vector.multi_reduction <maximumf>, %23, %cst_11 [1] : vector<8x128xf32> to vector<8xf32>
      %25 = vector.shape_cast %24 : vector<8xf32> to vector<8x1xf32>
      %c2_i32_12 = arith.constant 2 : i32
      %26 = vector.broadcast %c2_i32_12 : i32 to vector<8x1xi32>
      %27 = arith.muli %26, %17 : vector<8x1xi32>
      %c1_i32 = arith.constant 1 : i32
      %28 = vector.broadcast %c1_i32 : i32 to vector<8x1xi32>
      %29 = arith.subi %27, %28 : vector<8x1xi32>
      %30 = vector.broadcast %29 : vector<8x1xi32> to vector<8x128xi32>
      %31 = arith.cmpi eq, %0, %30 : vector<8x128xi32>
      %c0_i32_13 = arith.constant 0 : i32
      %32 = vector.broadcast %c0_i32_13 : i32 to vector<8x1xi32>
      %33 = arith.cmpi sgt, %17, %32 : vector<8x1xi32>
      %34 = vector.broadcast %33 : vector<8x1xi1> to vector<8x128xi1>
      %35 = arith.andi %31, %34 : vector<8x128xi1>
      %cst_14 = arith.constant -1.000000e+30 : f32
      %36 = vector.broadcast %cst_14 : f32 to vector<8x128xf32>
      %37 = arith.select %35, %13, %36 : vector<8x128xi1>, vector<8x128xf32>
      %cst_15 = arith.constant dense<0xFF800000> : vector<8xf32>
      %38 = vector.multi_reduction <maximumf>, %37, %cst_15 [1] : vector<8x128xf32> to vector<8xf32>
      %39 = vector.shape_cast %38 : vector<8xf32> to vector<8x1xf32>
      %40 = arith.maximumf %25, %39 : vector<8x1xf32>
      %41 = arith.subf %25, %40 : vector<8x1xf32>
      %42 = math.exp %41 : vector<8x1xf32>
      %43 = arith.subf %39, %40 : vector<8x1xf32>
      %44 = math.exp %43 : vector<8x1xf32>
      %45 = arith.addf %42, %44 : vector<8x1xf32>
      %46 = math.log %45 : vector<8x1xf32>
      %47 = arith.addf %40, %46 : vector<8x1xf32>
      %cst_16 = arith.constant 0.000000e+00 : f32
      %48 = vector.broadcast %cst_16 : f32 to vector<8x1xf32>
      %49 = arith.subf %48, %47 : vector<8x1xf32>
      %c0_i32_17 = arith.constant 0 : i32
      %50 = vector.broadcast %c0_i32_17 : i32 to vector<8x1xi32>
      %51 = arith.cmpi sgt, %15, %50 : vector<8x1xi32>
      %cst_18 = arith.constant 1.000000e+29 : f32
      %52 = vector.broadcast %cst_18 : f32 to vector<8x1xf32>
      %53 = arith.cmpf olt, %49, %52 : vector<8x1xf32>
      %54 = arith.andi %51, %53 : vector<8x1xi1>
      %cst_19 = arith.constant 0.000000e+00 : f32
      %55 = vector.broadcast %cst_19 : f32 to vector<8x1xf32>
      %56 = arith.select %54, %49, %55 : vector<8x1xi1>, vector<8x1xf32>
      %57 = vector.shape_cast %56 : vector<8x1xf32> to vector<8x1xf32>
      %58 = vector.broadcast %57 : vector<8x1xf32> to vector<8x128xf32>
      %c0_20 = arith.constant 0 : index
      %c0_21 = arith.constant 0 : index
      %59 = vector.load %arg7[%c0_20, %c0_21] : memref<8x128xf32, #tpu.memory_space<vmem>>, vector<8x128xf32>
      tpu.vector_store %arg7[%c0_20, %c0_21], %58 {strides = array<i32>} : memref<8x128xf32, #tpu.memory_space<vmem>>, vector<8x128xf32>,
    } else {
    }
    return
  }
  func.func @transform_0(%arg0: i32, %arg1: i32, %arg2: memref<1xi32, #tpu.memory_space<smem>>) -> (i32, i32, i32, i32) {
    %c0_i32 = arith.constant 0 : i32
    %c0_i32_0 = arith.constant 0 : i32
    %c0_i32_1 = arith.constant 0 : i32
    return %arg0, %c0_i32, %arg1, %c0_i32_0 : i32, i32, i32, i32
  }
  func.func @transform_1(%arg0: i32, %arg1: i32, %arg2: memref<1xi32, #tpu.memory_space<smem>>) -> (i32, i32, i32) {
    %c0_i32 = arith.constant 0 : i32
    %c0_i32_0 = arith.constant 0 : i32
    %c0_i32_1 = arith.constant 0 : i32
    return %arg0, %c0_i32, %c0_i32_0 : i32, i32, i32
  }
  func.func @transform_2(%arg0: i32, %arg1: i32, %arg2: memref<1xi32, #tpu.memory_space<smem>>) -> (i32, i32, i32) {
    %c0_i32 = arith.constant 0 : i32
    %c0_i32_0 = arith.constant 0 : i32
    %c0_i32_1 = arith.constant 0 : i32
    return %arg0, %c0_i32, %c0_i32_0 : i32, i32, i32
  }
  func.func @transform_3(%arg0: i32, %arg1: i32, %arg2: memref<1xi32, #tpu.memory_space<smem>>) -> (i32, i32, i32) {
    %c0_i32 = arith.constant 0 : i32
    %c0_i32_0 = arith.constant 0 : i32
    %c0_i32_1 = arith.constant 0 : i32
    return %arg0, %c0_i32, %c0_i32_0 : i32, i32, i32
  }
  func.func @transform_4(%arg0: i32, %arg1: i32, %arg2: memref<1xi32, #tpu.memory_space<smem>>) -> (i32, i32) {
    %c0_i32 = arith.constant 0 : i32
    %c0_i32_0 = arith.constant 0 : i32
    return %arg0, %c0_i32 : i32, i32
  }
}

</mosaic_0001>

<bundles_post_ra>
// kernel: tpu_custom_call.1
= control target key start
LH: loop header
LB: loop body
LE: loop exit
PB: predicated region body
PF: predicated region fallthrough
CT: control target
= control target key end

     0   :  { %11 = vsyncpa [#allocation9], 0  ;;  %s9166_s0 = inlined_call_operand.<no memory space> [shape: s32[1], index: 0, kind: input, shape index: {}]   ;;  %s9167_s1 = inlined_call_operand.hbm [shape: f32[1,8,16,128], index: 1, kind: input, shape index: {}]   ;;  %s9168_s2 = inlined_call_operand.vmem [shape: s32[1,8,128], index: 2, kind: input, shape index: {}]   ;;  %s9169_s3 = inlined_call_operand.vmem [shape: s32[1,8,1], index: 3, kind: input, shape index: {}]   ;;  %s9170_s4 = inlined_call_operand.vmem [shape: s32[1,8,1], index: 4, kind: input, shape index: {}]   ;;  %s9171_s5 = inlined_call_operand.hbm [shape: f32[8,128], index: 5, kind: output, shape index: {}]  }
   0x1   :  { %12 = vsyncpa [#allocation10], 0  ;;  %s17_s20 = sshll.u32 %s9167_s1, 4  ;;  %s5187_s21 = smov [#allocation8]   ;;  %s18_s20 = int_to_ptr.hbm [resolvable:$true] %s17_s20 }
   0x2   :  { %s19_s22 = sshll.u32 %s5187_s21, 4  ;;  %s5188_s23 = smov 128   ;;  %s20_s22 = int_to_ptr.vmem [resolvable:$true] %s19_s22 }
   0x3   :  { %s5189_s24 = smov 8  }
   0x4   :  { %25 = dma.hbm_to_vmem [thread:$0]  %s18_s20, 2048, %s20_s22, [#allocation9], %s5188_s23, %s5188_s23, %s5189_s24  }
   0x5   :  { %5183 = dma.done.wait [#allocation9], 2048  }
   0x6   :  { %5184 = vsyncadd [#allocation9], 4294965248  ;;  %v36_v0 = vlaneseq  ;;  %v9172_v2 = vmov -1e+30   ;;  %v5238_v4 = vld [vmem:[%s9168_s2] sm:$0xff]  ;;  %s5191_s26 = smov 2  }
   0x7   :  { %593 = vrot.lane.b32.xlu0 %v5238_v4, %s5191_s26  ;;  %v63_v12 = vrot.slane %v5238_v4, 1  ;;  %v64_v13 = vrot.slane %v5238_v4, 2  ;;  %v66_v14 = vrot.slane %v5238_v4, 4  ;;  %v67_v15 = vrot.slane %v5238_v4, 5  ;;  %p4880_p0 = scmp.le.s32.totalorder %s9166_s0, 0 }
   0x8   :  { %v5231_v1 = vand.u32 127, %v36_v0  ;;  %v5241_v5 = vshrl.u32 %v36_v0, 7  ;;  %v68_v16 = vrot.slane %v5238_v4, 6  ;;  %v69_v19 = vrot.slane %v5238_v4, 7 }
   0x9   :  { %v5274_v20 = vperm.slane %v5238_v4, 0  ;;  %v5297_v28 = vperm.slane %v63_v12, 0  ;;  %v5299_v29 = vperm.slane %v64_v13, 0  ;;  %v5301_v30 = vperm.slane %v66_v14, 0 }
   0xa   :  { %9294 = vst [vmem:[#allocation14_spill] sm:$0xff] %v5231_v1  ;;  %vm42_vm0 = vcmp.eq.s32.totalorder %v5231_v1, 0  ;;  %v5244_v6 = vadd.s32 8, %v5241_v5  ;;  %v5247_v7 = vadd.s32 16, %v5241_v5  ;;  %v5250_v8 = vadd.s32 24, %v5241_v5 }
   0xb   :  { %v43_v3 = vsel %vm42_vm0, 0.0, %v9172_v2  ;;  %v5253_v9 = vadd.s32 32, %v5241_v5  ;;  %v5256_v10 = vadd.s32 40, %v5241_v5  ;;  %v5259_v11 = vadd.s32 48, %v5241_v5 }
   0xc   :  { %44 = vst [vmem:[#allocation2] sm:$0xff] %v43_v3  ;;  %v5267_v17 = vadd.s32 56, %v5241_v5  ;;  %v5270_v18 = vadd.s32 64, %v5241_v5  ;;  %v5277_v21 = vadd.s32 72, %v5241_v5  ;;  %v5280_v22 = vadd.s32 80, %v5241_v5 }
   0xd   :  { %v5283_v23 = vadd.s32 88, %v5241_v5  ;;  %v5286_v24 = vadd.s32 96, %v5241_v5  ;;  %v5289_v25 = vadd.s32 104, %v5241_v5  ;;  %v5292_v26 = vadd.s32 112, %v5241_v5 }
   0xe   :  { %v5295_v27 = vadd.s32 120, %v5241_v5  ;;  %v5303_v31 = vperm.slane %v67_v15, 0  ;;  %v5305_v32 = vperm.slane %v68_v16, 0  ;;  %v5307_v33 = vperm.slane %v69_v19, 0 }
   0xf   :  { %vm78_vm1 = vcmp.eq.s32.totalorder %v5241_v5, %v5274_v20  ;;  %vm79_vm2 = vcmp.eq.s32.totalorder %v5244_v6, %v5274_v20  ;;  %vm80_vm3 = vcmp.eq.s32.totalorder %v5247_v7, %v5274_v20  ;;  %vm81_vm4 = vcmp.eq.s32.totalorder %v5250_v8, %v5274_v20 }
  0x10   :  { %vm82_vm5 = vcmp.eq.s32.totalorder %v5253_v9, %v5274_v20  ;;  %vm83_vm6 = vcmp.eq.s32.totalorder %v5256_v10, %v5274_v20  ;;  %vm84_vm7 = vcmp.eq.s32.totalorder %v5259_v11, %v5274_v20  ;;  %vm85_vm8 = vcmp.eq.s32.totalorder %v5267_v17, %v5274_v20 }
  0x11   :  { %vm86_vm9 = vcmp.eq.s32.totalorder %v5270_v18, %v5274_v20  ;;  %vm89_vm12 = vcmp.eq.s32.totalorder %v5283_v23, %v5274_v20  ;;  %vm90_vm13 = vcmp.eq.s32.totalorder %v5286_v24, %v5274_v20  ;;  %vm91_vm14 = vcmp.eq.s32.totalorder %v5289_v25, %v5274_v20 }
  0x12   :  { %vm92_vm15 = vcmp.eq.s32.totalorder %v5292_v26, %v5274_v20  ;;  %v5192_v34 = vmov 0.0   ;;  %vm96_vm10 = vcmp.eq.s32.totalorder %v5247_v7, %v5297_v28  ;;  %vm103_vm0 = vcmp.eq.s32.totalorder %v5277_v21, %v5297_v28 }
  0x13   :  { %v4751_v35 = vsel %vm78_vm1, 1.0, %v5192_v34  ;;  %v4752_v36 = vsel %vm79_vm2, 1.0, %v5192_v34  ;;  %v4753_v37 = vsel %vm80_vm3, 1.0, %v5192_v34  ;;  %vm99_vm1 = vcmp.eq.s32.totalorder %v5256_v10, %v5297_v28 }
  0x14   :  { %v4754_v38 = vsel %vm81_vm4, 1.0, %v5192_v34  ;;  %462 = vst [vmem:[#allocation3 + $0x2b0] sm:$0xff] %v4751_v35  ;;  %v4755_v39 = vsel %vm82_vm5, 1.0, %v5192_v34  ;;  %vm107_vm11 = vcmp.eq.s32.totalorder %v5289_v25, %v5297_v28  ;;  %v4756_v40 = vsel %vm83_vm6, 1.0, %v5192_v34 }
  0x15   :  { %463 = vst [vmem:[#allocation3 + $0x3b0] sm:$0xff] %v4752_v36  ;;  %vm111_vm3 = vcmp.eq.s32.totalorder %v5244_v6, %v5299_v29  ;;  %v4757_v41 = vsel %vm84_vm7, 1.0, %v5192_v34  ;;  %vm145_vm2 = vcmp.eq.s32.totalorder %v5250_v8, %v5301_v30  ;;  %v4758_v42 = vsel %vm85_vm8, 1.0, %v5192_v34 }
  0x16   :  { %464 = vst [vmem:[#allocation3 + $0xd8] sm:$0xff] %v4753_v37  ;;  %v4759_v43 = vsel %vm86_vm9, 1.0, %v5192_v34  ;;  %vm9295_vm4 = vcmp.eq.s32.totalorder %v5277_v21, %v5274_v20  ;;  %vm157_vm6 = vcmp.eq.s32.totalorder %v5295_v27, %v5301_v30  ;;  %vm9296_vm5 = vcmp.eq.s32.totalorder %v5280_v22, %v5274_v20 }
  0x17   :  { %465 = vst [vmem:[#allocation3 + $0x18] sm:$0xff] %v4754_v38  ;;  %v4760_v44 = vsel %vm9295_vm4, 1.0, %v5192_v34  ;;  %v4761_v45 = vsel %vm9296_vm5, 1.0, %v5192_v34  ;;  %vm161_vm7 = vcmp.eq.s32.totalorder %v5250_v8, %v5303_v31  ;;  %v4762_v46 = vsel %vm89_vm12, 1.0, %v5192_v34 }
  0x18   :  { %466 = vst [vmem:[#allocation3 + $0x50] sm:$0xff] %v4755_v39  ;;  %vm162_vm5 = vcmp.eq.s32.totalorder %v5253_v9, %v5303_v31  ;;  %v4763_v47 = vsel %vm90_vm13, 1.0, %v5192_v34  ;;  %v4764_v48 = vsel %vm91_vm14, 1.0, %v5192_v34  ;;  %vm166_vm12 = vcmp.eq.s32.totalorder %v5270_v18, %v5303_v31 }
  0x19   :  { %467 = vst [vmem:[#allocation3 + $0x368] sm:$0xff] %v4756_v40  ;;  %v4765_v49 = vsel %vm92_vm15, 1.0, %v5192_v34  ;;  %vm9297_vm13 = vcmp.eq.s32.totalorder %v5295_v27, %v5274_v20  ;;  %vm9298_vm14 = vcmp.eq.s32.totalorder %v5241_v5, %v5297_v28  ;;  %vm9299_vm8 = vcmp.eq.s32.totalorder %v5244_v6, %v5297_v28 }
  0x1a   :  { %468 = vst [vmem:[#allocation3 + $0x330] sm:$0xff] %v4757_v41  ;;  %v4766_v50 = vsel %vm9297_vm13, 1.0, %v5192_v34  ;;  %v4767_v51 = vsel %vm9298_vm14, 1.0, %v5192_v34  ;;  %v5505_v52 = vsel %vm9299_vm8, 1.0, %v5192_v34  ;;  %vm170_vm15 = vcmp.eq.s32.totalorder %v5286_v24, %v5303_v31 }
  0x1b   :  { %469 = vst [vmem:[#allocation3 + $0x48] sm:$0xff] %v4758_v42  ;;  %vm171_vm4 = vcmp.eq.s32.totalorder %v5289_v25, %v5303_v31  ;;  %v5519_v53 = vsel %vm96_vm10, 1.0, %v5192_v34  ;;  %vm9300_vm8 = vcmp.eq.s32.totalorder %v5250_v8, %v5297_v28  ;;  %vm9301_vm14 = vcmp.eq.s32.totalorder %v5253_v9, %v5297_v28 }
  0x1c   :  { %470 = vst [vmem:[#allocation3 + $0x380] sm:$0xff] %v4759_v43  ;;  %v5525_v54 = vsel %vm9300_vm8, 1.0, %v5192_v34  ;;  %v5531_v55 = vsel %vm9301_vm14, 1.0, %v5192_v34  ;;  %v5537_v56 = vsel %vm99_vm1, 1.0, %v5192_v34  ;;  %vm174_vm10 = vcmp.eq.s32.totalorder %v5241_v5, %v5305_v32 }
  0x1d   :  { %471 = vst [vmem:[#allocation3 + $0x110] sm:$0xff] %v4760_v44  ;;  %vm9302_vm13 = vcmp.eq.s32.totalorder %v5259_v11, %v5297_v28  ;;  %vm9303_vm1 = vcmp.eq.s32.totalorder %v5267_v17, %v5297_v28  ;;  %vm9304_vm8 = vcmp.eq.s32.totalorder %v5270_v18, %v5297_v28  ;;  %v5569_v60 = vsel %vm103_vm0, 1.0, %v5192_v34 }
  0x1e   :  { %472 = vst [vmem:[#allocation3 + $0x118] sm:$0xff] %v4761_v45  ;;  %v5551_v57 = vsel %vm9302_vm13, 1.0, %v5192_v34  ;;  %v5557_v58 = vsel %vm9303_vm1, 1.0, %v5192_v34  ;;  %v5563_v59 = vsel %vm9304_vm8, 1.0, %v5192_v34  ;;  %vm178_vm13 = vcmp.eq.s32.totalorder %v5253_v9, %v5305_v32 }
  0x1f   :  { %473 = vst [vmem:[#allocation3 + $0x98] sm:$0xff] %v4762_v46  ;;  %vm9305_vm9 = vcmp.eq.s32.totalorder %v5280_v22, %v5297_v28  ;;  %vm9306_vm0 = vcmp.eq.s32.totalorder %v5283_v23, %v5297_v28  ;;  %vm9307_vm1 = vcmp.eq.s32.totalorder %v5286_v24, %v5297_v28  ;;  %v5601_v0 = vsel %vm107_vm11, 1.0, %v5192_v34 }
  0x20   :  { %474 = vst [vmem:[#allocation3 + $0x320] sm:$0xff] %v4763_v47  ;;  %v5583_v61 = vsel %vm9305_vm9, 1.0, %v5192_v34  ;;  %v5589_v62 = vsel %vm9306_vm0, 1.0, %v5192_v34  ;;  %v5595_v63 = vsel %vm9307_vm1, 1.0, %v5192_v34  ;;  %vm182_vm9 = vcmp.eq.s32.totalorder %v5270_v18, %v5305_v32 }
  0x21   :  { %475 = vst [vmem:[#allocation3 + $0x150] sm:$0xff] %v4764_v48  ;;  %vm9308_vm14 = vcmp.eq.s32.totalorder %v5292_v26, %v5297_v28  ;;  %vm9309_vm11 = vcmp.eq.s32.totalorder %v5295_v27, %v5297_v28  ;;  %vm9310_vm0 = vcmp.eq.s32.totalorder %v5241_v5, %v5299_v29  ;;  %v5633_v14 = vsel %vm111_vm3, 1.0, %v5192_v34 }
  0x22   :  { %v5615_v3 = vsel %vm9308_vm14, 1.0, %v5192_v34  ;;  %v5621_v12 = vsel %vm9309_vm11, 1.0, %v5192_v34  ;;  %v5627_v13 = vsel %vm9310_vm0, 1.0, %v5192_v34  ;;  %476 = vst [vmem:[#allocation3 + $0x108] sm:$0xff] %v4765_v49  ;;  %vm186_vm14 = vcmp.eq.s32.totalorder %v5286_v24, %v5305_v32 }
  0x23   :  { %vm9311_vm8 = vcmp.eq.s32.totalorder %v5241_v5, %v5301_v30  ;;  %vm9312_vm3 = vcmp.eq.s32.totalorder %v5244_v6, %v5301_v30  ;;  %vm9313_vm11 = vcmp.eq.s32.totalorder %v5247_v7, %v5301_v30  ;;  %v5665_v20 = vsel %vm145_vm2, 1.0, %v5192_v34  ;;  %477 = vst [vmem:[#allocation3 + $0x60] sm:$0xff] %v4766_v50 }
  0x24   :  { %v5647_v15 = vsel %vm9311_vm8, 1.0, %v5192_v34  ;;  %v5653_v16 = vsel %vm9312_vm3, 1.0, %v5192_v34  ;;  %v5659_v19 = vsel %vm9313_vm11, 1.0, %v5192_v34  ;;  %vm9314_vm1 = vcmp.eq.s32.totalorder %v5253_v9, %v5301_v30  ;;  %478 = vst [vmem:[#allocation3 + $0x2e0] sm:$0xff] %v4767_v51 }
  0x25   :  { %v5679_v28 = vsel %vm9314_vm1, 1.0, %v5192_v34  ;;  %vm9315_vm2 = vcmp.eq.s32.totalorder %v5256_v10, %v5301_v30  ;;  %vm9316_vm3 = vcmp.eq.s32.totalorder %v5259_v11, %v5301_v30  ;;  %vm9317_vm11 = vcmp.eq.s32.totalorder %v5267_v17, %v5301_v30  ;;  %479 = vst [vmem:[#allocation3 + $0x388] sm:$0xff] %v5505_v52 }
  0x26   :  { %v5685_v35 = vsel %vm9315_vm2, 1.0, %v5192_v34  ;;  %v5691_v36 = vsel %vm9316_vm3, 1.0, %v5192_v34  ;;  %v5697_v37 = vsel %vm9317_vm11, 1.0, %v5192_v34  ;;  %vm9318_vm8 = vcmp.eq.s32.totalorder %v5270_v18, %v5301_v30  ;;  %480 = vst [vmem:[#allocation3 + $0x338] sm:$0xff] %v5519_v53 }
  0x27   :  { %v5711_v38 = vsel %vm9318_vm8, 1.0, %v5192_v34  ;;  %vm9319_vm11 = vcmp.eq.s32.totalorder %v5277_v21, %v5301_v30  ;;  %vm9320_vm2 = vcmp.eq.s32.totalorder %v5280_v22, %v5301_v30  ;;  %vm9321_vm3 = vcmp.eq.s32.totalorder %v5283_v23, %v5301_v30  ;;  %481 = vst [vmem:[#allocation3 + $0x340] sm:$0xff] %v5525_v54 }
  0x28   :  { %v5717_v39 = vsel %vm9319_vm11, 1.0, %v5192_v34  ;;  %v5723_v40 = vsel %vm9320_vm2, 1.0, %v5192_v34  ;;  %v5729_v41 = vsel %vm9321_vm3, 1.0, %v5192_v34  ;;  %vm198_vm8 = vcmp.eq.s32.totalorder %v5270_v18, %v5307_v33  ;;  %482 = vst [vmem:[#allocation3 + $0x80] sm:$0xff] %v5531_v55 }
  0x29   :  { %vm9322_vm1 = vcmp.eq.s32.totalorder %v5286_v24, %v5301_v30  ;;  %vm9323_vm3 = vcmp.eq.s32.totalorder %v5289_v25, %v5301_v30  ;;  %vm9324_vm11 = vcmp.eq.s32.totalorder %v5292_v26, %v5301_v30  ;;  %v5762_v45 = vsel %vm157_vm6, 1.0, %v5192_v34  ;;  %483 = vst [vmem:[#allocation3 + $0x1a8] sm:$0xff] %v5537_v56 }
  0x2a   :  { %v5744_v42 = vsel %vm9322_vm1, 1.0, %v5192_v34  ;;  %v5750_v43 = vsel %vm9323_vm3, 1.0, %v5192_v34  ;;  %v5756_v44 = vsel %vm9324_vm11, 1.0, %v5192_v34  ;;  %vm202_vm1 = vcmp.eq.s32.totalorder %v5286_v24, %v5307_v33  ;;  %484 = vst [vmem:[#allocation3 + $0x1b8] sm:$0xff] %v5551_v57 }
  0x2b   :  { %vm204_vm2 = vcmp.eq.s32.totalorder %v5292_v26, %v5307_v33  ;;  %vm205_vm11 = vcmp.eq.s32.totalorder %v5295_v27, %v5307_v33  ;;  %vm9325_vm0 = vcmp.eq.s32.totalorder %v5241_v5, %v5303_v31  ;;  %vm9326_vm6 = vcmp.eq.s32.totalorder %v5244_v6, %v5303_v31  ;;  %485 = vst [vmem:[#allocation3 + $0x168] sm:$0xff] %v5557_v58 }
  0x2c   :  { %v5777_v30 = vsel %vm9325_vm0, 1.0, %v5192_v34  ;;  %v5783_v46 = vsel %vm9326_vm6, 1.0, %v5192_v34  ;;  %vm9327_vm3 = vcmp.eq.s32.totalorder %v5247_v7, %v5303_v31  ;;  %v5795_v48 = vsel %vm161_vm7, 1.0, %v5192_v34  ;;  %486 = vst [vmem:[#allocation3 + $0x3e8] sm:$0xff] %v5563_v59 }
  0x2d   :  { %v5789_v47 = vsel %vm9327_vm3, 1.0, %v5192_v34  ;;  %vm112_vm0 = vcmp.eq.s32.totalorder %v5247_v7, %v5299_v29  ;;  %v5804_v49 = vsel %vm162_vm5, 1.0, %v5192_v34  ;;  %vm9328_vm3 = vcmp.eq.s32.totalorder %v5256_v10, %v5303_v31  ;;  %487 = vst [vmem:[#allocation3 + $0x2f8] sm:$0xff] %v5569_v60 }
  0x2e   :  { %v5810_v50 = vsel %vm9328_vm3, 1.0, %v5192_v34  ;;  %vm9329_vm7 = vcmp.eq.s32.totalorder %v5259_v11, %v5303_v31  ;;  %vm9330_vm6 = vcmp.eq.s32.totalorder %v5267_v17, %v5303_v31  ;;  %vm113_vm5 = vcmp.eq.s32.totalorder %v5250_v8, %v5299_v29  ;;  %488 = vst [vmem:[#allocation3 + $0x290] sm:$0xff] %v5583_v61 }
  0x2f   :  { %v5816_v51 = vsel %vm9329_vm7, 1.0, %v5192_v34  ;;  %v5822_v52 = vsel %vm9330_vm6, 1.0, %v5192_v34  ;;  %v5831_v53 = vsel %vm166_vm12, 1.0, %v5192_v34  ;;  %vm9331_vm3 = vcmp.eq.s32.totalorder %v5277_v21, %v5303_v31  ;;  %489 = vst [vmem:[#allocation3 + $0x28] sm:$0xff] %v5589_v62 }
  0x30   :  { %v5837_v54 = vsel %vm9331_vm3, 1.0, %v5192_v34  ;;  %vm9332_vm7 = vcmp.eq.s32.totalorder %v5280_v22, %v5303_v31  ;;  %vm9334_vm6 = vcmp.eq.s32.totalorder %v5283_v23, %v5303_v31  ;;  %vm114_vm12 = vcmp.eq.s32.totalorder %v5253_v9, %v5299_v29  ;;  %490 = vst [vmem:[#allocation3 + $0x138] sm:$0xff] %v5595_v63 }
  0x31   :  { %v5843_v55 = vsel %vm9332_vm7, 1.0, %v5192_v34  ;;  %v5849_v2 = vsel %vm9334_vm6, 1.0, %v5192_v34  ;;  %v5858_v1 = vsel %vm170_vm15, 1.0, %v5192_v34  ;;  %vm9338_vm3 = vcmp.eq.s32.totalorder %v5292_v26, %v5303_v31  ;;  %491 = vst [vmem:[#allocation3 + $0xc0] sm:$0xff] %v5601_v0 }
  0x32   :  { %9333 = vst [vmem:[#allocation15_spill] sm:$0xff] %v5843_v55  ;;  %v5864_v55 = vsel %vm171_vm4, 1.0, %v5192_v34  ;;  %v5870_v56 = vsel %vm9338_vm3, 1.0, %v5192_v34  ;;  %vm9339_vm7 = vcmp.eq.s32.totalorder %v5295_v27, %v5303_v31  ;;  %vm9341_vm4 = vcmp.eq.s32.totalorder %v5244_v6, %v5305_v32 }
  0x33   :  { %9335 = vst [vmem:[#allocation16_spill] sm:$0xff] %v5849_v2  ;;  %v5876_v2 = vsel %vm9339_vm7, 1.0, %v5192_v34  ;;  %vm9343_vm15 = vcmp.eq.s32.totalorder %v5247_v7, %v5305_v32  ;;  %vm9345_vm6 = vcmp.eq.s32.totalorder %v5250_v8, %v5305_v32  ;;  %vm9349_vm3 = vcmp.eq.s32.totalorder %v5259_v11, %v5305_v32 }
  0x34   :  { %9336 = vst [vmem:[#allocation17_spill] sm:$0xff] %v5858_v1  ;;  %v5883_v1 = vsel %vm174_vm10, 1.0, %v5192_v34  ;;  %v5895_v31 = vsel %vm9343_vm15, 1.0, %v5192_v34  ;;  %v5901_v57 = vsel %vm9345_vm6, 1.0, %v5192_v34  ;;  %vm9347_vm10 = vcmp.eq.s32.totalorder %v5256_v10, %v5305_v32 }
  0x35   :  { %9337 = vst [vmem:[#allocation18_spill] sm:$0xff] %v5864_v55  ;;  %v5889_v55 = vsel %vm9341_vm4, 1.0, %v5192_v34  ;;  %vm9351_vm7 = vcmp.eq.s32.totalorder %v5267_v17, %v5305_v32  ;;  %vm9355_vm4 = vcmp.eq.s32.totalorder %v5280_v22, %v5305_v32  ;;  %vm9357_vm15 = vcmp.eq.s32.totalorder %v5283_v23, %v5305_v32 }
  0x36   :  { %9340 = vst [vmem:[#allocation19_spill] sm:$0xff] %v5883_v1  ;;  %v5908_v1 = vsel %vm178_vm13, 1.0, %v5192_v34  ;;  %v5926_v58 = vsel %vm9351_vm7, 1.0, %v5192_v34  ;;  %vm9353_vm13 = vcmp.eq.s32.totalorder %v5277_v21, %v5305_v32  ;;  %v5951_v59 = vsel %vm9357_vm15, 1.0, %v5192_v34 }
  0x37   :  { %9342 = vst [vmem:[#allocation20_spill] sm:$0xff] %v5889_v55  ;;  %v5914_v55 = vsel %vm9347_vm10, 1.0, %v5192_v34  ;;  %vm9361_vm6 = vcmp.eq.s32.totalorder %v5292_v26, %v5305_v32  ;;  %vm9362_vm10 = vcmp.eq.s32.totalorder %v5295_v27, %v5305_v32  ;;  %vm9367_vm7 = vcmp.eq.s32.totalorder %v5247_v7, %v5307_v33 }
  0x38   :  { %9344 = vst [vmem:[#allocation21_spill] sm:$0xff] %v5895_v31  ;;  %v5920_v31 = vsel %vm9349_vm3, 1.0, %v5192_v34  ;;  %v5976_v60 = vsel %vm9362_vm10, 1.0, %v5192_v34  ;;  %vm9365_vm3 = vcmp.eq.s32.totalorder %v5244_v6, %v5307_v33  ;;  %vm9372_vm15 = vcmp.eq.s32.totalorder %v5256_v10, %v5307_v33 }
  0x39   :  { %9346 = vst [vmem:[#allocation22_spill] sm:$0xff] %v5908_v1  ;;  %v5933_v1 = vsel %vm182_vm9, 1.0, %v5192_v34  ;;  %vm9359_vm9 = vcmp.eq.s32.totalorder %v5289_v25, %v5305_v32  ;;  %v5995_v32 = vsel %vm9367_vm7, 1.0, %v5192_v34  ;;  %vm9378_vm10 = vcmp.eq.s32.totalorder %v5277_v21, %v5307_v33 }
  0x3a   :  { %9348 = vst [vmem:[#allocation23_spill] sm:$0xff] %v5914_v55  ;;  %v5939_v55 = vsel %vm9353_vm13, 1.0, %v5192_v34  ;;  %vm9369_vm13 = vcmp.eq.s32.totalorder %v5250_v8, %v5307_v33  ;;  %v6076_v0 = vsel %vm205_vm11, 1.0, %v5192_v34  ;;  %vm117_vm11 = vcmp.eq.s32.totalorder %v5267_v17, %v5299_v29 }
  0x3b   :  { %9350 = vst [vmem:[#allocation24_spill] sm:$0xff] %v5920_v31  ;;  %v5945_v31 = vsel %vm9355_vm4, 1.0, %v5192_v34  ;;  %v6001_v61 = vsel %vm9369_vm13, 1.0, %v5192_v34  ;;  %vm9370_vm4 = vcmp.eq.s32.totalorder %v5253_v9, %v5307_v33  ;;  %vm120_vm7 = vcmp.eq.s32.totalorder %v5280_v22, %v5299_v29 }
  0x3c   :  { %9352 = vst [vmem:[#allocation25_spill] sm:$0xff] %v5933_v1  ;;  %v5958_v1 = vsel %vm186_vm14, 1.0, %v5192_v34  ;;  %vm9363_vm14 = vcmp.eq.s32.totalorder %v5241_v5, %v5307_v33  ;;  %vm122_vm13 = vcmp.eq.s32.totalorder %v5286_v24, %v5299_v29 }
  0x3d   :  { %9354 = vst [vmem:[#allocation26_spill] sm:$0xff] %v5939_v55  ;;  %v5964_v55 = vsel %vm9359_vm9, 1.0, %v5192_v34  ;;  %vm9374_vm9 = vcmp.eq.s32.totalorder %v5259_v11, %v5307_v33 }
  0x3e   :  { %9356 = vst [vmem:[#allocation27_spill] sm:$0xff] %v5945_v31  ;;  %v5970_v31 = vsel %vm9361_vm6, 1.0, %v5192_v34  ;;  %vm9376_vm6 = vcmp.eq.s32.totalorder %v5267_v17, %v5307_v33 }
  0x3f   :  { %9358 = vst [vmem:[#allocation28_spill] sm:$0xff] %v5958_v1  ;;  %v5983_v1 = vsel %vm9363_vm14, 1.0, %v5192_v34  ;;  %v6026_v62 = vsel %vm9376_vm6, 1.0, %v5192_v34  ;;  %vm9380_vm14 = vcmp.eq.s32.totalorder %v5280_v22, %v5307_v33 }
  0x40   :  { %9360 = vst [vmem:[#allocation29_spill] sm:$0xff] %v5964_v55  ;;  %v5989_v55 = vsel %vm9365_vm3, 1.0, %v5192_v34  ;;  %vm9382_vm3 = vcmp.eq.s32.totalorder %v5283_v23, %v5307_v33 }
  0x41   :  { %9364 = vst [vmem:[#allocation30_spill] sm:$0xff] %v5983_v1  ;;  %v6008_v1 = vsel %vm9370_vm4, 1.0, %v5192_v34  ;;  %v6051_v63 = vsel %vm9382_vm3, 1.0, %v5192_v34  ;;  %vm123_vm4 = vcmp.eq.s32.totalorder %v5289_v25, %v5299_v29 }
  0x42   :  { %9366 = vst [vmem:[#allocation31_spill] sm:$0xff] %v5989_v55  ;;  %v6014_v55 = vsel %vm9372_vm15, 1.0, %v5192_v34  ;;  %vm124_vm15 = vcmp.eq.s32.totalorder %v5292_v26, %v5299_v29 }
  0x43   :  { %9368 = vst [vmem:[#allocation32_spill] sm:$0xff] %v5995_v32  ;;  %v6020_v32 = vsel %vm9374_vm9, 1.0, %v5192_v34  ;;  %vm125_vm9 = vcmp.eq.s32.totalorder %v5295_v27, %v5299_v29 }
  0x44   :  { %9371 = vst [vmem:[#allocation33_spill] sm:$0xff] %v6008_v1  ;;  %v6033_v1 = vsel %vm198_vm8, 1.0, %v5192_v34  ;;  %vm9384_vm8 = vcmp.eq.s32.totalorder %v5289_v25, %v5307_v33  ;;  %v4786_v33 = vsel %vm113_vm5, 1.0, %v5192_v34  ;;  %vm119_vm5 = vcmp.eq.s32.totalorder %v5277_v21, %v5299_v29 }
  0x45   :  { %9373 = vst [vmem:[#allocation34_spill] sm:$0xff] %v6014_v55  ;;  %v6039_v55 = vsel %vm9378_vm10, 1.0, %v5192_v34 }
  0x46   :  { %9375 = vst [vmem:[#allocation35_spill] sm:$0xff] %v6020_v32  ;;  %v6045_v32 = vsel %vm9380_vm14, 1.0, %v5192_v34 }
  0x47   :  { %9377 = vst [vmem:[#allocation36_spill] sm:$0xff] %v6033_v1  ;;  %v6058_v1 = vsel %vm202_vm1, 1.0, %v5192_v34  ;;  %vm115_vm1 = vcmp.eq.s32.totalorder %v5256_v10, %v5299_v29 }
  0x48   :  { %9379 = vst [vmem:[#allocation37_spill] sm:$0xff] %v6039_v55  ;;  %v6064_v55 = vsel %vm9384_vm8, 1.0, %v5192_v34 }
  0x49   :  { %9381 = vst [vmem:[#allocation38_spill] sm:$0xff] %v6045_v32  ;;  %v6070_v32 = vsel %vm204_vm2, 1.0, %v5192_v34  ;;  %vm116_vm2 = vcmp.eq.s32.totalorder %v5259_v11, %v5299_v29 }
  0x4a   :  { %9383 = vst [vmem:[#allocation39_spill] sm:$0xff] %v6058_v1 }
  0x4b   :  { %9385 = vst [vmem:[#allocation40_spill] sm:$0xff] %v6064_v55  ;;  %v4785_v55 = vsel %vm112_vm0, 1.0, %v5192_v34  ;;  %vm118_vm0 = vcmp.eq.s32.totalorder %v5270_v18, %v5299_v29 }
  0x4c   :  { %9386 = vst [vmem:[#allocation41_spill] sm:$0xff] %v6070_v32  ;;  %v4790_v32 = vsel %vm117_vm11, 1.0, %v5192_v34 }
  0x4d   :  { %9387 = vst [vmem:[#allocation42_spill] sm:$0xff] %v6076_v0  ;;  %v4788_v0 = vsel %vm115_vm1, 1.0, %v5192_v34 }
  0x4e   :  { %492 = vst [vmem:[#allocation3 + $0x1c0] sm:$0xff] %v5615_v3  ;;  %v4787_v3 = vsel %vm114_vm12, 1.0, %v5192_v34  ;;  %vm121_vm12 = vcmp.eq.s32.totalorder %v5283_v23, %v5299_v29  ;;  %v4798_v29 = vsel %vm125_vm9, 1.0, %v5192_v34 }
  0x4f   :  { %493 = vst [vmem:[#allocation3 + $0x280] sm:$0xff] %v5621_v12  ;;  %v65_v12 = vrot.slane %v5238_v4, 3 }
  0x50   :  { %494 = vst [vmem:[#allocation3 + $0x100] sm:$0xff] %v5627_v13  ;;  %v4789_v13 = vsel %vm116_vm2, 1.0, %v5192_v34 }
  0x51   :  { %495 = vst [vmem:[#allocation3 + $0x3c0] sm:$0xff] %v5633_v14  ;;  %v4791_v14 = vsel %vm118_vm0, 1.0, %v5192_v34  ;;  %v6113_v1 = vperm.slane %v65_v12, 0  ;;  %v4796_v12 = vsel %vm123_vm4, 1.0, %v5192_v34 }
  0x52   :  { %496 = vst [vmem:[#allocation3 + $0x158] sm:$0xff] %v4785_v55  ;;  %v4792_v55 = vsel %vm119_vm5, 1.0, %v5192_v34 }
  0x53   :  { %497 = vst [vmem:[#allocation3 + $0x3e0] sm:$0xff] %v4786_v33  ;;  %v4793_v33 = vsel %vm120_vm7, 1.0, %v5192_v34  ;;  %vm126_vm6 = vcmp.eq.s32.totalorder %v5241_v5, %v6113_v1  ;;  %vm127_vm10 = vcmp.eq.s32.totalorder %v5244_v6, %v6113_v1  ;;  %vm128_vm14 = vcmp.eq.s32.totalorder %v5247_v7, %v6113_v1 }
  0x54   :  { %498 = vst [vmem:[#allocation3 + $0x218] sm:$0xff] %v4787_v3  ;;  %v4794_v3 = vsel %vm121_vm12, 1.0, %v5192_v34  ;;  %vm129_vm3 = vcmp.eq.s32.totalorder %v5250_v8, %v6113_v1  ;;  %v4799_v5 = vsel %vm126_vm6, 1.0, %v5192_v34  ;;  %vm130_vm8 = vcmp.eq.s32.totalorder %v5253_v9, %v6113_v1 }
  0x55   :  { %499 = vst [vmem:[#allocation3 + $0x3f8] sm:$0xff] %v4788_v0  ;;  %v4795_v0 = vsel %vm122_vm13, 1.0, %v5192_v34  ;;  %v4800_v6 = vsel %vm127_vm10, 1.0, %v5192_v34  ;;  %vm131_vm1 = vcmp.eq.s32.totalorder %v5256_v10, %v6113_v1  ;;  %v4801_v7 = vsel %vm128_vm14, 1.0, %v5192_v34 }
  0x56   :  { %500 = vst [vmem:[#allocation3 + $0x8] sm:$0xff] %v4789_v13  ;;  %vm132_vm2 = vcmp.eq.s32.totalorder %v5259_v11, %v6113_v1  ;;  %v4802_v8 = vsel %vm129_vm3, 1.0, %v5192_v34  ;;  %vm133_vm11 = vcmp.eq.s32.totalorder %v5267_v17, %v6113_v1  ;;  %v4803_v9 = vsel %vm130_vm8, 1.0, %v5192_v34 }
  0x57   :  { %501 = vst [vmem:[#allocation3 + $0x128] sm:$0xff] %v4790_v32  ;;  %v4797_v32 = vsel %vm124_vm15, 1.0, %v5192_v34  ;;  %vm134_vm0 = vcmp.eq.s32.totalorder %v5270_v18, %v6113_v1  ;;  %v4804_v10 = vsel %vm131_vm1, 1.0, %v5192_v34  ;;  %vm135_vm5 = vcmp.eq.s32.totalorder %v5277_v21, %v6113_v1 }
  0x58   :  { %502 = vst [vmem:[#allocation3 + $0x2a0] sm:$0xff] %v4791_v14  ;;  %v4805_v11 = vsel %vm132_vm2, 1.0, %v5192_v34  ;;  %vm136_vm7 = vcmp.eq.s32.totalorder %v5280_v22, %v6113_v1  ;;  %v4806_v17 = vsel %vm133_vm11, 1.0, %v5192_v34  ;;  %vm137_vm12 = vcmp.eq.s32.totalorder %v5283_v23, %v6113_v1 }
  0x59   :  { %503 = vst [vmem:[#allocation3 + $0x3f0] sm:$0xff] %v4792_v55  ;;  %v4807_v18 = vsel %vm134_vm0, 1.0, %v5192_v34  ;;  %vm138_vm13 = vcmp.eq.s32.totalorder %v5286_v24, %v6113_v1  ;;  %v4808_v21 = vsel %vm135_vm5, 1.0, %v5192_v34  ;;  %vm139_vm4 = vcmp.eq.s32.totalorder %v5289_v25, %v6113_v1 }
  0x5a   :  { %504 = vst [vmem:[#allocation3 + $0xa0] sm:$0xff] %v4793_v33  ;;  %v4809_v22 = vsel %vm136_vm7, 1.0, %v5192_v34  ;;  %vm140_vm15 = vcmp.eq.s32.totalorder %v5292_v26, %v6113_v1  ;;  %v4810_v23 = vsel %vm137_vm12, 1.0, %v5192_v34  ;;  %vm141_vm9 = vcmp.eq.s32.totalorder %v5295_v27, %v6113_v1  ;;  %v9388_v1 = vld [vmem:[#allocation15_spill] sm:$0xff]  ;;  %v9389_v26 = vld [vmem:[#allocation16_spill] sm:$0xff]  ;;  %v9390_v27 = vld [vmem:[#allocation17_spill] sm:$0xff] }
  0x5b   :  { %505 = vst [vmem:[#allocation3 + $0x2c0] sm:$0xff] %v4794_v3  ;;  %v4811_v24 = vsel %vm138_vm13, 1.0, %v5192_v34  ;;  %v4812_v13 = vsel %vm139_vm4, 1.0, %v5192_v34  ;;  %v4813_v25 = vsel %vm140_vm15, 1.0, %v5192_v34  ;;  %v4814_v14 = vsel %vm141_vm9, 1.0, %v5192_v34  ;;  %v9391_v34 = vld [vmem:[#allocation18_spill] sm:$0xff] }
  0x5c   :  { %506 = vst [vmem:[#allocation3 + $0xb0] sm:$0xff] %v4795_v0  ;;  %vm596_vm10 = vcmp.ne.s32.totalorder %v5238_v4, 0 }
  0x5d   :  { %507 = vst [vmem:[#allocation3 + $0x1e0] sm:$0xff] %v4796_v12 }
  0x5e   :  { %508 = vst [vmem:[#allocation3 + $0x1f0] sm:$0xff] %v4797_v32 }
  0x5f   :  { %509 = vst [vmem:[#allocation3 + $0x10] sm:$0xff] %v4798_v29 }
  0x60   :  { %510 = vst [vmem:[#allocation3 + $0x230] sm:$0xff] %v4799_v5 }
  0x61   :  { %511 = vst [vmem:[#allocation3 + $0x240] sm:$0xff] %v4800_v6 }
  0x62   :  { %512 = vst [vmem:[#allocation3 + $0x90] sm:$0xff] %v4801_v7 }
  0x63   :  { %513 = vst [vmem:[#allocation3 + $0x3a0] sm:$0xff] %v4802_v8 }
  0x64   :  { %514 = vst [vmem:[#allocation3 + $0x208] sm:$0xff] %v4803_v9 }
  0x65   :  { %515 = vst [vmem:[#allocation3 + $0xd0] sm:$0xff] %v4804_v10 }
  0x66   :  { %516 = vst [vmem:[#allocation3 + $0x88] sm:$0xff] %v4805_v11 }
  0x67   :  { %517 = vst [vmem:[#allocation3 + $0x2f0] sm:$0xff] %v4806_v17 }
  0x68   :  { %518 = vst [vmem:[#allocation3 + $0x358] sm:$0xff] %v4807_v18 }
  0x69   :  { %519 = vst [vmem:[#allocation3 + $0x268] sm:$0xff] %v4808_v21 }
  0x6a   :  { %520 = vst [vmem:[#allocation3 + $0x350] sm:$0xff] %v4809_v22 }
  0x6b   :  { %521 = vst [vmem:[#allocation3 + $0x188] sm:$0xff] %v4810_v23 }
  0x6c   :  { %522 = vst [vmem:[#allocation3 + $0x1d8] sm:$0xff] %v4811_v24 }
  0x6d   :  { %523 = vst [vmem:[#allocation3 + $0x30] sm:$0xff] %v4812_v13 }
  0x6e   :  { %524 = vst [vmem:[#allocation3 + $0x140] sm:$0xff] %v4813_v25 }
  0x6f   :  { %525 = vst [vmem:[#allocation3 + $0x2a8] sm:$0xff] %v4814_v14 }
  0x70   :  { %526 = vst [vmem:[#allocation3 + $0x130] sm:$0xff] %v5647_v15  ;;  %v9392_v15 = vld [vmem:[#allocation19_spill] sm:$0xff] }
  0x71   :  { %527 = vst [vmem:[#allocation3 + $0x200] sm:$0xff] %v5653_v16  ;;  %v9393_v16 = vld [vmem:[#allocation20_spill] sm:$0xff] }
  0x72   :  { %528 = vst [vmem:[#allocation3 + $0x318] sm:$0xff] %v5659_v19  ;;  %v9394_v19 = vld [vmem:[#allocation21_spill] sm:$0xff] }
  0x73   :  { %529 = vst [vmem:[#allocation3 + $0x220] sm:$0xff] %v5665_v20  ;;  %v9395_v20 = vld [vmem:[#allocation22_spill] sm:$0xff] }
  0x74   :  { %530 = vst [vmem:[#allocation3 + $0x70] sm:$0xff] %v5679_v28  ;;  %v9396_v28 = vld [vmem:[#allocation23_spill] sm:$0xff] }
  0x75   :  { %531 = vst [vmem:[#allocation3 + $0x300] sm:$0xff] %v5685_v35  ;;  %v9397_v35 = vld [vmem:[#allocation24_spill] sm:$0xff] }
  0x76   :  { %532 = vst [vmem:[#allocation3 + $0xe0] sm:$0xff] %v5691_v36  ;;  %v9398_v36 = vld [vmem:[#allocation25_spill] sm:$0xff] }
  0x77   :  { %533 = vst [vmem:[#allocation3 + $0x178] sm:$0xff] %v5697_v37  ;;  %v9399_v37 = vld [vmem:[#allocation26_spill] sm:$0xff] }
  0x78   :  { %534 = vst [vmem:[#allocation3 + $0x328] sm:$0xff] %v5711_v38  ;;  %v9401_v38 = vld [vmem:[#allocation28_spill] sm:$0xff] }
  0x79   :  { %535 = vst [vmem:[#allocation3 + $0x260] sm:$0xff] %v5717_v39  ;;  %v9402_v39 = vld [vmem:[#allocation29_spill] sm:$0xff] }
  0x7a   :  { %536 = vst [vmem:[#allocation3 + $0x3b8] sm:$0xff] %v5723_v40  ;;  %v9403_v40 = vld [vmem:[#allocation30_spill] sm:$0xff] }
  0x7b   :  { %537 = vst [vmem:[#allocation3 + $0x2b8] sm:$0xff] %v5729_v41  ;;  %v9404_v41 = vld [vmem:[#allocation31_spill] sm:$0xff] }
  0x7c   :  { %538 = vst [vmem:[#allocation3 + $0x248] sm:$0xff] %v5744_v42  ;;  %v9405_v42 = vld [vmem:[#allocation32_spill] sm:$0xff] }
  0x7d   :  { %539 = vst [vmem:[#allocation3 + $0x40] sm:$0xff] %v5750_v43  ;;  %v9406_v43 = vld [vmem:[#allocation33_spill] sm:$0xff] }
  0x7e   :  { %540 = vst [vmem:[#allocation3 + $0x20] sm:$0xff] %v5756_v44  ;;  %v9407_v44 = vld [vmem:[#allocation34_spill] sm:$0xff] }
  0x7f   :  { %541 = vst [vmem:[#allocation3 + $0xe8] sm:$0xff] %v5762_v45  ;;  %v594_v45 = vpop.permute.xlu0 %593 }
  0x80   :  { %542 = vst [vmem:[#allocation3 + $0x288] sm:$0xff] %v5777_v30  ;;  %v9408_v30 = vld [vmem:[#allocation14_spill] sm:$0xff]  ;;  %vm598_vm3 = vcmp.ne.s32.totalorder %v5238_v4, %v594_v45 }
  0x81   :  { %543 = vst [vmem:[#allocation3 + $0x3a8] sm:$0xff] %v5783_v46  ;;  %vm595_vm6 = vcmp.ge.s32.totalorder %v9408_v30, 2  ;;  %v9409_v46 = vld [vmem:[#allocation35_spill] sm:$0xff]  ;;  %vm590_vm8 = vcmp.ge.s32.totalorder %v9408_v30, 1  ;;  %v9417_v4 = vld [vmem:[#allocation42_spill] sm:$0xff] }
  0x82   :  { %544 = vst [vmem:[#allocation3 + $0x3c8] sm:$0xff] %v5789_v47  ;;  %v9410_v47 = vld [vmem:[#allocation36_spill] sm:$0xff]  ;;  %vm597_vm14 = vmand %vm595_vm6, %vm596_vm10 }
  0x83   :  { %545 = vst [vmem:[#allocation3 + $0x160] sm:$0xff] %v5795_v48  ;;  %v9411_v48 = vld [vmem:[#allocation37_spill] sm:$0xff]  ;;  %vm599_vm1 = vmand %vm597_vm14, %vm598_vm3 }
  0x84   :  { %546 = vst [vmem:[#allocation3 + $0x2c8] sm:$0xff] %v5804_v49  ;;  %v9412_v49 = vld [vmem:[#allocation38_spill] sm:$0xff] }
  0x85   :  { %547 = vst [vmem:[#allocation3 + $0x210] sm:$0xff] %v5810_v50  ;;  %v9413_v50 = vld [vmem:[#allocation39_spill] sm:$0xff] }
  0x86   :  { %548 = vst [vmem:[#allocation3 + $0x3d8] sm:$0xff] %v5816_v51  ;;  %v9414_v51 = vld [vmem:[#allocation40_spill] sm:$0xff] }
  0x87   :  { %549 = vst [vmem:[#allocation3 + $0x1e8] sm:$0xff] %v5822_v52  ;;  %v9415_v52 = vmov -1e+30  }
  0x88   :  { %550 = vst [vmem:[#allocation3 + $0x1b0] sm:$0xff] %v5831_v53  ;;  %v591_v53 = vsel %vm590_vm8, 0.0, %v9415_v52 }
  0x89   :  { %551 = vst [vmem:[#allocation3 + $0x1c8] sm:$0xff] %v5837_v54  ;;  %v9416_v54 = vld [vmem:[#allocation41_spill] sm:$0xff] }
  0x8a   :  { %552 = vst [vmem:[#allocation3 + $0x2d0] sm:$0xff] %v9388_v1 }
  0x8b   :  { %553 = vst [vmem:[#allocation3 + $0x1d0] sm:$0xff] %v9389_v26 }
  0x8c   :  { %554 = vst [vmem:[#allocation3 + $0x58] sm:$0xff] %v9390_v27 }
  0x8d   :  { %555 = vst [vmem:[#allocation3 + $0x120] sm:$0xff] %v9391_v34 }
  0x8e   :  { %556 = vst [vmem:[#allocation3 + $0x198] sm:$0xff] %v5870_v56  ;;  %v600_v56 = vsel %vm599_vm1, 0.0, %v9415_v52 }
  0x8f   :  { %557 = vst [vmem:[#allocation3 + $0x2e8] sm:$0xff] %v5876_v2  ;;  %v9400_v2 = vld [vmem:[#allocation27_spill] sm:$0xff] }
  0x90   :  { %558 = vst [vmem:[#allocation3 + $0x1f8] sm:$0xff] %v9392_v15 }
  0x91   :  { %559 = vst [vmem:[#allocation3 + $0x238] sm:$0xff] %v9393_v16 }
  0x92   :  { %560 = vst [vmem:[#allocation3 + $0x398] sm:$0xff] %v9394_v19 }
  0x93   :  { %561 = vst [vmem:[#allocation3 + $0x390] sm:$0xff] %v5901_v57 }
  0x94   :  { %562 = vst [vmem:[#allocation3 + $0x1a0] sm:$0xff] %v9395_v20 }
  0x95   :  { %563 = vst [vmem:[#allocation3 + $0xa8] sm:$0xff] %v9396_v28 }
  0x96   :  { %564 = vst [vmem:[#allocation3 + $0x258] sm:$0xff] %v9397_v35 }
  0x97   :  { %565 = vst [vmem:[#allocation3 + $0x2d8] sm:$0xff] %v5926_v58 }
  0x98   :  { %566 = vst [vmem:[#allocation3 + $0xf0] sm:$0xff] %v9398_v36 }
  0x99   :  { %567 = vst [vmem:[#allocation3 + $0x180] sm:$0xff] %v9399_v37 }
  0x9a   :  { %568 = vst [vmem:[#allocation3 + $0x170] sm:$0xff] %v9400_v2 }
  0x9b   :  { %569 = vst [vmem:[#allocation3 + $0x3d0] sm:$0xff] %v5951_v59 }
  0x9c   :  { %570 = vst [vmem:[#allocation3 + $0x250] sm:$0xff] %v9401_v38 }
  0x9d   :  { %571 = vst [vmem:[#allocation3 + $0x378] sm:$0xff] %v9402_v39 }
  0x9e   :  { %572 = vst [vmem:[#allocation3 + $0xb8] sm:$0xff] %v5970_v31 }
  0x9f   :  { %573 = vst [vmem:[#allocation3 + $0x38] sm:$0xff] %v5976_v60 }
  0xa0   :  { %574 = vst [vmem:[#allocation3 + $0x78] sm:$0xff] %v9403_v40 }
  0xa1   :  { %575 = vst [vmem:[#allocation3 + $0x308] sm:$0xff] %v9404_v41 }
  0xa2   :  { %576 = vst [vmem:[#allocation3 + $0x370] sm:$0xff] %v9405_v42 }
  0xa3   :  { %577 = vst [vmem:[#allocation3 + $0xc8] sm:$0xff] %v6001_v61 }
  0xa4   :  { %578 = vst [vmem:[#allocation3 + $0x278] sm:$0xff] %v9406_v43 }
  0xa5   :  { %579 = vst [vmem:[#allocation3 + $0x360] sm:$0xff] %v9407_v44 }
  0xa6   :  { %580 = vst [vmem:[#allocation3 + $0x228] sm:$0xff] %v9409_v46 }
  0xa7   :  { %581 = vst [vmem:[#allocation3 + $0x348] sm:$0xff] %v6026_v62 }
  0xa8   :  { %582 = vst [vmem:[#allocation3 + $0x148] sm:$0xff] %v9410_v47 }
  0xa9   :  { %583 = vst [vmem:[#allocation3 + $0xf8] sm:$0xff] %v9411_v48 }
  0xaa   :  { %584 = vst [vmem:[#allocation3 + $0x68] sm:$0xff] %v9412_v49 }
  0xab   :  { %585 = vst [vmem:[#allocation3] sm:$0xff] %v6051_v63 }
  0xac   :  { %586 = vst [vmem:[#allocation3 + $0x298] sm:$0xff] %v9413_v50 }
  0xad   :  { %587 = vst [vmem:[#allocation3 + $0x270] sm:$0xff] %v9414_v51  ;;  %607 = sbr.rel (%p4880_p0) target bundleno = 3053 (0xbed), region = 29 }
  0xae   :  { %588 = vst [vmem:[#allocation3 + $0x310] sm:$0xff] %v9416_v54 }
  0xaf   :  { %589 = vst [vmem:[#allocation3 + $0x190] sm:$0xff] %v9417_v4 }
  0xb0   :  { %592 = vst [vmem:[#allocation4] sm:$0xff] %v591_v53 }
  0xb1   :  { %601 = vst [vmem:[#allocation5] sm:$0xff] %v600_v56 }
  0xb2   :  { %v6251_v31 = vld [vmem:[#allocation8 + $0x10] sm:$0xff]  ;;  %v798_v58 = vld [vmem:[#allocation3 + $0x108] sm:$0xff]  ;;  %v797_v61 = vld [vmem:[#allocation3 + $0x150] sm:$0xff]  ;;  %s5193_s0 = smov 1   ;;  %s5194_s28 = smov 2   ;;  %vm3939_vm2 = vcmask 1041409  }
  0xb3   :  { %9418 = vst [vmem:[#allocation43_spill] sm:$0xff] %v6251_v31  ;;  %v799_v57 = vld [vmem:[#allocation3 + $0x60] sm:$0xff]  ;;  %628 = vmax.xlane.f32.xlu0 %v6251_v31  ;;  %v6256_v60 = vand.u32 4294901760, %v798_v58  ;;  %v6258_v63 = vand.u32 4294901760, %v797_v61  ;;  %v795_v33 = vld [vmem:[#allocation3 + $0x98] sm:$0xff]  ;;  %v793_v0 = vld [vmem:[#allocation3 + $0x110] sm:$0xff] }
  0xb4   :  { %v6254_v59 = vand.u32 4294901760, %v799_v57  ;;  %v796_v62 = vld [vmem:[#allocation3 + $0x320] sm:$0xff]  ;;  %v794_v3 = vld [vmem:[#allocation3 + $0x118] sm:$0xff]  ;;  %v6270_v29 = vand.u32 4294901760, %v795_v33  ;;  %v6272_v6 = vld [vmem:[#allocation8] sm:$0xff]  ;;  %v6287_v18 = vand.u32 4294901760, %v793_v0 }
  0xb5   :  { %v6260_v55 = vand.u32 4294901760, %v796_v62  ;;  %v6267_v32 = vsub.f32 %v798_v58, %v6256_v60  ;;  %v792_v5 = vld [vmem:[#allocation3 + $0x380] sm:$0xff]  ;;  %v6275_v7 = vsub.f32 %v797_v61, %v6258_v63  ;;  %v6277_v8 = vand.u32 4294901760, %v794_v3  ;;  %624 = vmax.xlane.f32.xlu1 %v6272_v6  ;;  %v791_v10 = vld [vmem:[#allocation3 + $0x48] sm:$0xff]  ;;  %v612_v22 = vld [vmem:[#allocation8 + $0x20] sm:$0xff] }
  0xb6   :  { %913 = vmatpush.msra.mxu0 %v6254_v59  ;;  %v6264_v12 = vsub.f32 %v799_v57, %v6254_v59  ;;  %1126 = vmatpush.msra.mxu3 %v6254_v59  ;;  %v6290_v21 = vsub.f32 %v795_v33, %v6270_v29  ;;  %v6294_v24 = vand.u32 4294901760, %v792_v5  ;;  %v790_v14 = vld [vmem:[#allocation3 + $0x330] sm:$0xff]  ;;  %v6308_v27 = vand.u32 4294901760, %v791_v10  ;;  %v789_v20 = vld [vmem:[#allocation3 + $0x368] sm:$0xff]  ;;  %v787_v45 = vld [vmem:[#allocation3 + $0x18] sm:$0xff] }
  0xb7   :  { %v6280_v9 = vsub.f32 %v796_v62, %v6260_v55  ;;  %v9191_v17 = vand.u32 4294901760, %v6267_v32  ;;  %v9188_v23 = vand.u32 4294901760, %v6275_v7  ;;  %v6298_v25 = vsub.f32 %v794_v3, %v6277_v8  ;;  %v788_v39 = vld [vmem:[#allocation3 + $0x50] sm:$0xff]  ;;  %v786_v51 = vld [vmem:[#allocation3 + $0xd8] sm:$0xff]  ;;  %v815_v57 = vld [vmem:[#allocation3 + $0x280] sm:$0xff] }
  0xb8   :  { %915 = vmatpush.msra.mxu0 %v6256_v60  ;;  %1068 = vmatpush.msra.mxu2 %v6264_v12  ;;  %v963_v11 = vand.u32 4294901760, %v6264_v12  ;;  %v9185_v16 = vand.u32 4294901760, %v6290_v21  ;;  %v6319_v19 = vsub.f32 %v793_v0, %v6287_v18  ;;  %v6322_v36 = vand.u32 4294901760, %v790_v14  ;;  %v785_v4 = vld [vmem:[#allocation3 + $0x3b0] sm:$0xff]  ;;  %v814_v3 = vld [vmem:[#allocation3 + $0x1c0] sm:$0xff]  ;;  %v806_v31 = vld [vmem:[#allocation3 + $0x1b8] sm:$0xff] }
  0xb9   :  { %1128 = vmatpush.msra.mxu3 %v6256_v60  ;;  %v9186_v13 = vand.u32 4294901760, %v6280_v9  ;;  %v970_v26 = vsub.f32 %v6267_v32, %v9191_v17  ;;  %v976_v34 = vsub.f32 %v6275_v7, %v9188_v23  ;;  %v9184_v37 = vand.u32 4294901760, %v6298_v25 }
  0xba   :  { %917 = vmatpush.msra.mxu0 %v6258_v63  ;;  %1071 = vmatpush.msra.mxu2 %v6267_v32  ;;  %v964_v1 = vsub.f32 %v6264_v12, %v963_v11  ;;  %v6328_v38 = vsub.f32 %v792_v5, %v6294_v24  ;;  %v988_v40 = vsub.f32 %v6290_v21, %v9185_v16  ;;  %v6334_v41 = vand.u32 4294901760, %v789_v20 }
  0xbb   :  { %1130 = vmatpush.msra.mxu3 %v6258_v63  ;;  %v982_v15 = vsub.f32 %v6280_v9, %v9186_v13  ;;  %632 = vmax.xlane.f32.xlu0 %v612_v22  ;;  %v971_v35 = vand.u32 4294901760, %v970_v26  ;;  %v977_v2 = vand.u32 4294901760, %v976_v34  ;;  %v9182_v42 = vand.u32 4294901760, %v6319_v19 }
  0xbc   :  { %919 = vmatpush.msra.mxu0 %v6260_v55  ;;  %v965_v28 = vand.u32 4294901760, %v964_v1  ;;  %1074 = vmatpush.msra.mxu2 %v6275_v7  ;;  %v6338_v43 = vsub.f32 %v791_v10, %v6308_v27  ;;  %v6343_v44 = vsub.f32 %v790_v14, %v6322_v36  ;;  %v994_v46 = vsub.f32 %v6298_v25, %v9184_v37  ;;  %v784_v10 = vld [vmem:[#allocation3 + $0x2b0] sm:$0xff] }
  0xbd   :  { %1132 = vmatpush.msra.mxu3 %v6260_v55  ;;  %v983_v30 = vand.u32 4294901760, %v982_v15  ;;  %v6349_v47 = vand.u32 4294901760, %v788_v39  ;;  %v9181_v48 = vand.u32 4294901760, %v6328_v38  ;;  %v1000_v49 = vsub.f32 %v6319_v19, %v9182_v42 }
  0xbe   :  { %921 = vmatpush.msra.mxu0 %v6270_v29  ;;  %966 = vmatpush.msra.mxu1 %v965_v28  ;;  %v6358_v50 = vsub.f32 %v789_v20, %v6334_v41  ;;  %v989_v52 = vand.u32 4294901760, %v988_v40  ;;  %v6361_v53 = vand.u32 4294901760, %v787_v45  ;;  %v9180_v54 = vand.u32 4294901760, %v6338_v43  ;;  %v813_v20 = vld [vmem:[#allocation3 + $0xc0] sm:$0xff] }
  0xbf   :  { %1077 = vmatpush.msra.mxu2 %v6280_v9  ;;  %1134 = vmatpush.msra.mxu3 %v6270_v29  ;;  %v9178_v56 = vand.u32 4294901760, %v6343_v44  ;;  %v995_v58 = vand.u32 4294901760, %v994_v46  ;;  %v1006_v61 = vsub.f32 %v6328_v38, %v9181_v48  ;;  %v6371_v62 = vand.u32 4294901760, %v786_v51  ;;  %v809_v48 = vld [vmem:[#allocation3 + $0x2f8] sm:$0xff] }
  0xc0   :  { %923 = vmatpush.msra.mxu0 %v6277_v8  ;;  %972 = vmatpush.msra.mxu1 %v971_v35  ;;  %v6374_v33 = vsub.f32 %v788_v39, %v6349_v47  ;;  %v1001_v0 = vand.u32 4294901760, %v1000_v49  ;;  %v9177_v5 = vand.u32 4294901760, %v6358_v50  ;;  %v1012_v22 = vsub.f32 %v6338_v43, %v9180_v54 }
  0xc1   :  { %1080 = vmatpush.msra.mxu2 %v6290_v21  ;;  %1136 = vmatpush.msra.mxu3 %v6277_v8  ;;  %v6383_v14 = vand.u32 4294901760, %v785_v4  ;;  %v6386_v1 = vsub.f32 %v787_v45, %v6361_v53  ;;  %v6388_v26 = vand.u32 4294901760, %v815_v57  ;;  %v1018_v34 = vsub.f32 %v6343_v44, %v9178_v56 }
  0xc2   :  { %925 = vmatpush.msra.mxu0 %v6287_v18  ;;  %978 = vmatpush.msra.mxu1 %v977_v2  ;;  %v6395_v15 = vand.u32 4294901760, %v814_v3  ;;  %v1007_v28 = vand.u32 4294901760, %v1006_v61  ;;  %v6398_v35 = vand.u32 4294901760, %v784_v10  ;;  %v9179_v2 = vand.u32 4294901760, %v6374_v33  ;;  %v811_v61 = vld [vmem:[#allocation3 + $0x28] sm:$0xff] }
  0xc3   :  { %1083 = vmatpush.msra.mxu2 %v6298_v25  ;;  %1138 = vmatpush.msra.mxu3 %v6287_v18  ;;  %9419 = vst [vmem:[#allocation44_spill] sm:$0xff] %v6383_v14  ;;  %v6402_v39 = vsub.f32 %v786_v51, %v6371_v62  ;;  %v1024_v40 = vsub.f32 %v6358_v50, %v9177_v5  ;;  %v1013_v46 = vand.u32 4294901760, %v1012_v22  ;;  %v9183_v49 = vand.u32 4294901760, %v6386_v1 }
  0xc4   :  { %927 = vmatpush.msra.mxu0 %v6294_v24  ;;  %984 = vmatpush.msra.mxu1 %v983_v30  ;;  %9420 = vst [vmem:[#allocation45_spill] sm:$0xff] %v6398_v35  ;;  %v6410_v45 = vsub.f32 %v815_v57, %v6388_v26  ;;  %v812_v30 = vld [vmem:[#allocation3 + $0x138] sm:$0xff]  ;;  %v6415_v51 = vsub.f32 %v785_v4, %v6383_v14  ;;  %v6445_v54 = vand.u32 4294901760, %v811_v61  ;;  %v6465_v13 = vand.u32 4294901760, %v809_v48 }
  0xc5   :  { %1086 = vmatpush.msra.mxu2 %v6319_v19  ;;  %1140 = vmatpush.msra.mxu3 %v6294_v24  ;;  %v6422_v57 = vsub.f32 %v814_v3, %v6395_v15  ;;  %v9187_v4 = vand.u32 4294901760, %v6402_v39  ;;  %v6430_v22 = vsub.f32 %v784_v10, %v6398_v35  ;;  %v6432_v5 = vand.u32 4294901760, %v812_v30 }
  0xc6   :  { %929 = vmatpush.msra.mxu0 %v6308_v27  ;;  %990 = vmatpush.msra.mxu1 %v989_v52  ;;  %v6417_v52 = vand.u32 4294901760, %v813_v20  ;;  %v1025_v3 = vand.u32 4294901760, %v1024_v40  ;;  %v9189_v56 = vand.u32 4294901760, %v6410_v45  ;;  %v9190_v10 = vand.u32 4294901760, %v6415_v51 }
  0xc7   :  { %1089 = vmatpush.msra.mxu2 %v6328_v38  ;;  %1142 = vmatpush.msra.mxu3 %v6308_v27  ;;  %v9192_v40 = vand.u32 4294901760, %v6422_v57  ;;  %v6458_v37 = vsub.f32 %v812_v30, %v6432_v5  ;;  %v6473_v23 = vsub.f32 %v811_v61, %v6445_v54  ;;  %v9422_v12 = vand.u32 4294901760, %v6267_v32 }
  0xc8   :  { %931 = vmatpush.msra.mxu0 %v6322_v36  ;;  %996 = vmatpush.msra.mxu1 %v995_v58  ;;  %v1019_v58 = vand.u32 4294901760, %v1018_v34  ;;  %v810_v34 = vld [vmem:[#allocation3 + $0x290] sm:$0xff]  ;;  %v1336_v16 = vsub.f32 %v6410_v45, %v9189_v56  ;;  %v1048_v30 = vsub.f32 %v6415_v51, %v9190_v10  ;;  %v9424_v32 = vand.u32 4294901760, %v6275_v7 }
  0xc9   :  { %1092 = vmatpush.msra.mxu2 %v6338_v43  ;;  %1144 = vmatpush.msra.mxu3 %v6322_v36  ;;  %v6450_v42 = vand.u32 4294901760, %v810_v34  ;;  %v1342_v56 = vsub.f32 %v6422_v57, %v9192_v40  ;;  %v6494_v40 = vsub.f32 %v809_v48, %v6465_v13  ;;  %v805_v48 = vld [vmem:[#allocation3 + $0x1a8] sm:$0xff]  ;;  %vm3942_vm11 = vcmask 1042434  }
  0xca   :  { %933 = vmatpush.msra.mxu0 %v6334_v41  ;;  %1002 = vmatpush.msra.mxu1 %v1001_v0  ;;  %v1030_v0 = vsub.f32 %v6374_v33, %v9179_v2  ;;  %v6443_v2 = vsub.f32 %v813_v20, %v6417_v52  ;;  %v1042_v20 = vsub.f32 %v6402_v39, %v9187_v4  ;;  %vm3945_vm0 = vcmask 1043459  }
  0xcb   :  { %1095 = vmatpush.msra.mxu2 %v6343_v44  ;;  %1146 = vmatpush.msra.mxu3 %v6334_v41  ;;  %vm3948_vm5 = vcmask 1044484   ;;  %vm3951_vm13 = vcmask 1045509   ;;  %vm3954_vm4 = vcmask 1046534   ;;  %vm3957_vm15 = vcmask 1047559  }
  0xcc   :  { %935 = vmatpush.msra.mxu0 %v6349_v47  ;;  %1008 = vmatpush.msra.mxu1 %v1007_v28  ;;  %v1036_v28 = vsub.f32 %v6386_v1, %v9183_v49  ;;  %v9195_v49 = vand.u32 4294901760, %v6430_v22  ;;  %v1043_v10 = vand.u32 4294901760, %v1042_v20  ;;  %v9421_v20 = vand.u32 4294901760, %v6443_v2 }
  0xcd   :  { %1098 = vmatpush.msra.mxu2 %v6358_v50  ;;  %1148 = vmatpush.msra.mxu3 %v6349_v47 }
  0xce   :  { %937 = vmatpush.msra.mxu0 %v6361_v53  ;;  %1014 = vmatpush.msra.mxu1 %v1013_v46  ;;  %v1031_v46 = vand.u32 4294901760, %v1030_v0  ;;  %v1037_v0 = vand.u32 4294901760, %v1036_v28  ;;  %v807_v28 = vld [vmem:[#allocation3 + $0x168] sm:$0xff]  ;;  %v1054_v61 = vsub.f32 %v6430_v22, %v9195_v49  ;;  %v1348_v49 = vsub.f32 %v6443_v2, %v9421_v20 }
  0xcf   :  { %1101 = vmatpush.msra.mxu2 %v6374_v33  ;;  %1150 = vmatpush.msra.mxu3 %v6361_v53 }
  0xd0   :  { %939 = vmatpush.msra.mxu0 %v6371_v62  ;;  %1020 = vmatpush.msra.mxu1 %v1019_v58  ;;  %v808_v58 = vld [vmem:[#allocation3 + $0x3e8] sm:$0xff] }
  0xd1   :  { %1104 = vmatpush.msra.mxu2 %v6386_v1  ;;  %1152 = vmatpush.msra.mxu3 %v6371_v62  ;;  %v6488_v4 = vand.u32 4294901760, %v808_v58 }
  0xd2   :  { %941 = vmatpush.msra.mxu0 %v6383_v14  ;;  %1026 = vmatpush.msra.mxu1 %v1025_v3  ;;  %v6481_v3 = vsub.f32 %v810_v34, %v6450_v42  ;;  %v1337_v34 = vand.u32 4294901760, %v1336_v16  ;;  %v9426_v16 = vand.u32 4294901760, %v6280_v9  ;;  %v9428_v9 = vand.u32 4294901760, %v6290_v21 }
  0xd3   :  { %1107 = vmatpush.msra.mxu2 %v6402_v39  ;;  %1154 = vmatpush.msra.mxu3 %v6383_v14  ;;  %v6501_v14 = vand.u32 4294901760, %v807_v28  ;;  %v6512_v17 = vsub.f32 %v808_v58, %v6488_v4  ;;  %v6526_v58 = vand.u32 4294901760, %v805_v48  ;;  %v9429_v21 = vand.u32 4294901760, %v6298_v25 }
  0xd4   :  { %943 = vmatpush.msra.mxu0 %v6398_v35  ;;  %1032 = vmatpush.msra.mxu1 %v1031_v46  ;;  %v1049_v46 = vand.u32 4294901760, %v1048_v30  ;;  %v9423_v30 = vand.u32 4294901760, %v6458_v37  ;;  %v9427_v7 = vand.u32 4294901760, %v6481_v3  ;;  %v9430_v25 = vand.u32 4294901760, %v6319_v19  ;;  %v609_v19 = vld [vmem:[#allocation8 + $0x8] sm:$0xff] }
  0xd5   :  { %1110 = vmatpush.msra.mxu2 %v6415_v51  ;;  %1156 = vmatpush.msra.mxu3 %v6398_v35  ;;  %v6514_v35 = vand.u32 4294901760, %v806_v31 }
  0xd6   :  { %1173 = vmatpush.msrb.mxu0 %v963_v11  ;;  %1038 = vmatpush.msra.mxu1 %v1037_v0  ;;  %v1343_v11 = vand.u32 4294901760, %v1342_v56  ;;  %v1055_v0 = vand.u32 4294901760, %v1054_v61  ;;  %v1354_v20 = vsub.f32 %v6458_v37, %v9423_v30  ;;  %v9198_v56 = vand.u32 4294901760, %v6494_v40 }
  0xd7   :  { %1113 = vmatpush.msra.mxu2 %v6430_v22  ;;  %1338 = vmatpush.msrb.mxu3 %v1337_v34  ;;  %v9425_v61 = vand.u32 4294901760, %v6473_v23  ;;  %v6524_v30 = vsub.f32 %v807_v28, %v6501_v14  ;;  %v1366_v34 = vsub.f32 %v6481_v3, %v9427_v7  ;;  %v9199_v28 = vand.u32 4294901760, %v6512_v17 }
  0xd8   :  { %1177 = vmatpush.msrb.mxu0 %v9422_v12  ;;  %1044 = vmatpush.msra.mxu1 %v1043_v10  ;;  %v1349_v10 = vand.u32 4294901760, %v1348_v49  ;;  %v6534_v49 = vand.u32 4294901760, %v6272_v6 }
  0xd9   :  { %1285 = vmatpush.msrb.mxu2 %v6388_v26  ;;  %v1360_v12 = vsub.f32 %v6473_v23, %v9425_v61  ;;  %1344 = vmatpush.msrb.mxu3 %v1343_v11  ;;  %v6539_v61 = vsub.f32 %v806_v31, %v6514_v35  ;;  %v1372_v11 = vsub.f32 %v6494_v40, %v9198_v56 }
  0xda   :  { %1181 = vmatpush.msrb.mxu0 %v9424_v32  ;;  %1050 = vmatpush.msra.mxu1 %v1049_v46  ;;  %v804_v46 = vld [vmem:[#allocation3 + $0x80] sm:$0xff]  ;;  %v1355_v32 = vand.u32 4294901760, %v1354_v20  ;;  %v9200_v20 = vand.u32 4294901760, %v6524_v30  ;;  %v6552_v31 = vsub.f32 %v805_v48, %v6526_v58  ;;  %v6564_v48 = vsub.f32 %v6272_v6, %v6534_v49 }
  0xdb   :  { %1287 = vmatpush.msrb.mxu2 %v6395_v15  ;;  %1350 = vmatpush.msrb.mxu3 %v1349_v10  ;;  %v6549_v7 = vand.u32 4294901760, %v804_v46  ;;  %v1378_v10 = vsub.f32 %v6512_v17, %v9199_v28  ;;  %v801_v28 = vld [vmem:[#allocation3 + $0x388] sm:$0xff] }
  0xdc   :  { %1185 = vmatpush.msrb.mxu0 %v9426_v16  ;;  %1056 = vmatpush.msra.mxu1 %v1055_v0  ;;  %v803_v16 = vld [vmem:[#allocation3 + $0x340] sm:$0xff]  ;;  %v1361_v0 = vand.u32 4294901760, %v1360_v12  ;;  %v1389_v12 = vand.u32 4294901760, %v6539_v61 }
  0xdd   :  { %1289 = vmatpush.msrb.mxu2 %v6417_v52  ;;  %1356 = vmatpush.msrb.mxu3 %v1355_v32  ;;  %v6566_v56 = vand.u32 4294901760, %v803_v16  ;;  %v9201_v32 = vand.u32 4294901760, %v6552_v31  ;;  %v6577_v6 = vsub.f32 %v804_v46, %v6549_v7  ;;  %v946_v46 = vand.u32 4294901760, %v6564_v48 }
  0xde   :  { %1189 = vmatpush.msrb.mxu0 %v9428_v9  ;;  %1244 = vmatpush.msrb.mxu1 %v6254_v59  ;;  %v1367_v59 = vand.u32 4294901760, %v1366_v34  ;;  %v802_v9 = vld [vmem:[#allocation3 + $0x338] sm:$0xff]  ;;  %v1384_v34 = vsub.f32 %v6524_v30, %v9200_v20  ;;  %v9432_v20 = vand.u32 4294901760, %v6338_v43 }
  0xdf   :  { %1291 = vmatpush.msrb.mxu2 %v6432_v5  ;;  %1362 = vmatpush.msrb.mxu3 %v1361_v0  ;;  %v6590_v0 = vsub.f32 %v803_v16, %v6566_v56  ;;  %v1401_v16 = vand.u32 4294901760, %v6577_v6 }
  0xe0   :  { %1193 = vmatpush.msrb.mxu0 %v9429_v21  ;;  %1246 = vmatpush.msrb.mxu1 %v6256_v60  ;;  %v1373_v60 = vand.u32 4294901760, %v1372_v11  ;;  %v6579_v21 = vand.u32 4294901760, %v802_v9  ;;  %v1390_v11 = vsub.f32 %v6539_v61, %v1389_v12 }
  0xe1   :  { %1293 = vmatpush.msrb.mxu2 %v6445_v54  ;;  %1368 = vmatpush.msrb.mxu3 %v1367_v59  ;;  %v1385_v59 = vand.u32 4294901760, %v1384_v34  ;;  %v1407_v34 = vand.u32 4294901760, %v6590_v0 }
  0xe2   :  { %1197 = vmatpush.msrb.mxu0 %v9430_v25  ;;  %1248 = vmatpush.msrb.mxu1 %v6258_v63  ;;  %v9431_v25 = vand.u32 4294901760, %v6328_v38  ;;  %v1379_v63 = vand.u32 4294901760, %v1378_v10  ;;  %v6595_v38 = vand.u32 4294901760, %v801_v28  ;;  %v1396_v10 = vsub.f32 %v6552_v31, %v9201_v32 }
  0xe3   :  { %1295 = vmatpush.msrb.mxu2 %v6450_v42  ;;  %1374 = vmatpush.msrb.mxu3 %v1373_v60  ;;  %v6605_v43 = vsub.f32 %v802_v9, %v6579_v21  ;;  %v947_v60 = vsub.f32 %v6564_v48, %v946_v46  ;;  %v9434_v9 = vand.u32 4294901760, %v6358_v50  ;;  %v9435_v50 = vand.u32 4294901760, %v6374_v33 }
  0xe4   :  { %1201 = vmatpush.msrb.mxu0 %v9431_v25  ;;  %1250 = vmatpush.msrb.mxu1 %v6260_v55  ;;  %v800_v55 = vld [vmem:[#allocation3 + $0x2e0] sm:$0xff]  ;;  %v6597_v25 = vand.u32 4294901760, %v609_v19 }
  0xe5   :  { %1297 = vmatpush.msrb.mxu2 %v6465_v13  ;;  %1380 = vmatpush.msrb.mxu3 %v1379_v63  ;;  %v6615_v32 = vand.u32 4294901760, %v800_v55  ;;  %v1397_v63 = vand.u32 4294901760, %v1396_v10 }
  0xe6   :  { %1205 = vmatpush.msrb.mxu0 %v9432_v20  ;;  %1252 = vmatpush.msrb.mxu1 %v6270_v29  ;;  %v9433_v29 = vand.u32 4294901760, %v6343_v44  ;;  %v1391_v20 = vand.u32 4294901760, %v1390_v11  ;;  %v6621_v44 = vsub.f32 %v801_v28, %v6595_v38  ;;  %v1402_v11 = vsub.f32 %v6577_v6, %v1401_v16 }
  0xe7   :  { %1299 = vmatpush.msrb.mxu2 %v6488_v4  ;;  %1386 = vmatpush.msrb.mxu3 %v1385_v59  ;;  %v1408_v28 = vsub.f32 %v6590_v0, %v1407_v34  ;;  %v9436_v59 = vand.u32 4294901760, %v6386_v1 }
  0xe8   :  { %1209 = vmatpush.msrb.mxu0 %v9433_v29  ;;  %1254 = vmatpush.msrb.mxu1 %v6277_v8  ;;  %v6624_v8 = vsub.f32 %v609_v19, %v6597_v25  ;;  %v1413_v29 = vand.u32 4294901760, %v6605_v43  ;;  %v6639_v19 = vsub.f32 %v800_v55, %v6615_v32  ;;  %v1419_v33 = vand.u32 4294901760, %v6621_v44 }
  0xe9   :  { %1301 = vmatpush.msrb.mxu2 %v6501_v14  ;;  %1392 = vmatpush.msrb.mxu3 %v1391_v20  ;;  %v1403_v10 = vand.u32 4294901760, %v1402_v11  ;;  %v9437_v55 = vand.u32 4294901760, %v6402_v39 }
  0xea   :  { %1213 = vmatpush.msrb.mxu0 %v9434_v9  ;;  %1256 = vmatpush.msrb.mxu1 %v6287_v18  ;;  %v948_v18 = vand.u32 4294901760, %v947_v60  ;;  %v1414_v20 = vsub.f32 %v6605_v43, %v1413_v29  ;;  %v1425_v1 = vand.u32 4294901760, %v6639_v19  ;;  %v9438_v60 = vand.u32 4294901760, %v6415_v51 }
  0xeb   :  { %1303 = vmatpush.msrb.mxu2 %v6514_v35  ;;  %1398 = vmatpush.msrb.mxu3 %v1397_v63  ;;  %v1420_v9 = vsub.f32 %v6621_v44, %v1419_v33  ;;  %v9439_v63 = vand.u32 4294901760, %v6430_v22  ;;  %v9441_v22 = vld [vmem:[#allocation44_spill] sm:$0xff] }
  0xec   :  { %1217 = vmatpush.msrb.mxu0 %v9435_v50  ;;  %1258 = vmatpush.msrb.mxu1 %v6294_v24  ;;  %v954_v24 = vand.u32 4294901760, %v6624_v8  ;;  %v9443_v50 = vld [vmem:[#allocation45_spill] sm:$0xff] }
  0xed   :  { %1305 = vmatpush.msrb.mxu2 %v6526_v58  ;;  %949 = vmatmul.f32.vlgmr.msra.gmra.mxu0 %v948_v18  ;;  %v1421_v51 = vand.u32 4294901760, %v1420_v9 }
  0xee   :  { %1221 = vmatpush.msrb.mxu0 %v9436_v59  ;;  %1260 = vmatpush.msrb.mxu1 %v6308_v27  ;;  %v1409_v27 = vand.u32 4294901760, %v1408_v28  ;;  %v955_v39 = vsub.f32 %v6624_v8, %v954_v24 }
  0xef   :  { %1307 = vmatpush.msrb.mxu2 %v6549_v7  ;;  %1404 = vmatpush.msrb.mxu3 %v1403_v10  ;;  %v826_v10 = vld [vmem:[#allocation3 + $0xa0] sm:$0xff] }
  0xf0   :  { %1225 = vmatpush.msrb.mxu0 %v9437_v55  ;;  %1262 = vmatpush.msrb.mxu1 %v6322_v36  ;;  %v1415_v36 = vand.u32 4294901760, %v1414_v20  ;;  %v956_v11 = vand.u32 4294901760, %v955_v39  ;;  %v618_v20 = vld [vmem:[#allocation8 + $0x50] sm:$0xff] }
  0xf1   :  { %1309 = vmatpush.msrb.mxu2 %v6566_v56  ;;  %1058 = vmatmul.f32.vlgmr.msra.gmra.mxu1 %v6534_v49 }
  0xf2   :  { %1229 = vmatpush.msrb.mxu0 %v9438_v60  ;;  %1264 = vmatpush.msrb.mxu1 %v6334_v41  ;;  %v1426_v41 = vsub.f32 %v6639_v19, %v1425_v1 }
  0xf3   :  { %1311 = vmatpush.msrb.mxu2 %v6579_v21  ;;  %1410 = vmatpush.msrb.mxu3 %v1409_v27 }
  0xf4   :  { %1233 = vmatpush.msrb.mxu0 %v9439_v63  ;;  %1266 = vmatpush.msrb.mxu1 %v6349_v47  ;;  %v1427_v47 = vand.u32 4294901760, %v1426_v41 }
  0xf5   :  { %1313 = vmatpush.msrb.mxu2 %v6595_v38  ;;  %1416 = vmatpush.msrb.mxu3 %v1415_v36  ;;  %v823_v36 = vld [vmem:[#allocation3 + $0x128] sm:$0xff] }
  0xf6   :  { %1440 = vmatpush.msra.mxu0 %v6410_v45  ;;  %1268 = vmatpush.msrb.mxu1 %v6361_v53  ;;  %v9440_v53 = vand.u32 4294901760, %v6410_v45  ;;  %v9445_v45 = vand.u32 4294901760, %v6443_v2 }
  0xf7   :  { %1116 = vmatmul.f32.vlgmr.msra.gmra.mxu2 %v6564_v48  ;;  %1422 = vmatpush.msrb.mxu3 %v1421_v51  ;;  %v6691_v48 = vld [vmem:[#allocation8 + $0x30] sm:$0xff] }
  0xf8   :  { %1443 = vmatpush.msra.mxu0 %v6422_v57  ;;  %1270 = vmatpush.msrb.mxu1 %v6371_v62  ;;  %v9442_v62 = vand.u32 4294901760, %v6422_v57  ;;  %v9446_v57 = vand.u32 4294901760, %v6458_v37 }
  0xf9   :  { %1315 = vmatpush.msrb.mxu2 %v6615_v32  ;;  %957 = vmatmul.f32.gmra.mxu0 %v956_v11 }
  0xfa   :  { %1160 = vmatmul.f32.vlgmr.msra.gmra.mxu3 %v946_v46  ;;  %1446 = vmatpush.msra.mxu0 %v6443_v2  ;;  %v9444_v46 = vld [vmem:[#allocation43_spill] sm:$0xff] }
  0xfb   :  { %1545 = vmatpush.msra.mxu2 %v9440_v53  ;;  %1272 = vmatpush.msrb.mxu1 %v9441_v22  ;;  %v6694_v18 = vand.u32 4294901760, %v9444_v46 }
  0xfc   :  { %1428 = vmatpush.msrb.mxu3 %v1427_v47  ;;  %1062 = vmatmul.f32.gmra.mxu1 %v6597_v25  ;;  %v822_v47 = vld [vmem:[#allocation3 + $0x8] sm:$0xff] }
  0xfd   :  { %1449 = vmatpush.msra.mxu0 %v6458_v37  ;;  %1549 = vmatpush.msra.mxu2 %v9442_v62  ;;  %v6708_v28 = vsub.f32 %v9444_v46, %v6694_v18  ;;  %v611_v37 = vld [vmem:[#allocation8 + $0x18] sm:$0xff]  ;;  %v821_v62 = vld [vmem:[#allocation3 + $0x3f8] sm:$0xff] }
  0xfe   :  { %1616 = vmatpush.msra.mxu3 %v6388_v26  ;;  %1274 = vmatpush.msrb.mxu1 %v9443_v50 }
  0xff   :  { %1452 = vmatpush.msra.mxu0 %v6473_v23  ;;  %1553 = vmatpush.msra.mxu2 %v9445_v45  ;;  %v1318_v2 = vand.u32 4294901760, %v6708_v28 }
 0x100   :  { %1498 = vmatpush.msra.mxu1 %v6388_v26  ;;  %1618 = vmatpush.msra.mxu3 %v6395_v15  ;;  %v9447_v26 = vand.u32 4294901760, %v6473_v23  ;;  %v9449_v23 = vand.u32 4294901760, %v6494_v40 }
 0x101   :  { %636 = vmax.xlane.f32.xlu1 %v6691_v48  ;;  %1455 = vmatpush.msra.mxu0 %v6481_v3 }
 0x102   :  { %1500 = vmatpush.msra.mxu1 %v6395_v15  ;;  %1557 = vmatpush.msra.mxu2 %v9446_v57  ;;  %v9448_v15 = vand.u32 4294901760, %v6481_v3  ;;  %v9450_v3 = vand.u32 4294901760, %v6512_v17 }
 0x103   :  { %1620 = vmatpush.msra.mxu3 %v6417_v52  ;;  %1235 = vmatmul.f32.vlgmr.msrb.gmra.mxu0 %v6534_v49 }
 0x104   :  { %1458 = vmatpush.msra.mxu0 %v6494_v40  ;;  %1502 = vmatpush.msra.mxu1 %v6417_v52  ;;  %v6728_v52 = vand.u32 4294901760, %v611_v37  ;;  %v831_v40 = vld [vmem:[#allocation3 + $0x10] sm:$0xff] }
 0x105   :  { %1561 = vmatpush.msra.mxu2 %v9447_v26  ;;  %1622 = vmatpush.msra.mxu3 %v6432_v5  ;;  %v820_v26 = vld [vmem:[#allocation3 + $0x218] sm:$0xff] }
 0x106   :  { %1276 = vmatmul.f32.vlgmr.msrb.gmra.mxu1 %v6534_v49  ;;  %1461 = vmatpush.msra.mxu0 %v6512_v17  ;;  %v830_v49 = vld [vmem:[#allocation3 + $0x1f0] sm:$0xff] }
 0x107   :  { %1504 = vmatpush.msra.mxu1 %v6432_v5  ;;  %1565 = vmatpush.msra.mxu2 %v9448_v15  ;;  %v1319_v5 = vsub.f32 %v6708_v28, %v1318_v2 }
 0x108   :  { %1624 = vmatpush.msra.mxu3 %v6445_v54  ;;  %1464 = vmatpush.msra.mxu0 %v6524_v30 }
 0x109   :  { %1506 = vmatpush.msra.mxu1 %v6445_v54  ;;  %1569 = vmatpush.msra.mxu2 %v9449_v23  ;;  %v6744_v54 = vsub.f32 %v611_v37, %v6728_v52  ;;  %v1320_v17 = vand.u32 4294901760, %v1319_v5  ;;  %v6874_v37 = vand.u32 4294901760, %v821_v62  ;;  %v620_v23 = vld [vmem:[#allocation8 + $0x60] sm:$0xff] }
 0x10a   :  { %1626 = vmatpush.msra.mxu3 %v6450_v42  ;;  %1121 = vmatmul.f32.gmra.mxu2 %v6624_v8  ;;  %v6760_v8 = vand.u32 4294901760, %v831_v40 }
 0x10b   :  { %1467 = vmatpush.msra.mxu0 %v6539_v61  ;;  %1508 = vmatpush.msra.mxu1 %v6450_v42  ;;  %v9451_v42 = vand.u32 4294901760, %v6524_v30  ;;  %v9452_v30 = vand.u32 4294901760, %v6552_v31  ;;  %v829_v61 = vld [vmem:[#allocation3 + $0x1e0] sm:$0xff] }
 0x10c   :  { %1573 = vmatpush.msra.mxu2 %v9450_v3  ;;  %1628 = vmatpush.msra.mxu3 %v6465_v13 }
 0x10d   :  { %1166 = vmatmul.f32.gmra.mxu3 %v954_v24  ;;  %1470 = vmatpush.msra.mxu0 %v6552_v31  ;;  %v827_v24 = vld [vmem:[#allocation3 + $0x2c0] sm:$0xff] }
 0x10e   :  { %1510 = vmatpush.msra.mxu1 %v6465_v13  ;;  %1577 = vmatpush.msra.mxu2 %v9451_v42  ;;  %v9213_v13 = vand.u32 4294901760, %v6744_v54  ;;  %v819_v42 = vld [vmem:[#allocation3 + $0x3e0] sm:$0xff] }
 0x10f   :  { %1630 = vmatpush.msra.mxu3 %v6488_v4  ;;  %1473 = vmatpush.msra.mxu0 %v6577_v6  ;;  %v828_v6 = vld [vmem:[#allocation3 + $0xb0] sm:$0xff] }
 0x110   :  { %1512 = vmatpush.msra.mxu1 %v6488_v4  ;;  %1581 = vmatpush.msra.mxu2 %v1389_v12  ;;  %v6765_v4 = vand.u32 4294901760, %v830_v49  ;;  %v1327_v31 = vsub.f32 %v6744_v54, %v9213_v13  ;;  %v6776_v12 = vsub.f32 %v831_v40, %v6760_v8 }
 0x111   :  { %1632 = vmatpush.msra.mxu3 %v6501_v14  ;;  %1476 = vmatpush.msra.mxu0 %v6590_v0 }
 0x112   :  { %1514 = vmatpush.msra.mxu1 %v6501_v14  ;;  %1585 = vmatpush.msra.mxu2 %v9452_v30  ;;  %v616_v14 = vld [vmem:[#allocation8 + $0x40] sm:$0xff]  ;;  %v1328_v59 = vand.u32 4294901760, %v1327_v31  ;;  %v1707_v0 = vand.u32 4294901760, %v6776_v12 }
 0x113   :  { %1634 = vmatpush.msra.mxu3 %v6514_v35  ;;  %1321 = vmatmul.f32.vlgmr.msrb.gmra.mxu2 %v1320_v17  ;;  %v6885_v17 = vand.u32 4294901760, %v820_v26 }
 0x114   :  { %1479 = vmatpush.msra.mxu0 %v6605_v43  ;;  %1516 = vmatpush.msra.mxu1 %v6514_v35  ;;  %v6781_v35 = vand.u32 4294901760, %v829_v61 }
 0x115   :  { %1589 = vmatpush.msra.mxu2 %v1401_v16  ;;  %1636 = vmatpush.msra.mxu3 %v6526_v58  ;;  %v6785_v16 = vsub.f32 %v830_v49, %v6765_v4 }
 0x116   :  { %1430 = vmatmul.f32.vlgmr.msrb.gmra.mxu3 %v6694_v18  ;;  %1482 = vmatpush.msra.mxu0 %v6621_v44  ;;  %v6813_v44 = vand.u32 4294901760, %v826_v10 }
 0x117   :  { %1518 = vmatpush.msra.mxu1 %v6526_v58  ;;  %1593 = vmatpush.msra.mxu2 %v1407_v34  ;;  %v6792_v58 = vand.u32 4294901760, %v828_v6  ;;  %v6798_v34 = vsub.f32 %v829_v61, %v6781_v35  ;;  %v9215_v43 = vand.u32 4294901760, %v6785_v16 }
 0x118   :  { %1638 = vmatpush.msra.mxu3 %v6549_v7  ;;  %640 = vmax.xlane.f32.xlu2 %v616_v14  ;;  %v6836_v39 = vsub.f32 %v826_v10, %v6813_v44  ;;  %v6900_v14 = vand.u32 4294901760, %v819_v42  ;;  %v6914_v10 = vsub.f32 %v820_v26, %v6885_v17  ;;  %v847_v26 = vld [vmem:[#allocation3 + $0x2a8] sm:$0xff] }
 0x119   :  { %1485 = vmatpush.msra.mxu0 %v6639_v19  ;;  %1520 = vmatpush.msra.mxu1 %v6549_v7  ;;  %v6803_v7 = vand.u32 4294901760, %v827_v24  ;;  %v9214_v55 = vand.u32 4294901760, %v6798_v34 }
 0x11a   :  { %1597 = vmatpush.msra.mxu2 %v1413_v29  ;;  %1640 = vmatpush.msra.mxu3 %v6566_v56  ;;  %v825_v29 = vld [vmem:[#allocation3 + $0x3f0] sm:$0xff]  ;;  %v9209_v22 = vand.u32 4294901760, %v6836_v39 }
 0x11b   :  { %1657 = vmatpush.msrb.mxu0 %v6760_v8  ;;  %1522 = vmatpush.msra.mxu1 %v6566_v56  ;;  %v1708_v56 = vsub.f32 %v6776_v12, %v1707_v0  ;;  %v6826_v19 = vand.u32 4294901760, %v825_v29  ;;  %v6829_v27 = vsub.f32 %v827_v24, %v6803_v7  ;;  %v1720_v63 = vsub.f32 %v6798_v34, %v9214_v55  ;;  %v841_v55 = vld [vmem:[#allocation3 + $0x268] sm:$0xff] }
 0x11c   :  { %1601 = vmatpush.msra.mxu2 %v1419_v33  ;;  %1642 = vmatpush.msra.mxu3 %v6579_v21  ;;  %v6816_v33 = vsub.f32 %v828_v6, %v6792_v58  ;;  %v1738_v3 = vsub.f32 %v6836_v39, %v9209_v22  ;;  %v6904_v6 = vsub.f32 %v821_v62, %v6874_v37 }
 0x11d   :  { %1329 = vmatmul.f32.gmra.mxu2 %v1328_v59  ;;  %1659 = vmatpush.msrb.mxu0 %v6765_v4  ;;  %v1709_v60 = vand.u32 4294901760, %v1708_v56  ;;  %v9210_v51 = vand.u32 4294901760, %v6829_v27  ;;  %v6849_v11 = vsub.f32 %v825_v29, %v6826_v19  ;;  %v1721_v50 = vand.u32 4294901760, %v1720_v63  ;;  %v818_v59 = vld [vmem:[#allocation3 + $0x158] sm:$0xff]  ;;  %v5104_v29 = vld [vmem:[#allocation8 + $0x10] sm:$0xff] }
 0x11e   :  { %1524 = vmatpush.msra.mxu1 %v6579_v21  ;;  %1605 = vmatpush.msra.mxu2 %v1425_v1  ;;  %v1714_v21 = vsub.f32 %v6785_v16, %v9215_v43  ;;  %v824_v1 = vld [vmem:[#allocation3 + $0x2a0] sm:$0xff]  ;;  %v9212_v9 = vand.u32 4294901760, %v6816_v33  ;;  %v1739_v24 = vand.u32 4294901760, %v1738_v3  ;;  %v6927_v63 = vsub.f32 %v819_v42, %v6900_v14 }
 0x11f   :  { %1644 = vmatpush.msra.mxu3 %v6595_v38  ;;  %1239 = vmatmul.f32.gmra.mxu0 %v6597_v25  ;;  %v6843_v41 = vand.u32 4294901760, %v824_v1  ;;  %v1732_v45 = vsub.f32 %v6829_v27, %v9210_v51  ;;  %v9208_v57 = vand.u32 4294901760, %v6849_v11 }
 0x120   :  { %1434 = vmatmul.f32.gmra.mxu3 %v6728_v52  ;;  %1661 = vmatpush.msrb.mxu0 %v6781_v35  ;;  %v1726_v53 = vsub.f32 %v6816_v33, %v9212_v9 }
 0x121   :  { %1812 = vmatpush.msrb.mxu2 %v6776_v12  ;;  %1526 = vmatpush.msra.mxu1 %v6595_v38  ;;  %v1715_v38 = vand.u32 4294901760, %v1714_v21  ;;  %v6865_v46 = vsub.f32 %v824_v1, %v6843_v41  ;;  %v1744_v30 = vsub.f32 %v6849_v11, %v9208_v57  ;;  %v6918_v21 = vand.u32 4294901760, %v818_v59  ;;  %v817_v1 = vld [vmem:[#allocation3 + $0x3c0] sm:$0xff] }
 0x122   :  { %1646 = vmatpush.msra.mxu3 %v6615_v32  ;;  %644 = vmax.xlane.f32.xlu2 %v618_v20  ;;  %v1727_v5 = vand.u32 4294901760, %v1726_v53  ;;  %v6935_v62 = vand.u32 4294901760, %v817_v1 }
 0x123   :  { %1280 = vmatmul.f32.gmra.mxu1 %v6597_v25  ;;  %1663 = vmatpush.msrb.mxu0 %v6792_v58  ;;  %v6853_v25 = vand.u32 4294901760, %v823_v36  ;;  %v9207_v40 = vand.u32 4294901760, %v6865_v46  ;;  %v1745_v20 = vand.u32 4294901760, %v1744_v30  ;;  %9454 = vst [vmem:[#allocation45_spill] sm:$0xff] %v6918_v21  ;;  %v846_v30 = vld [vmem:[#allocation3 + $0x140] sm:$0xff] }
 0x124   :  { %1815 = vmatpush.msrb.mxu2 %v6785_v16  ;;  %1870 = vmatpush.msrb.mxu3 %v6760_v8  ;;  %9455 = vst [vmem:[#allocation43_spill] sm:$0xff] %v6935_v62 }
 0x125   :  { %1528 = vmatpush.msra.mxu1 %v6615_v32  ;;  %1665 = vmatpush.msrb.mxu0 %v6803_v7  ;;  %v6862_v32 = vand.u32 4294901760, %v822_v47  ;;  %v6877_v15 = vsub.f32 %v823_v36, %v6853_v25  ;;  %v9203_v36 = vand.u32 4294901760, %v6904_v6 }
 0x126   :  { %1818 = vmatpush.msrb.mxu2 %v6798_v34  ;;  %1872 = vmatpush.msrb.mxu3 %v6765_v4  ;;  %v6898_v61 = vpop.xlane.xlu0 %628 }
 0x127   :  { %1710 = vmatpush.msrb.mxu1 %v1709_v60  ;;  %1607 = vmatmul.f32.vlgmr.msra.gmra.mxu2 %v6694_v18  ;;  %v6889_v49 = vsub.f32 %v822_v47, %v6862_v32  ;;  %9453 = vst [vmem:[#allocation44_spill] sm:$0xff] %v6898_v61  ;;  %v9206_v31 = vand.u32 4294901760, %v6877_v15  ;;  %v658_v56 = vsub.f32 %v5104_v29, %v6898_v61 }
 0x128   :  { %1667 = vmatpush.msrb.mxu0 %v6813_v44  ;;  %1821 = vmatpush.msrb.mxu2 %v6816_v33  ;;  %v1768_v42 = vsub.f32 %v6904_v6, %v9203_v36  ;;  %v7015_v43 = vpop.xlane.xlu1 %624 }
 0x129   :  { %1716 = vmatpush.msrb.mxu1 %v1715_v38  ;;  %1874 = vmatpush.msrb.mxu3 %v6781_v35  ;;  %v1756_v60 = vsub.f32 %v6877_v15, %v9206_v31  ;;  %v622_v38 = vld [vmem:[#allocation8 + $0x70] sm:$0xff]  ;;  %9457 = vst [vmem:[#allocation47_spill] sm:$0xff] %v7015_v43 }
 0x12a   :  { %1488 = vmatmul.f32.vlgmr.msra.gmra.mxu0 %v6708_v28  ;;  %1648 = vmatmul.f32.vlgmr.msra.gmra.mxu3 %v6694_v18  ;;  %v1733_v18 = vand.u32 4294901760, %v1732_v45  ;;  %v1750_v28 = vsub.f32 %v6865_v46, %v9207_v40  ;;  %v9202_v45 = vand.u32 4294901760, %v6914_v10 }
 0x12b   :  { %1669 = vmatpush.msrb.mxu0 %v6826_v19  ;;  %1722 = vmatpush.msrb.mxu1 %v1721_v50  ;;  %v816_v50 = vld [vmem:[#allocation3 + $0x100] sm:$0xff]  ;;  %v1757_v3 = vand.u32 4294901760, %v1756_v60  ;;  %v6963_v60 = vand.u32 4294901760, %v846_v30 }
 0x12c   :  { %1824 = vmatpush.msrb.mxu2 %v6829_v27  ;;  %1876 = vmatpush.msrb.mxu3 %v6792_v58  ;;  %v1751_v47 = vand.u32 4294901760, %v1750_v28  ;;  %v6951_v28 = vand.u32 4294901760, %v847_v26  ;;  %v1774_v29 = vsub.f32 %v6914_v10, %v9202_v45 }
 0x12d   :  { %648 = vmax.xlane.f32.xlu0 %v620_v23  ;;  %1532 = vmatmul.f32.vlgmr.msra.gmra.mxu1 %v1318_v2  ;;  %v9204_v2 = vand.u32 4294901760, %v6889_v49  ;;  %v676_v23 = vmul.f32 1.442695, %v658_v56  ;;  %v6958_v56 = vsub.f32 %v817_v1, %v6935_v62 }
 0x12e   :  { %1671 = vmatpush.msrb.mxu0 %v6843_v41  ;;  %1728 = vmatpush.msrb.mxu1 %v1727_v5  ;;  %v6940_v5 = vsub.f32 %v818_v59, %v6918_v21  ;;  %v6977_v45 = vsub.f32 %v847_v26, %v6951_v28  ;;  %v1775_v36 = vand.u32 4294901760, %v1774_v29  ;;  %v843_v29 = vld [vmem:[#allocation3 + $0x188] sm:$0xff] }
 0x12f   :  { %1827 = vmatpush.msrb.mxu2 %v6836_v39  ;;  %1878 = vmatpush.msrb.mxu3 %v6803_v7  ;;  %v1762_v53 = vsub.f32 %v6889_v49, %v9204_v2  ;;  %4912 = vpow2.f32 %v676_v23 }
 0x130   :  { %1673 = vmatpush.msrb.mxu0 %v6853_v25  ;;  %1734 = vmatpush.msrb.mxu1 %v1733_v18  ;;  %v9205_v18 = vand.u32 4294901760, %v6927_v63  ;;  %v9217_v22 = vand.u32 4294901760, %v6977_v45 }
 0x131   :  { %1830 = vmatpush.msrb.mxu2 %v6849_v11  ;;  %1880 = vmatpush.msrb.mxu3 %v6813_v44  ;;  %v1763_v59 = vand.u32 4294901760, %v1762_v53  ;;  %v1769_v53 = vand.u32 4294901760, %v1768_v42  ;;  %v9216_v42 = vand.u32 4294901760, %v6958_v56 }
 0x132   :  { %1675 = vmatpush.msrb.mxu0 %v6862_v32  ;;  %1740 = vmatpush.msrb.mxu1 %v1739_v24  ;;  %v6949_v24 = vand.u32 4294901760, %v816_v50  ;;  %v1780_v1 = vsub.f32 %v6927_v63, %v9205_v18  ;;  %v6984_v18 = vld [vmem:[#allocation8 + $0x20] sm:$0xff]  ;;  %v2080_v12 = vsub.f32 %v6977_v45, %v9217_v22 }
 0x133   :  { %1833 = vmatpush.msrb.mxu2 %v6865_v46  ;;  %1882 = vmatpush.msrb.mxu3 %v6826_v19  ;;  %v5106_v22 = vld [vmem:[#allocation8] sm:$0xff] }
 0x134   :  { %1677 = vmatpush.msrb.mxu0 %v6874_v37  ;;  %1746 = vmatpush.msrb.mxu1 %v1745_v20  ;;  %v9211_v20 = vand.u32 4294901760, %v6940_v5  ;;  %v6974_v23 = vsub.f32 %v816_v50, %v6949_v24  ;;  %v1781_v31 = vand.u32 4294901760, %v1780_v1  ;;  %v7009_v1 = vand.u32 4294901760, %v843_v29 }
 0x135   :  { %1836 = vmatpush.msrb.mxu2 %v6877_v15  ;;  %1884 = vmatpush.msrb.mxu3 %v6843_v41  ;;  %v4913_v57 = vpop.eup %4912 }
 0x136   :  { %652 = vmax.xlane.f32.xlu1 %v622_v38  ;;  %1679 = vmatpush.msrb.mxu0 %v6885_v17  ;;  %v845_v38 = vld [vmem:[#allocation3 + $0x30] sm:$0xff]  ;;  %v1786_v26 = vsub.f32 %v6940_v5, %v9211_v20  ;;  %v9218_v51 = vand.u32 4294901760, %v6974_v23 }
 0x137   :  { %1752 = vmatpush.msrb.mxu1 %v1751_v47  ;;  %1839 = vmatpush.msrb.mxu2 %v6889_v49  ;;  %v6966_v47 = vpop.xlane.xlu0 %632  ;;  %v6981_v2 = vand.u32 4294901760, %v845_v38  ;;  %v842_v20 = vld [vmem:[#allocation3 + $0x350] sm:$0xff] }
 0x138   :  { %1886 = vmatpush.msrb.mxu3 %v6853_v25  ;;  %1681 = vmatpush.msrb.mxu0 %v6900_v14  ;;  %9456 = vst [vmem:[#allocation46_spill] sm:$0xff] %v6966_v47  ;;  %v660_v50 = vsub.f32 %v6984_v18, %v6966_v47  ;;  %v1787_v13 = vand.u32 4294901760, %v1786_v26  ;;  %v7035_v26 = vsub.f32 %v843_v29, %v7009_v1 }
 0x139   :  { %1758 = vmatpush.msrb.mxu1 %v1757_v3  ;;  %1842 = vmatpush.msrb.mxu2 %v6904_v6  ;;  %v844_v3 = vld [vmem:[#allocation3 + $0x1d8] sm:$0xff] }
 0x13a   :  { %1888 = vmatpush.msrb.mxu3 %v6862_v32  ;;  %1683 = vmatpush.msrb.mxu0 %v6918_v21  ;;  %v6996_v40 = vand.u32 4294901760, %v844_v3  ;;  %v680_v9 = vmul.f32 1.442695, %v660_v50 }
 0x13b   :  { %1764 = vmatpush.msrb.mxu1 %v1763_v59  ;;  %1845 = vmatpush.msrb.mxu2 %v6914_v10  ;;  %v6993_v59 = vsub.f32 %v846_v30, %v6963_v60  ;;  %v1792_v30 = vsub.f32 %v6958_v56, %v9216_v42 }
 0x13c   :  { %1890 = vmatpush.msrb.mxu3 %v6874_v37  ;;  %1685 = vmatpush.msrb.mxu0 %v6935_v62  ;;  %v7018_v42 = vsub.f32 %v844_v3, %v6996_v40  ;;  %4914 = vpow2.f32 %v680_v9 }
 0x13d   :  { %1770 = vmatpush.msrb.mxu1 %v1769_v53  ;;  %1848 = vmatpush.msrb.mxu2 %v6927_v63  ;;  %v7007_v53 = vsub.f32 %v845_v38, %v6981_v2  ;;  %v7020_v38 = vand.u32 4294901760, %v842_v20  ;;  %v1793_v3 = vand.u32 4294901760, %v1792_v30  ;;  %v9459_v47 = vand.u32 4294901760, %v6993_v59 }
 0x13e   :  { %1892 = vmatpush.msrb.mxu3 %v6885_v17  ;;  %1687 = vmatpush.msrb.mxu0 %v6949_v24 }
 0x13f   :  { %1776 = vmatpush.msrb.mxu1 %v1775_v36  ;;  %1851 = vmatpush.msrb.mxu2 %v6940_v5  ;;  %v7037_v36 = vand.u32 4294901760, %v841_v55  ;;  %v7048_v30 = vsub.f32 %v842_v20, %v7020_v38  ;;  %v9461_v29 = vand.u32 4294901760, %v7007_v53 }
 0x140   :  { %1894 = vmatpush.msrb.mxu3 %v6900_v14  ;;  %1917 = vmatpush.msra.mxu0 %v1707_v0  ;;  %v1798_v0 = vsub.f32 %v6974_v23, %v9218_v51  ;;  %v656_v51 = vsub.f32 %v5106_v22, %v7015_v43  ;;  %v9460_v22 = vand.u32 4294901760, %v6798_v34  ;;  %v9226_v43 = vand.u32 4294901760, %v7035_v26 }
 0x141   :  { %708 = vadd.xlane.f32.xlu1 %v4913_v57  ;;  %1782 = vmatpush.msrb.mxu1 %v1781_v31  ;;  %v840_v57 = vld [vmem:[#allocation3 + $0x358] sm:$0xff]  ;;  %v9458_v31 = vand.u32 4294901760, %v6785_v16  ;;  %v2086_v16 = vsub.f32 %v6993_v59, %v9459_v47  ;;  %v2081_v47 = vand.u32 4294901760, %v2080_v12  ;;  %v2092_v20 = vsub.f32 %v7007_v53, %v9461_v29 }
 0x142   :  { %1854 = vmatpush.msrb.mxu2 %v6958_v56  ;;  %1896 = vmatpush.msrb.mxu3 %v6918_v21  ;;  %v7050_v9 = vand.u32 4294901760, %v840_v57  ;;  %v1799_v50 = vand.u32 4294901760, %v1798_v0  ;;  %v7064_v61 = vsub.f32 %v841_v55, %v7037_v36  ;;  %v672_v21 = vmul.f32 1.442695, %v656_v51 }
 0x143   :  { %1611 = vmatmul.f32.gmra.mxu2 %v6728_v52  ;;  %1921 = vmatpush.msra.mxu0 %v9458_v31  ;;  %v7053_v31 = vand.u32 4294901760, %v6984_v18  ;;  %v2087_v34 = vand.u32 4294901760, %v2086_v16  ;;  %v9463_v0 = vand.u32 4294901760, %v6816_v33  ;;  %v9224_v29 = vand.u32 4294901760, %v7048_v30 }
 0x144   :  { %1788 = vmatpush.msrb.mxu1 %v1787_v13  ;;  %1857 = vmatpush.msrb.mxu2 %v6974_v23  ;;  %v839_v13 = vld [vmem:[#allocation3 + $0x2f0] sm:$0xff]  ;;  %v7079_v51 = vsub.f32 %v840_v57, %v7050_v9  ;;  %v2104_v57 = vsub.f32 %v7035_v26, %v9226_v43  ;;  %4916 = vpow2.f32 %v672_v21 }
 0x145   :  { %1898 = vmatpush.msrb.mxu3 %v6935_v62  ;;  %1493 = vmatmul.f32.gmra.mxu0 %v6744_v54  ;;  %v838_v62 = vld [vmem:[#allocation3 + $0x88] sm:$0xff]  ;;  %v7069_v12 = vand.u32 4294901760, %v839_v13  ;;  %v7083_v16 = vsub.f32 %v6984_v18, %v7053_v31 }
 0x146   :  { %1652 = vmatmul.f32.gmra.mxu3 %v6728_v52  ;;  %1925 = vmatpush.msra.mxu0 %v9460_v22  ;;  %v9462_v52 = vand.u32 4294901760, %v6744_v54  ;;  %v837_v22 = vld [vmem:[#allocation3 + $0xd0] sm:$0xff]  ;;  %v4915_v54 = vpop.eup %4914  ;;  %v7085_v33 = vand.u32 4294901760, %v838_v62  ;;  %v9227_v21 = vand.u32 4294901760, %v7079_v51 }
 0x147   :  { %2029 = vmatpush.msra.mxu2 %v6951_v28  ;;  %1794 = vmatpush.msrb.mxu1 %v1793_v3  ;;  %v9464_v3 = vand.u32 4294901760, %v7018_v42  ;;  %v7096_v18 = vsub.f32 %v839_v13, %v7069_v12  ;;  %v9228_v13 = vand.u32 4294901760, %v7083_v16 }
 0x148   :  { %1900 = vmatpush.msrb.mxu3 %v6949_v24  ;;  %1538 = vmatmul.f32.gmra.mxu1 %v9462_v52  ;;  %v9465_v52 = vand.u32 4294901760, %v6829_v27  ;;  %v836_v27 = vld [vmem:[#allocation3 + $0x208] sm:$0xff] }
 0x149   :  { %1929 = vmatpush.msra.mxu0 %v9463_v0  ;;  %2031 = vmatpush.msra.mxu2 %v6963_v60  ;;  %v2098_v55 = vsub.f32 %v7018_v42, %v9464_v3  ;;  %v2093_v0 = vand.u32 4294901760, %v2092_v20  ;;  %v9225_v3 = vand.u32 4294901760, %v7064_v61 }
 0x14a   :  { %2082 = vmatpush.msra.mxu3 %v2081_v47  ;;  %1800 = vmatpush.msrb.mxu1 %v1799_v50  ;;  %v7098_v50 = vand.u32 4294901760, %v837_v22  ;;  %v613_v47 = vld [vmem:[#allocation8 + $0x28] sm:$0xff]  ;;  %v4917_v43 = vpop.eup %4916 }
 0x14b   :  { %1933 = vmatpush.msra.mxu0 %v9465_v52  ;;  %2033 = vmatpush.msra.mxu2 %v6981_v2  ;;  %v2099_v20 = vand.u32 4294901760, %v2098_v55  ;;  %v2110_v52 = vsub.f32 %v7048_v30, %v9224_v29  ;;  %v2105_v55 = vand.u32 4294901760, %v2104_v57  ;;  %v835_v29 = vld [vmem:[#allocation3 + $0x3a0] sm:$0xff] }
 0x14c   :  { %1988 = vmatpush.msra.mxu1 %v6760_v8  ;;  %2088 = vmatpush.msra.mxu3 %v2087_v34  ;;  %v9466_v8 = vand.u32 4294901760, %v6836_v39  ;;  %v7110_v34 = vsub.f32 %v838_v62, %v7085_v33  ;;  %v9467_v39 = vand.u32 4294901760, %v6849_v11  ;;  %v9229_v62 = vand.u32 4294901760, %v7096_v18 }
 0x14d   :  { %712 = vadd.xlane.f32.xlu1 %v4915_v54  ;;  %2035 = vmatpush.msra.mxu2 %v6996_v40  ;;  %v2116_v54 = vsub.f32 %v7064_v61, %v9225_v3  ;;  %v9468_v11 = vand.u32 4294901760, %v6865_v46  ;;  %v2111_v57 = vand.u32 4294901760, %v2110_v52  ;;  %v834_v3 = vld [vmem:[#allocation3 + $0x90] sm:$0xff]  ;;  %v9469_v46 = vand.u32 4294901760, %v6877_v15  ;;  %v833_v15 = vld [vmem:[#allocation3 + $0x240] sm:$0xff] }
 0x14e   :  { %1937 = vmatpush.msra.mxu0 %v9466_v8  ;;  %1990 = vmatpush.msra.mxu1 %v6765_v4  ;;  %v7117_v8 = vand.u32 4294901760, %v836_v27  ;;  %v7119_v4 = vand.u32 4294901760, %v613_v47 }
 0x14f   :  { %2094 = vmatpush.msra.mxu3 %v2093_v0  ;;  %2037 = vmatpush.msra.mxu2 %v7009_v1  ;;  %v7125_v0 = vsub.f32 %v837_v22, %v7098_v50  ;;  %v2133_v22 = vand.u32 4294901760, %v7110_v34  ;;  %v2117_v52 = vand.u32 4294901760, %v2116_v54  ;;  %v9470_v54 = vand.u32 4294901760, %v6889_v49 }
 0x150   :  { %1941 = vmatpush.msra.mxu0 %v9467_v39  ;;  %1992 = vmatpush.msra.mxu1 %v6781_v35  ;;  %v2122_v39 = vsub.f32 %v7079_v51, %v9227_v21  ;;  %v1691_v35 = vsub.f32 %v7083_v16, %v9228_v13  ;;  %v2128_v21 = vsub.f32 %v7096_v18, %v9229_v62  ;;  %v7154_v13 = vand.u32 4294901760, %v834_v3  ;;  %v832_v62 = vld [vmem:[#allocation3 + $0x230] sm:$0xff] }
 0x151   :  { %2100 = vmatpush.msra.mxu3 %v2099_v20  ;;  %2039 = vmatpush.msra.mxu2 %v7020_v38  ;;  %v7138_v20 = vand.u32 4294901760, %v835_v29  ;;  %v7168_v49 = vand.u32 4294901760, %v833_v15 }
 0x152   :  { %1945 = vmatpush.msra.mxu0 %v9468_v11  ;;  %1994 = vmatpush.msra.mxu1 %v6792_v58  ;;  %v7143_v11 = vsub.f32 %v836_v27, %v7117_v8  ;;  %v7146_v58 = vsub.f32 %v613_v47, %v7119_v4  ;;  %v2123_v27 = vand.u32 4294901760, %v2122_v39  ;;  %v2134_v47 = vsub.f32 %v7110_v34, %v2133_v22 }
 0x153   :  { %2106 = vmatpush.msra.mxu3 %v2105_v55  ;;  %2041 = vmatpush.msra.mxu2 %v7037_v36  ;;  %v2139_v55 = vand.u32 4294901760, %v7125_v0  ;;  %v2129_v39 = vand.u32 4294901760, %v2128_v21 }
 0x154   :  { %1949 = vmatpush.msra.mxu0 %v9469_v46  ;;  %1996 = vmatpush.msra.mxu1 %v6803_v7  ;;  %v1692_v7 = vand.u32 4294901760, %v1691_v35  ;;  %v7163_v46 = vsub.f32 %v835_v29, %v7138_v20  ;;  %v7177_v35 = vsub.f32 %v834_v3, %v7154_v13 }
 0x155   :  { %2112 = vmatpush.msra.mxu3 %v2111_v57  ;;  %704 = vadd.xlane.f32.xlu1 %v4917_v43  ;;  %v2145_v43 = vand.u32 4294901760, %v7143_v11  ;;  %v1698_v57 = vand.u32 4294901760, %v7146_v58  ;;  %v2140_v29 = vsub.f32 %v7125_v0, %v2139_v55 }
 0x156   :  { %1953 = vmatpush.msra.mxu0 %v9470_v54  ;;  %1998 = vmatpush.msra.mxu1 %v6813_v44  ;;  %v9471_v44 = vand.u32 4294901760, %v6904_v6  ;;  %v2135_v6 = vand.u32 4294901760, %v2134_v47  ;;  %v2151_v54 = vand.u32 4294901760, %v7163_v46 }
 0x157   :  { %2043 = vmatpush.msra.mxu2 %v7050_v9  ;;  %2118 = vmatpush.msra.mxu3 %v2117_v52  ;;  %v7180_v52 = vand.u32 4294901760, %v832_v62  ;;  %v2146_v3 = vsub.f32 %v7143_v11, %v2145_v43  ;;  %v1699_v21 = vsub.f32 %v7146_v58, %v1698_v57 }
 0x158   :  { %1957 = vmatpush.msra.mxu0 %v9471_v44  ;;  %2000 = vmatpush.msra.mxu1 %v6826_v19  ;;  %v9472_v19 = vand.u32 4294901760, %v6914_v10  ;;  %v2157_v10 = vand.u32 4294901760, %v7177_v35  ;;  %v9474_v44 = vand.u32 4294901760, %v6940_v5 }
 0x159   :  { %2045 = vmatpush.msra.mxu2 %v7069_v12  ;;  %2124 = vmatpush.msra.mxu3 %v2123_v27  ;;  %v7194_v27 = vsub.f32 %v833_v15, %v7168_v49  ;;  %v7202_v47 = vsub.f32 %v832_v62, %v7180_v52  ;;  %v2152_v15 = vsub.f32 %v7163_v46, %v2151_v54  ;;  %v9475_v62 = vand.u32 4294901760, %v6958_v56 }
 0x15a   :  { %1693 = vmatmul.f32.vlgmr.msrb.gmra.mxu0 %v1692_v7  ;;  %2002 = vmatpush.msra.mxu1 %v6843_v41  ;;  %v2141_v41 = vand.u32 4294901760, %v2140_v29  ;;  %v9473_v7 = vand.u32 4294901760, %v6927_v63  ;;  %v1700_v63 = vand.u32 4294901760, %v1699_v21  ;;  %v7235_v21 = vld [vmem:[#allocation2] sm:$0xff] }
 0x15b   :  { %1961 = vmatpush.msra.mxu0 %v9472_v19  ;;  %2047 = vmatpush.msra.mxu2 %v7085_v33  ;;  %v2163_v29 = vand.u32 4294901760, %v7194_v27  ;;  %v2169_v5 = vand.u32 4294901760, %v7202_v47  ;;  %v9476_v19 = vand.u32 4294901760, %v7083_v16 }
 0x15c   :  { %2130 = vmatpush.msra.mxu3 %v2129_v39  ;;  %1802 = vmatmul.f32.vlgmr.msrb.gmra.mxu1 %v7053_v31  ;;  %v2147_v39 = vand.u32 4294901760, %v2146_v3  ;;  %v9477_v3 = vand.u32 4294901760, %v6974_v23 }
 0x15d   :  { %1965 = vmatpush.msra.mxu0 %v9473_v7  ;;  %2004 = vmatpush.msra.mxu1 %v6853_v25  ;;  %v2158_v25 = vsub.f32 %v7177_v35, %v2157_v10  ;;  %v9480_v7 = vld [vmem:[#allocation43_spill] sm:$0xff] }
 0x15e   :  { %2049 = vmatpush.msra.mxu2 %v7098_v50  ;;  %2136 = vmatpush.msra.mxu3 %v2135_v6  ;;  %v2164_v6 = vsub.f32 %v7194_v27, %v2163_v29 }
 0x15f   :  { %1969 = vmatpush.msra.mxu0 %v9474_v44  ;;  %2006 = vmatpush.msra.mxu1 %v6862_v32  ;;  %v2153_v32 = vand.u32 4294901760, %v2152_v15  ;;  %v2159_v56 = vand.u32 4294901760, %v2158_v25  ;;  %v9482_v25 = vand.u32 4294901760, %v7007_v53 }
 0x160   :  { %2051 = vmatpush.msra.mxu2 %v7117_v8  ;;  %2142 = vmatpush.msra.mxu3 %v2141_v41  ;;  %v2165_v23 = vand.u32 4294901760, %v2164_v6  ;;  %v9478_v41 = vld [vmem:[#allocation45_spill] sm:$0xff]  ;;  %v9487_v6 = vand.u32 4294901760, %v7079_v51 }
 0x161   :  { %1860 = vmatmul.f32.vlgmr.msrb.gmra.mxu2 %v7083_v16  ;;  %1973 = vmatpush.msra.mxu0 %v9475_v62 }
 0x162   :  { %2008 = vmatpush.msra.mxu1 %v6874_v37  ;;  %2053 = vmatpush.msra.mxu2 %v7138_v20  ;;  %v2170_v37 = vsub.f32 %v7202_v47, %v2169_v5 }
 0x163   :  { %2148 = vmatpush.msra.mxu3 %v2147_v39  ;;  %1701 = vmatmul.f32.gmra.mxu0 %v1700_v63  ;;  %v9481_v39 = vand.u32 4294901760, %v6993_v59 }
 0x164   :  { %1904 = vmatmul.f32.vlgmr.msrb.gmra.mxu3 %v9476_v19  ;;  %1977 = vmatpush.msra.mxu0 %v9477_v3  ;;  %v2171_v16 = vand.u32 4294901760, %v2170_v37  ;;  %v9488_v19 = vand.u32 4294901760, %v7096_v18  ;;  %v862_v37 = vld [vmem:[#allocation3 + $0x20] sm:$0xff] }
 0x165   :  { %2010 = vmatpush.msra.mxu1 %v6885_v17  ;;  %2055 = vmatpush.msra.mxu2 %v7154_v13  ;;  %v7241_v17 = vand.u32 4294901760, %v6691_v48 }
 0x166   :  { %2154 = vmatpush.msra.mxu3 %v2153_v32  ;;  %1806 = vmatmul.f32.gmra.mxu1 %v7119_v4 }
 0x167   :  { %2184 = vmatpush.msrb.mxu0 %v6977_v45  ;;  %2012 = vmatpush.msra.mxu1 %v6900_v14  ;;  %v9479_v14 = vand.u32 4294901760, %v6977_v45  ;;  %v7254_v15 = vsub.f32 %v6691_v48, %v7241_v17  ;;  %v615_v48 = vld [vmem:[#allocation8 + $0x38] sm:$0xff] }
 0x168   :  { %2057 = vmatpush.msra.mxu2 %v7168_v49  ;;  %2160 = vmatpush.msra.mxu3 %v2159_v56 }
 0x169   :  { %2187 = vmatpush.msrb.mxu0 %v6993_v59  ;;  %3908 = vrot.lane.b32.xlu2 %v7235_v21, %s5193_s0  ;;  %v2062_v62 = vand.u32 4294901760, %v7254_v15  ;;  %v7273_v59 = vand.u32 4294901760, %v615_v48 }
 0x16a   :  { %2014 = vmatpush.msra.mxu1 %v9478_v41  ;;  %2059 = vmatpush.msra.mxu2 %v7180_v52  ;;  %v950_v44 = vpop.f32.mrf.mxu0 }
 0x16b   :  { %2166 = vmatpush.msra.mxu3 %v2165_v23  ;;  %2190 = vmatpush.msrb.mxu0 %v7007_v53  ;;  %v9484_v53 = vand.u32 4294901760, %v7035_v26  ;;  %v858_v23 = vld [vmem:[#allocation3 + $0x3b8] sm:$0xff] }
 0x16c   :  { %2289 = vmatpush.msrb.mxu2 %v9479_v14  ;;  %2016 = vmatpush.msra.mxu1 %v9480_v7 }
 0x16d   :  { %2172 = vmatpush.msra.mxu3 %v2171_v16  ;;  %1979 = vmatmul.f32.vlgmr.msra.gmra.mxu0 %v7053_v31  ;;  %v5107_v16 = vld [vmem:[#allocation8 + $0x30] sm:$0xff] }
 0x16e   :  { %2193 = vmatpush.msrb.mxu0 %v7018_v42  ;;  %2293 = vmatpush.msrb.mxu2 %v9481_v39  ;;  %v1059_v45 = vpop.f32.mrf.mxu1 }
 0x16f   :  { %2360 = vmatpush.msrb.mxu3 %v6951_v28  ;;  %2018 = vmatpush.msra.mxu1 %v6949_v24  ;;  %v1060_v63 = vadd.f32 %v1059_v45, %v950_v44  ;;  %v9483_v24 = vand.u32 4294901760, %v7018_v42  ;;  %v7289_v42 = vsub.f32 %v615_v48, %v7273_v59  ;;  %v856_v44 = vld [vmem:[#allocation3 + $0x328] sm:$0xff] }
 0x170   :  { %2020 = vmatmul.f32.vlgmr.msra.gmra.mxu1 %v7053_v31  ;;  %2196 = vmatpush.msrb.mxu0 %v7035_v26 }
 0x171   :  { %2242 = vmatpush.msrb.mxu1 %v6951_v28  ;;  %2297 = vmatpush.msrb.mxu2 %v9482_v25  ;;  %v2063_v28 = vsub.f32 %v7254_v15, %v2062_v62 }
 0x172   :  { %2362 = vmatpush.msrb.mxu3 %v6963_v60  ;;  %2199 = vmatpush.msrb.mxu0 %v7048_v30 }
 0x173   :  { %2244 = vmatpush.msrb.mxu1 %v6963_v60  ;;  %2301 = vmatpush.msrb.mxu2 %v9483_v24  ;;  %v2064_v26 = vand.u32 4294901760, %v2063_v28  ;;  %v855_v24 = vld [vmem:[#allocation3 + $0x178] sm:$0xff] }
 0x174   :  { %2364 = vmatpush.msrb.mxu3 %v6981_v2  ;;  %1865 = vmatmul.f32.gmra.mxu2 %v7146_v58  ;;  %v9486_v58 = vand.u32 4294901760, %v7064_v61 }
 0x175   :  { %2202 = vmatpush.msrb.mxu0 %v7064_v61  ;;  %2246 = vmatpush.msrb.mxu1 %v6981_v2  ;;  %v9485_v2 = vand.u32 4294901760, %v7048_v30 }
 0x176   :  { %2305 = vmatpush.msrb.mxu2 %v9484_v53  ;;  %2366 = vmatpush.msrb.mxu3 %v6996_v40  ;;  %v958_v60 = vpop.f32.mrf.mxu0 }
 0x177   :  { %1910 = vmatmul.f32.gmra.mxu3 %v1698_v57  ;;  %2205 = vmatpush.msrb.mxu0 %v7079_v51  ;;  %v863_v51 = vld [vmem:[#allocation3 + $0xe8] sm:$0xff] }
 0x178   :  { %2248 = vmatpush.msrb.mxu1 %v6996_v40  ;;  %2309 = vmatpush.msrb.mxu2 %v9485_v2  ;;  %v9240_v40 = vand.u32 4294901760, %v7289_v42  ;;  %v7326_v56 = vand.u32 4294901760, %v863_v51  ;;  %v854_v2 = vld [vmem:[#allocation3 + $0xe0] sm:$0xff] }
 0x179   :  { %2368 = vmatpush.msrb.mxu3 %v7009_v1  ;;  %2208 = vmatpush.msrb.mxu0 %v7096_v18  ;;  %v1063_v31 = vpop.f32.mrf.mxu1 }
 0x17a   :  { %2250 = vmatpush.msrb.mxu1 %v7009_v1  ;;  %2313 = vmatpush.msrb.mxu2 %v9486_v58  ;;  %v7299_v57 = vadd.f32 %v1063_v31, %v958_v60  ;;  %v1117_v32 = vpop.f32.mrf.mxu2 }
 0x17b   :  { %2370 = vmatpush.msrb.mxu3 %v7020_v38  ;;  %2211 = vmatpush.msrb.mxu0 %v7110_v34  ;;  %v1118_v30 = vadd.f32 %v1117_v32, %v1060_v63  ;;  %v861_v34 = vld [vmem:[#allocation3 + $0x40] sm:$0xff] }
 0x17c   :  { %2252 = vmatpush.msrb.mxu1 %v7020_v38  ;;  %2317 = vmatpush.msrb.mxu2 %v9487_v6  ;;  %v2071_v38 = vsub.f32 %v7289_v42, %v9240_v40 }
 0x17d   :  { %2372 = vmatpush.msrb.mxu3 %v7037_v36  ;;  %2065 = vmatmul.f32.vlgmr.msra.gmra.mxu2 %v2064_v26  ;;  %v1161_v61 = vpop.f32.mrf.mxu3  ;;  %v7421_v26 = vand.u32 4294901760, %v855_v24 }
 0x17e   :  { %2214 = vmatpush.msrb.mxu0 %v7125_v0  ;;  %2254 = vmatpush.msrb.mxu1 %v7037_v36  ;;  %v1162_v1 = vadd.f32 %v1161_v61, %v1118_v30  ;;  %v2072_v18 = vand.u32 4294901760, %v2071_v38  ;;  %v7342_v0 = vsub.f32 %v863_v51, %v7326_v56  ;;  %v7436_v30 = vand.u32 4294901760, %v854_v2 }
 0x17f   :  { %2321 = vmatpush.msrb.mxu2 %v9488_v19  ;;  %2374 = vmatpush.msrb.mxu3 %v7050_v9 }
 0x180   :  { %3911 = vrot.lane.b32.xlu0 %v7235_v21, %s5194_s28  ;;  %2174 = vmatmul.f32.vlgmr.msra.gmra.mxu3 %v7241_v17  ;;  %v1236_v3 = vpop.f32.mrf.mxu0 }
 0x181   :  { %2217 = vmatpush.msrb.mxu0 %v7143_v11  ;;  %2256 = vmatpush.msrb.mxu1 %v7050_v9  ;;  %v1237_v36 = vadd.f32 %v1236_v3, %v1162_v1  ;;  %v859_v11 = vld [vmem:[#allocation3 + $0x2b8] sm:$0xff]  ;;  %v852_v1 = vld [vmem:[#allocation3 + $0x70] sm:$0xff]  ;;  %v7450_v3 = vsub.f32 %v855_v24, %v7421_v26 }
 0x182   :  { %2325 = vmatpush.msrb.mxu2 %v2133_v22  ;;  %2376 = vmatpush.msrb.mxu3 %v7069_v12  ;;  %v860_v22 = vld [vmem:[#allocation3 + $0x248] sm:$0xff] }
 0x183   :  { %2220 = vmatpush.msrb.mxu0 %v7163_v46  ;;  %2258 = vmatpush.msrb.mxu1 %v7069_v12  ;;  %v1277_v21 = vpop.f32.mrf.mxu1  ;;  %v7338_v12 = vand.u32 4294901760, %v862_v37  ;;  %v7363_v46 = vand.u32 4294901760, %v859_v11 }
 0x184   :  { %2329 = vmatpush.msrb.mxu2 %v2139_v55  ;;  %2378 = vmatpush.msrb.mxu3 %v7085_v33  ;;  %v7331_v9 = vadd.f32 %v1277_v21, %v1237_v36  ;;  %v7351_v55 = vpop.xlane.xlu1 %636  ;;  %v851_v36 = vld [vmem:[#allocation3 + $0x220] sm:$0xff] }
 0x185   :  { %2223 = vmatpush.msrb.mxu0 %v7177_v35  ;;  %2260 = vmatpush.msrb.mxu1 %v7085_v33  ;;  %v7347_v33 = vand.u32 4294901760, %v861_v34  ;;  %9490 = vst [vmem:[#allocation43_spill] sm:$0xff] %v7351_v55  ;;  %v662_v41 = vsub.f32 %v5107_v16, %v7351_v55  ;;  %v857_v35 = vld [vmem:[#allocation3 + $0x260] sm:$0xff]  ;;  %v850_v16 = vld [vmem:[#allocation3 + $0x318] sm:$0xff] }
 0x186   :  { %9489 = vst [vmem:[#allocation45_spill] sm:$0xff] %v7331_v9  ;;  %2333 = vmatpush.msrb.mxu2 %v2145_v43  ;;  %2380 = vmatpush.msrb.mxu3 %v7098_v50  ;;  %v7353_v43 = vand.u32 4294901760, %v860_v22  ;;  %v7395_v45 = vand.u32 4294901760, %v857_v35 }
 0x187   :  { %2073 = vmatmul.f32.gmra.mxu2 %v2072_v18  ;;  %2226 = vmatpush.msrb.mxu0 %v7194_v27  ;;  %v7370_v14 = vsub.f32 %v861_v34, %v7347_v33  ;;  %v7390_v27 = vsub.f32 %v859_v11, %v7363_v46  ;;  %v7459_v34 = vand.u32 4294901760, %v852_v1 }
 0x188   :  { %2262 = vmatpush.msrb.mxu1 %v7098_v50  ;;  %2337 = vmatpush.msrb.mxu2 %v2151_v54  ;;  %v7358_v50 = vsub.f32 %v862_v37, %v7338_v12  ;;  %v9244_v54 = vand.u32 4294901760, %v7342_v0  ;;  %v7424_v31 = vsub.f32 %v857_v35, %v7395_v45 }
 0x189   :  { %2382 = vmatpush.msrb.mxu3 %v7117_v8  ;;  %1983 = vmatmul.f32.gmra.mxu0 %v7119_v4  ;;  %v9242_v48 = vand.u32 4294901760, %v7370_v14  ;;  %v9237_v60 = vand.u32 4294901760, %v7390_v27 }
 0x18a   :  { %2178 = vmatmul.f32.gmra.mxu3 %v7273_v59  ;;  %2229 = vmatpush.msrb.mxu0 %v7202_v47  ;;  %v9243_v7 = vand.u32 4294901760, %v7358_v50  ;;  %v9234_v51 = vand.u32 4294901760, %v7424_v31 }
 0x18b   :  { %2264 = vmatpush.msrb.mxu1 %v7117_v8  ;;  %2341 = vmatpush.msrb.mxu2 %v2157_v10  ;;  %v7375_v8 = vsub.f32 %v860_v22, %v7353_v43  ;;  %v2476_v61 = vsub.f32 %v7390_v27, %v9237_v60  ;;  %v7462_v22 = vsub.f32 %v854_v2, %v7436_v30  ;;  %v876_v60 = vld [vmem:[#allocation3 + $0x58] sm:$0xff] }
 0x18c   :  { %2384 = vmatpush.msrb.mxu3 %v7138_v20  ;;  %2024 = vmatmul.f32.gmra.mxu1 %v7119_v4  ;;  %v7380_v4 = vand.u32 4294901760, %v858_v23  ;;  %v2458_v47 = vsub.f32 %v7358_v50, %v9243_v7  ;;  %v2488_v35 = vsub.f32 %v7424_v31, %v9234_v51  ;;  %v7490_v2 = vsub.f32 %v852_v1, %v7459_v34 }
 0x18d   :  { %2401 = vmatpush.msra.mxu0 %v7326_v56  ;;  %2266 = vmatpush.msrb.mxu1 %v7138_v20  ;;  %v1122_v10 = vpop.f32.mrf.mxu2  ;;  %v2452_v20 = vsub.f32 %v7342_v0, %v9244_v54  ;;  %v9239_v25 = vand.u32 4294901760, %v7375_v8  ;;  %v7579_v7 = vand.u32 4294901760, %v876_v60 }
 0x18e   :  { %2345 = vmatpush.msrb.mxu2 %v2163_v29  ;;  %2386 = vmatpush.msrb.mxu3 %v7154_v13  ;;  %v1123_v39 = vadd.f32 %v1122_v10, %v7299_v57  ;;  %v684_v29 = vmul.f32 1.442695, %v662_v41  ;;  %v853_v57 = vld [vmem:[#allocation3 + $0x300] sm:$0xff]  ;;  %v2459_v32 = vand.u32 4294901760, %v2458_v47  ;;  %v7469_v41 = vpop.xlane.xlu2 %640  ;;  %v7474_v10 = vand.u32 4294901760, %v851_v36 }
 0x18f   :  { %2403 = vmatpush.msra.mxu0 %v7338_v12  ;;  %2268 = vmatpush.msrb.mxu1 %v7154_v13  ;;  %v7400_v13 = vand.u32 4294901760, %v856_v44  ;;  %v2453_v53 = vand.u32 4294901760, %v2452_v20  ;;  %v2470_v58 = vsub.f32 %v7375_v8, %v9239_v25  ;;  %v7446_v38 = vand.u32 4294901760, %v853_v57  ;;  %9491 = vst [vmem:[#allocation48_spill] sm:$0xff] %v7469_v41 }
 0x190   :  { %2349 = vmatpush.msrb.mxu2 %v2169_v5  ;;  %2388 = vmatpush.msrb.mxu3 %v7168_v49  ;;  %v1167_v63 = vpop.f32.mrf.mxu3  ;;  %v7411_v5 = vsub.f32 %v858_v23, %v7380_v4  ;;  %4918 = vpow2.f32 %v684_v29  ;;  %v2477_v23 = vand.u32 4294901760, %v2476_v61  ;;  %v7486_v47 = vand.u32 4294901760, %v850_v16 }
 0x191   :  { %2351 = vmatmul.f32.vlgmr.msrb.gmra.mxu2 %v7241_v17  ;;  %2405 = vmatpush.msra.mxu0 %v7347_v33  ;;  %v7403_v28 = vadd.f32 %v1167_v63, %v1123_v39  ;;  %v7478_v39 = vsub.f32 %v853_v57, %v7446_v38  ;;  %v2489_v57 = vand.u32 4294901760, %v2488_v35  ;;  %v7504_v1 = vsub.f32 %v851_v36, %v7474_v10  ;;  %v848_v36 = vld [vmem:[#allocation3 + $0x130] sm:$0xff] }
 0x192   :  { %2556 = vmatpush.msra.mxu2 %v7342_v0  ;;  %2270 = vmatpush.msrb.mxu1 %v7168_v49  ;;  %v2464_v49 = vsub.f32 %v7370_v14, %v9242_v48  ;;  %v9236_v6 = vand.u32 4294901760, %v7411_v5  ;;  %9492 = vst [vmem:[#allocation49_spill] sm:$0xff] %v7486_v47  ;;  %v7518_v35 = vsub.f32 %v850_v16, %v7486_v47 }
 0x193   :  { %2390 = vmatpush.msrb.mxu3 %v7180_v52  ;;  %2232 = vmatmul.f32.vlgmr.msrb.gmra.mxu0 %v7254_v15  ;;  %v2471_v15 = vand.u32 4294901760, %v2470_v58  ;;  %v849_v58 = vld [vmem:[#allocation3 + $0x200] sm:$0xff]  ;;  %v9233_v61 = vand.u32 4294901760, %v7478_v39 }
 0x194   :  { %2392 = vmatmul.f32.vlgmr.msrb.gmra.mxu3 %v7241_v17  ;;  %2407 = vmatpush.msra.mxu0 %v7353_v43  ;;  %v7432_v17 = vsub.f32 %v856_v44, %v7400_v13  ;;  %v2482_v21 = vsub.f32 %v7411_v5, %v9236_v6  ;;  %v9231_v44 = vand.u32 4294901760, %v7450_v3 }
 0x195   :  { %2559 = vmatpush.msra.mxu2 %v7358_v50  ;;  %2614 = vmatpush.msra.mxu3 %v7326_v56 }
 0x196   :  { %2272 = vmatpush.msrb.mxu1 %v7180_v52  ;;  %2409 = vmatpush.msra.mxu0 %v7363_v46  ;;  %v1322_v19 = vpop.f32.mrf.mxu2  ;;  %v2465_v52 = vand.u32 4294901760, %v2464_v49  ;;  %v4919_v37 = vpop.eup %4918  ;;  %v2483_v24 = vand.u32 4294901760, %v2482_v21  ;;  %v7494_v49 = vld [vmem:[#allocation8 + $0x40] sm:$0xff]  ;;  %v7514_v21 = vand.u32 4294901760, %v849_v58 }
 0x197   :  { %2276 = vmatmul.f32.vlgmr.msrb.gmra.mxu1 %v2062_v62  ;;  %2562 = vmatpush.msra.mxu2 %v7370_v14  ;;  %v9232_v62 = vand.u32 4294901760, %v7432_v17 }
 0x198   :  { %2454 = vmatpush.msra.mxu1 %v2453_v53  ;;  %2616 = vmatpush.msra.mxu3 %v7338_v12  ;;  %v9230_v53 = vand.u32 4294901760, %v7462_v22  ;;  %9494 = vst [vmem:[#allocation51_spill] sm:$0xff] %v7514_v21 }
 0x199   :  { %2411 = vmatpush.msra.mxu0 %v7380_v4  ;;  %2565 = vmatpush.msra.mxu2 %v7375_v8  ;;  %v1431_v18 = vpop.f32.mrf.mxu3  ;;  %v2494_v29 = vsub.f32 %v7432_v17, %v9232_v62 }
 0x19a   :  { %2460 = vmatpush.msra.mxu1 %v2459_v32  ;;  %2618 = vmatpush.msra.mxu3 %v7347_v33  ;;  %v7464_v11 = vadd.f32 %v1431_v18, %v1322_v19  ;;  %v2500_v32 = vsub.f32 %v7450_v3, %v9231_v44  ;;  %v878_v44 = vld [vmem:[#allocation3 + $0x198] sm:$0xff] }
 0x19b   :  { %2413 = vmatpush.msra.mxu0 %v7395_v45  ;;  %2568 = vmatpush.msra.mxu2 %v7390_v27 }
 0x19c   :  { %2466 = vmatpush.msra.mxu1 %v2465_v52  ;;  %2620 = vmatpush.msra.mxu3 %v7353_v43  ;;  %v1240_v20 = vpop.f32.mrf.mxu0  ;;  %v2495_v52 = vand.u32 4294901760, %v2494_v29 }
 0x19d   :  { %716 = vadd.xlane.f32.xlu2 %v4919_v37  ;;  %2415 = vmatpush.msra.mxu0 %v7400_v13  ;;  %v1241_v63 = vadd.f32 %v1240_v20, %v7403_v28  ;;  %v664_v28 = vsub.f32 %v7494_v49, %v7469_v41  ;;  %v2506_v37 = vsub.f32 %v7462_v22, %v9230_v53  ;;  %v879_v20 = vld [vmem:[#allocation3 + $0x2e8] sm:$0xff]  ;;  %v9238_v53 = vand.u32 4294901760, %v7504_v1 }
 0x19e   :  { %2472 = vmatpush.msra.mxu1 %v2471_v15  ;;  %2571 = vmatpush.msra.mxu2 %v7411_v5  ;;  %v7533_v62 = vand.u32 4294901760, %v879_v20 }
 0x19f   :  { %2622 = vmatpush.msra.mxu3 %v7363_v46  ;;  %2417 = vmatpush.msra.mxu0 %v7421_v26  ;;  %v688_v29 = vmul.f32 1.442695, %v664_v28  ;;  %v7531_v28 = vand.u32 4294901760, %v848_v36 }
 0x1a0   :  { %2478 = vmatpush.msra.mxu1 %v2477_v23  ;;  %2574 = vmatpush.msra.mxu2 %v7424_v31  ;;  %v1281_v19 = vpop.f32.mrf.mxu1  ;;  %v1330_v18 = vpop.f32.mrf.mxu2  ;;  %v9235_v23 = vand.u32 4294901760, %v7490_v2 }
 0x1a1   :  { %2624 = vmatpush.msra.mxu3 %v7380_v4  ;;  %2419 = vmatpush.msra.mxu0 %v7436_v30  ;;  %v7508_v15 = vadd.f32 %v1281_v19, %v1241_v63  ;;  %v2512_v19 = vsub.f32 %v7478_v39, %v9233_v61  ;;  %v7540_v61 = vsub.f32 %v849_v58, %v7514_v21  ;;  %4920 = vpow2.f32 %v688_v29 }
 0x1a2   :  { %2484 = vmatpush.msra.mxu1 %v2483_v24  ;;  %2577 = vmatpush.msra.mxu2 %v7432_v17  ;;  %v2501_v24 = vand.u32 4294901760, %v2500_v32  ;;  %v2518_v32 = vsub.f32 %v7490_v2, %v9235_v23  ;;  %v2524_v58 = vsub.f32 %v7504_v1, %v9238_v53  ;;  %v7557_v6 = vsub.f32 %v848_v36, %v7531_v28  ;;  %v7570_v36 = vld [vmem:[#allocation8 + $0x50] sm:$0xff] }
 0x1a3   :  { %9493 = vst [vmem:[#allocation50_spill] sm:$0xff] %v7508_v15  ;;  %2626 = vmatpush.msra.mxu3 %v7395_v45  ;;  %2421 = vmatpush.msra.mxu0 %v7446_v38  ;;  %v1435_v63 = vpop.f32.mrf.mxu3  ;;  %v2513_v23 = vand.u32 4294901760, %v2512_v19  ;;  %v873_v15 = vld [vmem:[#allocation3 + $0x1c8] sm:$0xff] }
 0x1a4   :  { %2490 = vmatpush.msra.mxu1 %v2489_v57  ;;  %2580 = vmatpush.msra.mxu2 %v7450_v3  ;;  %v7527_v16 = vadd.f32 %v1435_v63, %v1330_v18  ;;  %v2507_v57 = vand.u32 4294901760, %v2506_v37  ;;  %v9241_v18 = vand.u32 4294901760, %v7518_v35  ;;  %v7545_v63 = vand.u32 4294901760, %v878_v44  ;;  %v7548_v37 = vpop.xlane.xlu2 %644  ;;  %9496 = vst [vmem:[#allocation53_spill] sm:$0xff] %v7570_v36 }
 0x1a5   :  { %2628 = vmatpush.msra.mxu3 %v7400_v13  ;;  %2423 = vmatpush.msra.mxu0 %v7459_v34  ;;  %9495 = vst [vmem:[#allocation52_spill] sm:$0xff] %v7548_v37  ;;  %v2519_v19 = vand.u32 4294901760, %v2518_v32  ;;  %v875_v32 = vld [vmem:[#allocation3 + $0x1d0] sm:$0xff]  ;;  %v2525_v48 = vand.u32 4294901760, %v2524_v58 }
 0x1a6   :  { %2496 = vmatpush.msra.mxu1 %v2495_v52  ;;  %2583 = vmatpush.msra.mxu2 %v7462_v22  ;;  %v877_v52 = vld [vmem:[#allocation3 + $0x120] sm:$0xff]  ;;  %v2530_v53 = vsub.f32 %v7518_v35, %v9241_v18 }
 0x1a7   :  { %2630 = vmatpush.msra.mxu3 %v7421_v26  ;;  %2425 = vmatpush.msra.mxu0 %v7474_v10  ;;  %v1489_v51 = vpop.f32.mrf.mxu0  ;;  %v4921_v54 = vpop.eup %4920 }
 0x1a8   :  { %2502 = vmatpush.msra.mxu1 %v2501_v24  ;;  %2586 = vmatpush.msra.mxu2 %v7478_v39  ;;  %v1490_v29 = vadd.f32 %v1489_v51, %v7464_v11  ;;  %v7560_v24 = vsub.f32 %v879_v20, %v7533_v62  ;;  %v7567_v11 = vand.u32 4294901760, %v877_v52  ;;  %v666_v20 = vsub.f32 %v7570_v36, %v7548_v37  ;;  %v874_v37 = vld [vmem:[#allocation3 + $0x2d0] sm:$0xff] }
 0x1a9   :  { %2632 = vmatpush.msra.mxu3 %v7436_v30  ;;  %2427 = vmatpush.msra.mxu0 %v7486_v47  ;;  %v7594_v55 = vpop.xlane.xlu1 %652  ;;  %v7607_v36 = vand.u32 4294901760, %v874_v37 }
 0x1aa   :  { %2508 = vmatpush.msra.mxu1 %v2507_v57  ;;  %2589 = vmatpush.msra.mxu2 %v7490_v2  ;;  %v1533_v25 = vpop.f32.mrf.mxu1  ;;  %v1608_v40 = vpop.f32.mrf.mxu2  ;;  %v7576_v57 = vsub.f32 %v878_v44, %v7545_v63  ;;  %v7590_v58 = vsub.f32 %v877_v52, %v7567_v11  ;;  %9499 = vst [vmem:[#allocation55_spill] sm:$0xff] %v7594_v55  ;;  %v692_v51 = vmul.f32 1.442695, %v666_v20 }
 0x1ab   :  { %2634 = vmatpush.msra.mxu3 %v7446_v38  ;;  %2429 = vmatpush.msra.mxu0 %v7514_v21  ;;  %v1534_v18 = vadd.f32 %v1533_v25, %v1490_v29  ;;  %v9498_v25 = vand.u32 4294901760, %v7540_v61  ;;  %v7592_v29 = vand.u32 4294901760, %v875_v32  ;;  %v7602_v52 = vpop.xlane.xlu0 %648  ;;  %9503 = vst [vmem:[#allocation58_spill] sm:$0xff] %v7607_v36 }
 0x1ac   :  { %9497 = vst [vmem:[#allocation54_spill] sm:$0xff] %v7576_v57  ;;  %2514 = vmatpush.msra.mxu1 %v2513_v23  ;;  %2592 = vmatpush.msra.mxu2 %v7504_v1  ;;  %4922 = vpow2.f32 %v692_v51 }
 0x1ad   :  { %2636 = vmatpush.msra.mxu3 %v7459_v34  ;;  %2431 = vmatpush.msra.mxu0 %v7531_v28  ;;  %v1609_v44 = vadd.f32 %v1608_v40, %v1534_v18  ;;  %v1649_v41 = vpop.f32.mrf.mxu3  ;;  %v2536_v23 = vsub.f32 %v7540_v61, %v9498_v25  ;;  %v9500_v40 = vand.u32 4294901760, %v7342_v0  ;;  %v2531_v18 = vand.u32 4294901760, %v2530_v53  ;;  %9502 = vst [vmem:[#allocation57_spill] sm:$0xff] %v7602_v52 }
 0x1ae   :  { %2520 = vmatpush.msra.mxu1 %v2519_v19  ;;  %2595 = vmatpush.msra.mxu2 %v7518_v35  ;;  %v7605_v25 = vsub.f32 %v876_v60, %v7579_v7  ;;  %v9504_v0 = vand.u32 4294901760, %v7560_v24  ;;  %v9506_v60 = vand.u32 4294901760, %v7358_v50  ;;  %v7624_v19 = vand.u32 4294901760, %v873_v15 }
 0x1af   :  { %2638 = vmatpush.msra.mxu3 %v7474_v10  ;;  %2661 = vmatpush.msrb.mxu0 %v9500_v40  ;;  %v7600_v9 = vadd.f32 %v1649_v41, %v1609_v44  ;;  %v9505_v41 = vand.u32 4294901760, %v7557_v6  ;;  %v2537_v20 = vand.u32 4294901760, %v2536_v23  ;;  %v7622_v40 = vsub.f32 %v875_v32, %v7592_v29 }
 0x1b0   :  { %720 = vadd.xlane.f32.xlu0 %v4921_v54  ;;  %2526 = vmatpush.msra.mxu1 %v2525_v48  ;;  %v2824_v53 = vsub.f32 %v7560_v24, %v9504_v0  ;;  %v872_v48 = vld [vmem:[#allocation3 + $0x1b0] sm:$0xff]  ;;  %9507 = vst [vmem:[#allocation59_spill] sm:$0xff] %v7624_v19  ;;  %v7635_v23 = vsub.f32 %v874_v37, %v7607_v36  ;;  %v9510_v32 = vand.u32 4294901760, %v7590_v58 }
 0x1b1   :  { %9501 = vst [vmem:[#allocation56_spill] sm:$0xff] %v7600_v9  ;;  %2598 = vmatpush.msra.mxu2 %v7540_v61  ;;  %2640 = vmatpush.msra.mxu3 %v7486_v47  ;;  %v2542_v54 = vsub.f32 %v7557_v6, %v9505_v41  ;;  %v5110_v0 = vld [vmem:[#allocation8 + $0x60] sm:$0xff]  ;;  %v9508_v9 = vand.u32 4294901760, %v7576_v57  ;;  %v7637_v51 = vand.u32 4294901760, %v872_v48  ;;  %v870_v47 = vld [vmem:[#allocation3 + $0x3d8] sm:$0xff] }
 0x1b2   :  { %2355 = vmatmul.f32.gmra.mxu2 %v7273_v59  ;;  %2665 = vmatpush.msrb.mxu0 %v9506_v60  ;;  %v668_v41 = vsub.f32 %v5110_v0, %v7602_v52  ;;  %v7640_v60 = vand.u32 4294901760, %v7494_v49  ;;  %v9509_v0 = vand.u32 4294901760, %v7370_v14  ;;  %v2836_v37 = vsub.f32 %v7590_v58, %v9510_v32  ;;  %v4923_v52 = vpop.eup %4922 }
 0x1b3   :  { %2532 = vmatpush.msra.mxu1 %v2531_v18  ;;  %2601 = vmatpush.msra.mxu2 %v7557_v6  ;;  %v2830_v50 = vsub.f32 %v7576_v57, %v9508_v9  ;;  %v871_v18 = vld [vmem:[#allocation3 + $0x1e8] sm:$0xff]  ;;  %v2825_v9 = vand.u32 4294901760, %v2824_v53  ;;  %v2543_v44 = vand.u32 4294901760, %v2542_v54  ;;  %v9511_v14 = vand.u32 4294901760, %v7289_v42 }
 0x1b4   :  { %2642 = vmatpush.msra.mxu3 %v7514_v21  ;;  %2237 = vmatmul.f32.gmra.mxu0 %v7289_v42  ;;  %v7651_v21 = vsub.f32 %v873_v15, %v7624_v19  ;;  %v7653_v57 = vpop.xlane.xlu1 %708  ;;  %v7658_v54 = vand.u32 4294901760, %v871_v18  ;;  %v9513_v15 = vand.u32 4294901760, %v7605_v25  ;;  %v7672_v42 = vsub.f32 %v7494_v49, %v7640_v60 }
 0x1b5   :  { %2396 = vmatmul.f32.gmra.mxu3 %v7273_v59  ;;  %2669 = vmatpush.msrb.mxu0 %v9509_v0  ;;  %v696_v59 = vmul.f32 1.442695, %v668_v41  ;;  %v2831_v53 = vand.u32 4294901760, %v2830_v50  ;;  %v7668_v41 = vsub.f32 %v872_v48, %v7637_v51  ;;  %v869_v50 = vld [vmem:[#allocation3 + $0x210] sm:$0xff] }
 0x1b6   :  { %2773 = vmatpush.msrb.mxu2 %v7533_v62  ;;  %2538 = vmatpush.msra.mxu1 %v2537_v20  ;;  %v9512_v20 = vand.u32 4294901760, %v7375_v8  ;;  %v2842_v32 = vsub.f32 %v7605_v25, %v9513_v15  ;;  %v7674_v8 = vand.u32 4294901760, %v870_v47  ;;  %v9515_v15 = vand.u32 4294901760, %v7622_v40 }
 0x1b7   :  { %2644 = vmatpush.msra.mxu3 %v7531_v28  ;;  %2282 = vmatmul.f32.gmra.mxu1 %v9511_v14  ;;  %v9514_v14 = vand.u32 4294901760, %v7390_v27  ;;  %v9255_v0 = vand.u32 4294901760, %v7651_v21  ;;  %4924 = vpow2.f32 %v696_v59  ;;  %v7685_v49 = vsub.f32 %v871_v18, %v7658_v54  ;;  %v617_v59 = vld [vmem:[#allocation8 + $0x48] sm:$0xff]  ;;  %v5111_v18 = vld [vmem:[#allocation8 + $0x70] sm:$0xff] }
 0x1b8   :  { %2673 = vmatpush.msrb.mxu0 %v9512_v20  ;;  %2775 = vmatpush.msrb.mxu2 %v7545_v63  ;;  %v2837_v20 = vand.u32 4294901760, %v2836_v37  ;;  %v2848_v48 = vsub.f32 %v7622_v40, %v9515_v15  ;;  %v9516_v27 = vand.u32 4294901760, %v7411_v5  ;;  %v7693_v15 = vand.u32 4294901760, %v869_v50 }
 0x1b9   :  { %2826 = vmatpush.msrb.mxu3 %v2825_v9  ;;  %2544 = vmatpush.msra.mxu1 %v2543_v44  ;;  %v868_v44 = vld [vmem:[#allocation3 + $0x2c8] sm:$0xff]  ;;  %v9517_v9 = vand.u32 4294901760, %v7635_v23 }
 0x1ba   :  { %2677 = vmatpush.msrb.mxu0 %v9514_v14  ;;  %2777 = vmatpush.msrb.mxu2 %v7567_v11  ;;  %v867_v14 = vld [vmem:[#allocation3 + $0x160] sm:$0xff] }
 0x1bb   :  { %2732 = vmatpush.msrb.mxu1 %v7326_v56  ;;  %2832 = vmatpush.msrb.mxu3 %v2831_v53  ;;  %v2843_v56 = vand.u32 4294901760, %v2842_v32  ;;  %v2854_v37 = vsub.f32 %v7635_v23, %v9517_v9  ;;  %v7700_v53 = vsub.f32 %v870_v47, %v7674_v8  ;;  %v9518_v32 = vand.u32 4294901760, %v7424_v31 }
 0x1bc   :  { %724 = vadd.xlane.f32.xlu1 %v4923_v52  ;;  %2681 = vmatpush.msrb.mxu0 %v9516_v27  ;;  %v670_v52 = vsub.f32 %v5111_v18, %v7594_v55  ;;  %v2849_v27 = vand.u32 4294901760, %v2848_v48  ;;  %v2860_v9 = vsub.f32 %v7651_v21, %v9255_v0  ;;  %v7712_v47 = vand.u32 4294901760, %v617_v59 }
 0x1bd   :  { %2734 = vmatpush.msrb.mxu1 %v7338_v12  ;;  %2779 = vmatpush.msrb.mxu2 %v7579_v7  ;;  %v7707_v12 = vand.u32 4294901760, %v868_v44  ;;  %v9519_v31 = vand.u32 4294901760, %v7432_v17  ;;  %v9520_v48 = vand.u32 4294901760, %v7668_v41  ;;  %v7720_v0 = vsub.f32 %v869_v50, %v7693_v15 }
 0x1be   :  { %2838 = vmatpush.msrb.mxu3 %v2837_v20  ;;  %2685 = vmatpush.msrb.mxu0 %v9518_v32  ;;  %v2855_v20 = vand.u32 4294901760, %v2854_v37  ;;  %v700_v55 = vmul.f32 1.442695, %v670_v52  ;;  %v9522_v50 = vand.u32 4294901760, %v7450_v3  ;;  %v2861_v18 = vand.u32 4294901760, %v2860_v9 }
 0x1bf   :  { %2736 = vmatpush.msrb.mxu1 %v7347_v33  ;;  %2781 = vmatpush.msrb.mxu2 %v7592_v29  ;;  %v2866_v32 = vsub.f32 %v7668_v41, %v9520_v48  ;;  %v4925_v33 = vpop.eup %4924  ;;  %v866_v48 = vld [vmem:[#allocation3 + $0x3c8] sm:$0xff]  ;;  %v7735_v52 = vsub.f32 %v868_v44, %v7707_v12  ;;  %v2883_v44 = vand.u32 4294901760, %v7720_v0 }
 0x1c0   :  { %2844 = vmatpush.msrb.mxu3 %v2843_v56  ;;  %2689 = vmatpush.msrb.mxu0 %v9519_v31  ;;  %v7722_v5 = vpop.xlane.xlu1 %712  ;;  %v9521_v56 = vand.u32 4294901760, %v7672_v42  ;;  %v7730_v31 = vand.u32 4294901760, %v867_v14  ;;  %4926 = vpow2.f32 %v700_v55 }
 0x1c1   :  { %2738 = vmatpush.msrb.mxu1 %v7353_v43  ;;  %2783 = vmatpush.msrb.mxu2 %v7607_v36  ;;  %v7743_v36 = vsub.f32 %v617_v59, %v7712_v47  ;;  %v2867_v9 = vand.u32 4294901760, %v2866_v32  ;;  %v9525_v59 = vand.u32 4294901760, %v7700_v53  ;;  %v2889_v55 = vand.u32 4294901760, %v7735_v52 }
 0x1c2   :  { %v2435_v17 = vsub.f32 %v7672_v42, %v9521_v56  ;;  %2850 = vmatpush.msrb.mxu3 %v2849_v27  ;;  %2693 = vmatpush.msrb.mxu0 %v9522_v50  ;;  %v1494_v43 = vpop.f32.mrf.mxu0  ;;  %v9523_v56 = vand.u32 4294901760, %v7685_v49  ;;  %v865_v27 = vld [vmem:[#allocation3 + $0x3a8] sm:$0xff]  ;;  %v7747_v50 = vand.u32 4294901760, %v866_v48  ;;  %4928 = vlog2.f32 %v7653_v57 }
 0x1c3   :  { %2740 = vmatpush.msrb.mxu1 %v7363_v46  ;;  %2785 = vmatpush.msrb.mxu2 %v7624_v19  ;;  %v1495_v3 = vadd.f32 %v1494_v43, %v7527_v16  ;;  %v9524_v46 = vand.u32 4294901760, %v7462_v22  ;;  %v2878_v19 = vsub.f32 %v7700_v53, %v9525_v59  ;;  %v7756_v16 = vsub.f32 %v867_v14, %v7730_v31 }
 0x1c4   :  { %v2872_v37 = vsub.f32 %v7685_v49, %v9523_v56  ;;  %2856 = vmatpush.msrb.mxu3 %v2855_v20  ;;  %728 = vadd.xlane.f32.xlu1 %v4925_v33  ;;  %v2436_v56 = vand.u32 4294901760, %v2435_v17  ;;  %v864_v20 = vld [vmem:[#allocation3 + $0x288] sm:$0xff]  ;;  %v7760_v33 = vand.u32 4294901760, %v865_v27  ;;  %v2442_v14 = vand.u32 4294901760, %v7743_v36 }
 0x1c5   :  { %2697 = vmatpush.msrb.mxu0 %v9524_v46  ;;  %2742 = vmatpush.msrb.mxu1 %v7380_v4  ;;  %v1539_v32 = vpop.f32.mrf.mxu1  ;;  %v9526_v4 = vand.u32 4294901760, %v7478_v39  ;;  %v7771_v46 = vsub.f32 %v866_v48, %v7747_v50  ;;  %v2895_v39 = vand.u32 4294901760, %v7756_v16  ;;  %v2890_v48 = vsub.f32 %v7735_v52, %v2889_v55 }
 0x1c6   :  { %2787 = vmatpush.msrb.mxu2 %v7637_v51  ;;  %2862 = vmatpush.msrb.mxu3 %v2861_v18  ;;  %v1540_v22 = vadd.f32 %v1539_v32, %v1495_v3  ;;  %v1612_v43 = vpop.f32.mrf.mxu2  ;;  %v2873_v17 = vand.u32 4294901760, %v2872_v37  ;;  %v2884_v18 = vsub.f32 %v7720_v0, %v2883_v44  ;;  %v7773_v3 = vand.u32 4294901760, %v864_v20 }
 0x1c7   :  { %2701 = vmatpush.msrb.mxu0 %v9526_v4  ;;  %2744 = vmatpush.msrb.mxu1 %v7395_v45  ;;  %v2879_v45 = vand.u32 4294901760, %v2878_v19  ;;  %v9527_v32 = vand.u32 4294901760, %v7490_v2  ;;  %v2443_v2 = vsub.f32 %v7743_v36, %v2442_v14  ;;  %v9529_v19 = vand.u32 4294901760, %v7504_v1 }
 0x1c8   :  { %2789 = vmatpush.msrb.mxu2 %v7658_v54  ;;  %2868 = vmatpush.msrb.mxu3 %v2867_v9  ;;  %v1613_v59 = vadd.f32 %v1612_v43, %v1540_v22  ;;  %v7784_v9 = vsub.f32 %v865_v27, %v7760_v33  ;;  %v705_v22 = vpop.xlane.xlu1 %704  ;;  %v2885_v27 = vand.u32 4294901760, %v2884_v18  ;;  %v2901_v43 = vand.u32 4294901760, %v7771_v46 }
 0x1c9   :  { %2437 = vmatmul.f32.vlgmr.msra.gmra.mxu0 %v2436_v56  ;;  %2746 = vmatpush.msrb.mxu1 %v7400_v13  ;;  %v1653_v37 = vpop.f32.mrf.mxu3  ;;  %v4927_v13 = vpop.eup %4926  ;;  %v7798_v4 = vsub.f32 %v864_v20, %v7773_v3  ;;  %v2896_v57 = vsub.f32 %v7756_v16, %v2895_v39  ;;  %4930 = vlog2.f32 %v705_v22  ;;  %v9530_v1 = vand.u32 4294901760, %v7518_v35 }
 0x1ca   :  { %2705 = vmatpush.msrb.mxu0 %v9527_v32  ;;  %2791 = vmatpush.msrb.mxu2 %v7674_v8  ;;  %v7786_v56 = vadd.f32 %v1653_v37, %v1613_v59  ;;  %v2444_v20 = vand.u32 4294901760, %v2443_v2  ;;  %v2902_v18 = vsub.f32 %v7771_v46, %v2901_v43  ;;  %v9531_v35 = vand.u32 4294901760, %v7540_v61 }
 0x1cb   :  { %2874 = vmatpush.msrb.mxu3 %v2873_v17  ;;  %2546 = vmatmul.f32.vlgmr.msra.gmra.mxu1 %v7640_v60  ;;  %v2891_v17 = vand.u32 4294901760, %v2890_v48  ;;  %v2913_v59 = vand.u32 4294901760, %v7798_v4  ;;  %v2897_v37 = vand.u32 4294901760, %v2896_v57  ;;  %v9532_v48 = vand.u32 4294901760, %v7672_v42 }
 0x1cc   :  { %9528 = vst [vmem:[#allocation60_spill] sm:$0xff] %v7786_v56  ;;  %2709 = vmatpush.msrb.mxu0 %v9529_v19  ;;  %2748 = vmatpush.msrb.mxu1 %v7421_v26  ;;  %v2907_v26 = vand.u32 4294901760, %v7784_v9  ;;  %4932 = vlog2.f32 %v7722_v5 }
 0x1cd   :  { %2793 = vmatpush.msrb.mxu2 %v7693_v15  ;;  %2880 = vmatpush.msrb.mxu3 %v2879_v45  ;;  %v4929_v45 = vpop.eup %4928  ;;  %v2914_v61 = vsub.f32 %v7798_v4, %v2913_v59 }
 0x1ce   :  { %732 = vadd.xlane.f32.xlu1 %v4927_v13  ;;  %2713 = vmatpush.msrb.mxu0 %v9530_v1  ;;  %v741_v22 = vmul.f32 0.6931472, %v4929_v45  ;;  %v9533_v13 = vand.u32 4294901760, %v7557_v6  ;;  %v9536_v1 = vld [vmem:[#allocation54_spill] sm:$0xff] }
 0x1cf   :  { %2750 = vmatpush.msrb.mxu1 %v7436_v30  ;;  %2795 = vmatpush.msrb.mxu2 %v7707_v12  ;;  %v2908_v30 = vsub.f32 %v7784_v9, %v2907_v26  ;;  %v4931_v32 = vpop.eup %4930 }
 0x1d0   :  { %2886 = vmatpush.msrb.mxu3 %v2885_v27  ;;  %2604 = vmatmul.f32.vlgmr.msra.gmra.mxu2 %v7672_v42  ;;  %v737_v2 = vmul.f32 0.6931472, %v4931_v32  ;;  %v9535_v27 = vld [vmem:[#allocation44_spill] sm:$0xff] }
 0x1d1   :  { %2717 = vmatpush.msrb.mxu0 %v9531_v35  ;;  %2752 = vmatpush.msrb.mxu1 %v7446_v38  ;;  %v2903_v38 = vand.u32 4294901760, %v2902_v18  ;;  %v2909_v42 = vand.u32 4294901760, %v2908_v30  ;;  %v770_v57 = vadd.f32 %v741_v22, %v9535_v27  ;;  %v9540_v30 = vld [vmem:[#allocation51_spill] sm:$0xff] }
 0x1d2   :  { %2797 = vmatpush.msrb.mxu2 %v7730_v31  ;;  %2892 = vmatpush.msrb.mxu3 %v2891_v17  ;;  %v2915_v17 = vand.u32 4294901760, %v2914_v61  ;;  %v619_v61 = vld [vmem:[#allocation8 + $0x58] sm:$0xff] }
 0x1d3   :  { %2445 = vmatmul.f32.gmra.mxu0 %v2444_v20  ;;  %2648 = vmatmul.f32.vlgmr.msra.gmra.mxu3 %v9532_v48  ;;  %v9537_v20 = vld [vmem:[#allocation49_spill] sm:$0xff]  ;;  %v9541_v48 = vld [vmem:[#allocation56_spill] sm:$0xff] }
 0x1d4   :  { %2721 = vmatpush.msrb.mxu0 %v9533_v13  ;;  %2754 = vmatpush.msrb.mxu1 %v7459_v34  ;;  %v9534_v34 = vld [vmem:[#allocation53_spill] sm:$0xff]  ;;  %v7851_v22 = vsub.f32 %v9541_v48, %v770_v57  ;;  %v9542_v13 = vand.u32 4294901760, %v9536_v1 }
 0x1d5   :  { %2799 = vmatpush.msrb.mxu2 %v7747_v50  ;;  %2898 = vmatpush.msrb.mxu3 %v2897_v37  ;;  %v7835_v19 = vand.u32 4294901760, %v9534_v34  ;;  %v9539_v37 = vand.u32 4294901760, %v7560_v24 }
 0x1d6   :  { %2550 = vmatmul.f32.gmra.mxu1 %v7712_v47  ;;  %2928 = vmatpush.msra.mxu0 %v7560_v24  ;;  %v9543_v24 = vld [vmem:[#allocation45_spill] sm:$0xff]  ;;  %v4134_v48 = vrot.slane %v7851_v22, 3 }
 0x1d7   :  { %2756 = vmatpush.msrb.mxu1 %v7474_v10  ;;  %2801 = vmatpush.msrb.mxu2 %v7760_v33  ;;  %v1694_v6 = vpop.f32.mrf.mxu0  ;;  %v9538_v10 = vld [vmem:[#allocation47_spill] sm:$0xff]  ;;  %v7848_v32 = vsub.f32 %v9534_v34, %v7835_v19  ;;  %v3938_v34 = vrot.slane %v7851_v22, 7 }
 0x1d8   :  { %2904 = vmatpush.msrb.mxu3 %v2903_v38  ;;  %2931 = vmatpush.msra.mxu0 %v9536_v1  ;;  %v768_v45 = vadd.f32 %v737_v2, %v9538_v10  ;;  %v9546_v1 = vand.u32 4294901760, %v7622_v40  ;;  %v4087_v10 = vrot.slane %v7851_v22, 2 }
 0x1d9   :  { %2758 = vmatpush.msrb.mxu1 %v9537_v20  ;;  %2803 = vmatpush.msrb.mxu2 %v7773_v3  ;;  %v1803_v18 = vpop.f32.mrf.mxu1  ;;  %v2806_v2 = vand.u32 4294901760, %v7848_v32 }
 0x1da   :  { %2910 = vmatpush.msrb.mxu3 %v2909_v42  ;;  %2934 = vmatpush.msra.mxu0 %v7590_v58  ;;  %v1804_v35 = vadd.f32 %v1803_v18, %v1694_v6  ;;  %v7860_v38 = vsub.f32 %v9543_v24, %v768_v45  ;;  %v9544_v42 = vand.u32 4294901760, %v7590_v58  ;;  %v9547_v45 = vand.u32 4294901760, %v7635_v23  ;;  %v9549_v24 = vld [vmem:[#allocation58_spill] sm:$0xff] }
 0x1db   :  { %3033 = vmatpush.msra.mxu2 %v9539_v37  ;;  %2760 = vmatpush.msrb.mxu1 %v9540_v30 }
 0x1dc   :  { %2916 = vmatpush.msrb.mxu3 %v2915_v17  ;;  %2723 = vmatmul.f32.vlgmr.msrb.gmra.mxu0 %v7640_v60  ;;  %v3992_v57 = vrot.slane %v7860_v38, 1  ;;  %v4086_v18 = vrot.slane %v7860_v38, 3 }
 0x1dd   :  { %2937 = vmatpush.msra.mxu0 %v7605_v25  ;;  %3037 = vmatpush.msra.mxu2 %v9542_v13  ;;  %v4933_v13 = vpop.eup %4932 }
 0x1de   :  { %3104 = vmatpush.msra.mxu3 %v7533_v62  ;;  %2762 = vmatpush.msrb.mxu1 %v7531_v28  ;;  %v7871_v28 = vand.u32 4294901760, %v619_v61  ;;  %v7903_v20 = vsel %vm3939_vm2, %v7851_v22, %v3992_v57  ;;  %v7917_v30 = vsel %vm3939_vm2, %v4087_v10, %v4086_v18  ;;  %v4228_v57 = vrot.slane %v7851_v22, 5  ;;  %v894_v18 = vld [vmem:[#allocation3 + $0xb8] sm:$0xff] }
 0x1df   :  { %2764 = vmatmul.f32.vlgmr.msrb.gmra.mxu1 %v7640_v60  ;;  %2940 = vmatpush.msra.mxu0 %v7622_v40  ;;  %v9545_v60 = vand.u32 4294901760, %v7605_v25  ;;  %v4039_v40 = vrot.slane %v7860_v38, 2 }
 0x1e0   :  { %2986 = vmatpush.msra.mxu1 %v7533_v62  ;;  %3041 = vmatpush.msra.mxu2 %v9544_v42  ;;  %v1702_v6 = vpop.f32.mrf.mxu0  ;;  %v7878_v62 = vsel %vm3939_vm2, %v3938_v34, %v7860_v38  ;;  %v7895_v5 = vsub.f32 %v619_v61, %v7871_v28  ;;  %v4133_v42 = vrot.slane %v7860_v38, 4  ;;  %v4181_v34 = vrot.slane %v7851_v22, 4 }
 0x1e1   :  { %3106 = vmatpush.msra.mxu3 %v7545_v63  ;;  %2943 = vmatpush.msra.mxu0 %v7635_v23 }
 0x1e2   :  { %2988 = vmatpush.msra.mxu1 %v7545_v63  ;;  %3045 = vmatpush.msra.mxu2 %v9545_v60  ;;  %v2807_v63 = vsub.f32 %v7848_v32, %v2806_v2  ;;  %v9268_v23 = vand.u32 4294901760, %v7895_v5 }
 0x1e3   :  { %3108 = vmatpush.msra.mxu3 %v7567_v11  ;;  %2609 = vmatmul.f32.gmra.mxu2 %v7743_v36  ;;  %v1807_v58 = vpop.f32.mrf.mxu1 }
 0x1e4   :  { %2946 = vmatpush.msra.mxu0 %v7651_v21  ;;  %2990 = vmatpush.msra.mxu1 %v7567_v11  ;;  %v7888_v25 = vadd.f32 %v1807_v58, %v1702_v6  ;;  %v1861_v27 = vpop.f32.mrf.mxu2  ;;  %v4040_v11 = vrot.slane %v7851_v22, 1  ;;  %v2808_v36 = vand.u32 4294901760, %v2807_v63  ;;  %v4180_v6 = vrot.slane %v7860_v38, 5  ;;  %v9551_v58 = vld [vmem:[#allocation59_spill] sm:$0xff] }
 0x1e5   :  { %3049 = vmatpush.msra.mxu2 %v9546_v1  ;;  %3110 = vmatpush.msra.mxu3 %v7579_v7  ;;  %v1862_v17 = vadd.f32 %v1861_v27, %v1804_v35  ;;  %v7935_v63 = vsel %vm3939_vm2, %v4134_v48, %v4133_v42  ;;  %v745_v1 = vmul.f32 0.6931472, %v4933_v13  ;;  %v893_v48 = vld [vmem:[#allocation3 + $0x378] sm:$0xff] }
 0x1e6   :  { %2654 = vmatmul.f32.gmra.mxu3 %v2442_v14  ;;  %2949 = vmatpush.msra.mxu0 %v7668_v41  ;;  %v7914_v37 = vsel %vm3939_vm2, %v4040_v11, %v4039_v40  ;;  %v7938_v27 = vsel %vm3939_vm2, %v4181_v34, %v4180_v6  ;;  %v9552_v40 = vand.u32 4294901760, %v7685_v49  ;;  %v9554_v13 = vld [vmem:[#allocation46_spill] sm:$0xff] }
 0x1e7   :  { %2992 = vmatpush.msra.mxu1 %v7579_v7  ;;  %3053 = vmatpush.msra.mxu2 %v9547_v45  ;;  %v1905_v35 = vpop.f32.mrf.mxu3  ;;  %v9548_v7 = vand.u32 4294901760, %v7651_v21  ;;  %v9550_v21 = vand.u32 4294901760, %v7668_v41  ;;  %v2815_v41 = vsub.f32 %v7895_v5, %v9268_v23 }
 0x1e8   :  { %3112 = vmatpush.msra.mxu3 %v7592_v29  ;;  %2952 = vmatpush.msra.mxu0 %v7685_v49  ;;  %v1906_v14 = vadd.f32 %v1905_v35, %v1862_v17  ;;  %v895_v17 = vld [vmem:[#allocation3 + $0x38] sm:$0xff]  ;;  %v4274_v35 = vrot.slane %v7860_v38, 7  ;;  %v9553_v49 = vand.u32 4294901760, %v7700_v53 }
 0x1e9   :  { %2994 = vmatpush.msra.mxu1 %v7592_v29  ;;  %3057 = vmatpush.msra.mxu2 %v9548_v7  ;;  %v4227_v29 = vrot.slane %v7860_v38, 6  ;;  %v2816_v38 = vand.u32 4294901760, %v2815_v41 }
 0x1ea   :  { %3114 = vmatpush.msra.mxu3 %v9549_v24  ;;  %2955 = vmatpush.msra.mxu0 %v7700_v53  ;;  %v1980_v61 = vpop.f32.mrf.mxu0  ;;  %v7977_v53 = vand.u32 4294901760, %v893_v48 }
 0x1eb   :  { %2996 = vmatpush.msra.mxu1 %v9549_v24  ;;  %3061 = vmatpush.msra.mxu2 %v9550_v21  ;;  %v1981_v60 = vadd.f32 %v1980_v61, %v1906_v14  ;;  %v7950_v45 = vsel %vm3939_vm2, %v4228_v57, %v4227_v29  ;;  %v7959_v14 = vand.u32 4294901760, %v895_v17  ;;  %v772_v24 = vadd.f32 %v745_v1, %v9554_v13  ;;  %v889_v21 = vld [vmem:[#allocation3 + $0x180] sm:$0xff] }
 0x1ec   :  { %3116 = vmatpush.msra.mxu3 %v9551_v58  ;;  %2809 = vmatmul.f32.vlgmr.msrb.gmra.mxu2 %v2808_v36  ;;  %v4275_v36 = vrot.slane %v7851_v22, 6  ;;  %v7966_v22 = vand.u32 4294901760, %v894_v18 }
 0x1ed   :  { %2958 = vmatpush.msra.mxu0 %v7720_v0  ;;  %2998 = vmatpush.msra.mxu1 %v9551_v58  ;;  %v2021_v11 = vpop.f32.mrf.mxu1  ;;  %v7980_v61 = vsub.f32 %v895_v17, %v7959_v14 }
 0x1ee   :  { %3065 = vmatpush.msra.mxu2 %v9552_v40  ;;  %3118 = vmatpush.msra.mxu3 %v7637_v51  ;;  %v2022_v10 = vadd.f32 %v2021_v11, %v1981_v60  ;;  %v7962_v7 = vsel %vm3939_vm2, %v4275_v36, %v4274_v35  ;;  %v886_v35 = vld [vmem:[#allocation3 + $0x258] sm:$0xff] }
 0x1ef   :  { %2918 = vmatmul.f32.vlgmr.msrb.gmra.mxu3 %v7835_v19  ;;  %2961 = vmatpush.msra.mxu0 %v7735_v52  ;;  %v9272_v42 = vand.u32 4294901760, %v7980_v61 }
 0x1f0   :  { %3000 = vmatpush.msra.mxu1 %v7637_v51  ;;  %3069 = vmatpush.msra.mxu2 %v9553_v49  ;;  %v892_v51 = vld [vmem:[#allocation3 + $0x250] sm:$0xff]  ;;  %v7990_v52 = vsub.f32 %v2022_v10, %v772_v24 }
 0x1f1   :  { %3120 = vmatpush.msra.mxu3 %v7658_v54  ;;  %2964 = vmatpush.msra.mxu0 %v7756_v16  ;;  %v7988_v0 = vand.u32 4294901760, %v892_v51 }
 0x1f2   :  { %3002 = vmatpush.msra.mxu1 %v7658_v54  ;;  %3073 = vmatpush.msra.mxu2 %v2883_v44  ;;  %v7984_v54 = vsub.f32 %v894_v18, %v7966_v22  ;;  %v890_v44 = vld [vmem:[#allocation3 + $0x170] sm:$0xff]  ;;  %v3941_v60 = vrot.slane %v7990_v52, 6  ;;  %v3994_v17 = vrot.slane %v7990_v52, 7  ;;  %v4183_v11 = vrot.slane %v7990_v52, 3 }
 0x1f3   :  { %3122 = vmatpush.msra.mxu3 %v7674_v8  ;;  %2967 = vmatpush.msra.mxu0 %v7771_v46  ;;  %v8010_v34 = vand.u32 4294901760, %v890_v44  ;;  %v8013_v29 = vsub.f32 %v892_v51, %v7988_v0  ;;  %v3196_v46 = vsub.f32 %v7980_v61, %v9272_v42 }
 0x1f4   :  { %3004 = vmatpush.msra.mxu1 %v7674_v8  ;;  %3077 = vmatpush.msra.mxu2 %v2889_v55  ;;  %v891_v8 = vld [vmem:[#allocation3 + $0x3d0] sm:$0xff]  ;;  %v8076_v36 = vsel %vm3942_vm11, %v3994_v17, %v7903_v20  ;;  %v8092_v13 = vsel %vm3942_vm11, %v4183_v11, %v7938_v27  ;;  %v8106_v27 = vand.u32 4294901760, %v886_v35  ;;  %v882_v11 = vld [vmem:[#allocation3 + $0x398] sm:$0xff] }
 0x1f5   :  { %3124 = vmatpush.msra.mxu3 %v7693_v15  ;;  %2817 = vmatmul.f32.gmra.mxu2 %v2816_v38  ;;  %v8004_v16 = vand.u32 4294901760, %v891_v8  ;;  %v9266_v1 = vand.u32 4294901760, %v8013_v29  ;;  %v8050_v41 = vsub.f32 %v890_v44, %v8010_v34  ;;  %v4230_v44 = vrot.slane %v7990_v52, 4  ;;  %v883_v17 = vld [vmem:[#allocation3 + $0x390] sm:$0xff] }
 0x1f6   :  { %2970 = vmatpush.msra.mxu0 %v7784_v9  ;;  %3006 = vmatpush.msra.mxu1 %v7693_v15  ;;  %v7999_v15 = vsub.f32 %v893_v48, %v7977_v53  ;;  %9558 = vst [vmem:[#allocation49_spill] sm:$0xff] %v8106_v27 }
 0x1f7   :  { %3081 = vmatpush.msra.mxu2 %v2895_v39  ;;  %3126 = vmatpush.msra.mxu3 %v7707_v12  ;;  %v1866_v55 = vpop.f32.mrf.mxu2  ;;  %v9270_v39 = vand.u32 4294901760, %v7984_v54  ;;  %v8037_v9 = vsub.f32 %v891_v8, %v8004_v16 }
 0x1f8   :  { %2727 = vmatmul.f32.gmra.mxu0 %v7712_v47  ;;  %2922 = vmatmul.f32.gmra.mxu3 %v7871_v28  ;;  %v1867_v6 = vadd.f32 %v1866_v55, %v7888_v25  ;;  %v4277_v55 = vrot.slane %v7990_v52, 5 }
 0x1f9   :  { %2973 = vmatpush.msra.mxu0 %v7798_v4  ;;  %3008 = vmatpush.msra.mxu1 %v7707_v12  ;;  %v888_v12 = vld [vmem:[#allocation3 + $0xf0] sm:$0xff]  ;;  %v4089_v4 = vrot.slane %v7990_v52, 1 }
 0x1fa   :  { %3085 = vmatpush.msra.mxu2 %v2901_v43  ;;  %3128 = vmatpush.msra.mxu3 %v7730_v31  ;;  %v1911_v25 = vpop.f32.mrf.mxu3  ;;  %v9269_v43 = vand.u32 4294901760, %v7999_v15  ;;  %v8046_v57 = vand.u32 4294901760, %v888_v12 }
 0x1fb   :  { %2768 = vmatmul.f32.gmra.mxu1 %v7712_v47  ;;  %3145 = vmatpush.msrb.mxu0 %v7959_v14  ;;  %v8018_v58 = vadd.f32 %v1911_v25, %v1867_v6  ;;  %v8032_v47 = vsub.f32 %v7984_v54, %v9270_v39  ;;  %v8080_v49 = vsel %vm3942_vm11, %v4089_v4, %v7917_v30  ;;  %v9263_v30 = vand.u32 4294901760, %v8050_v41  ;;  %v884_v25 = vld [vmem:[#allocation3 + $0x1a0] sm:$0xff] }
 0x1fc   :  { %3010 = vmatpush.msra.mxu1 %v7730_v31  ;;  %3089 = vmatpush.msra.mxu2 %v2907_v26  ;;  %v8034_v31 = vand.u32 4294901760, %v889_v21  ;;  %v8041_v26 = vsel %vm3942_vm11, %v3941_v60, %v7878_v62  ;;  %9556 = vst [vmem:[#allocation44_spill] sm:$0xff] %v8046_v57  ;;  %v887_v62 = vld [vmem:[#allocation3 + $0x2d8] sm:$0xff]  ;;  %v3208_v40 = vsub.f32 %v7999_v15, %v9269_v43  ;;  %v8142_v4 = vand.u32 4294901760, %v884_v25 }
 0x1fd   :  { %3130 = vmatpush.msra.mxu3 %v7747_v50  ;;  %3147 = vmatpush.msrb.mxu0 %v7966_v22  ;;  %v8084_v38 = vand.u32 4294901760, %v887_v62  ;;  %v3203_v20 = vand.u32 4294901760, %v8032_v47  ;;  %v8102_v24 = vsub.f32 %v888_v12, %v8046_v57  ;;  %v8129_v12 = vsel %vm3942_vm11, %v4230_v44, %v7950_v45 }
 0x1fe   :  { %9555 = vst [vmem:[#allocation53_spill] sm:$0xff] %v8034_v31  ;;  %3012 = vmatpush.msra.mxu1 %v7747_v50  ;;  %3093 = vmatpush.msra.mxu2 %v2913_v59  ;;  %v8058_v50 = vsel %vm3942_vm11, %v7990_v52, %v7914_v37  ;;  %v4136_v59 = vrot.slane %v7990_v52, 2  ;;  %v9265_v37 = vand.u32 4294901760, %v8037_v9  ;;  %v8072_v10 = vsub.f32 %v889_v21, %v8034_v31 }
 0x1ff   :  { %3132 = vmatpush.msra.mxu3 %v7760_v33  ;;  %3095 = vmatmul.f32.vlgmr.msra.gmra.mxu2 %v7835_v19  ;;  %9557 = vst [vmem:[#allocation54_spill] sm:$0xff] %v8084_v38  ;;  %v3209_v6 = vand.u32 4294901760, %v3208_v40  ;;  %v8123_v52 = vsub.f32 %v887_v62, %v8084_v38  ;;  %v3226_v45 = vsub.f32 %v8050_v41, %v9263_v30  ;;  %v8164_v44 = vand.u32 4294901760, %v882_v11 }
 0x200   :  { %3149 = vmatpush.msrb.mxu0 %v7977_v53  ;;  %3300 = vmatpush.msrb.mxu2 %v7980_v61  ;;  %v2066_v18 = vpop.f32.mrf.mxu2  ;;  %v8088_v48 = vsel %vm3942_vm11, %v4136_v59, %v7935_v63  ;;  %v885_v63 = vld [vmem:[#allocation3 + $0xa8] sm:$0xff]  ;;  %v3220_v21 = vsub.f32 %v8037_v9, %v9265_v37  ;;  %v8146_v59 = vsub.f32 %v886_v35, %v8106_v27 }
 0x201   :  { %3014 = vmatpush.msra.mxu1 %v7760_v33  ;;  %3134 = vmatpush.msra.mxu3 %v7773_v3  ;;  %v3197_v33 = vand.u32 4294901760, %v3196_v46  ;;  %v8120_v60 = vand.u32 4294901760, %v885_v63  ;;  %v8133_v46 = vsel %vm3942_vm11, %v4277_v55, %v7962_v7  ;;  %v9261_v7 = vand.u32 4294901760, %v8102_v24  ;;  %9563 = vst [vmem:[#allocation58_spill] sm:$0xff] %v8164_v44 }
 0x202   :  { %2976 = vmatmul.f32.vlgmr.msra.gmra.mxu0 %v7848_v32  ;;  %3136 = vmatmul.f32.vlgmr.msra.gmra.mxu3 %v7835_v19  ;;  %v3214_v19 = vsub.f32 %v8013_v29, %v9266_v1  ;;  %v8125_v32 = vpop.permute.xlu2 %3908  ;;  %v3227_v55 = vand.u32 4294901760, %v3226_v45 }
 0x203   :  { %3151 = vmatpush.msrb.mxu0 %v7988_v0  ;;  %3303 = vmatpush.msrb.mxu2 %v7984_v54  ;;  %v2175_v51 = vpop.f32.mrf.mxu3  ;;  %9559 = vst [vmem:[#allocation47_spill] sm:$0xff] %v8120_v60  ;;  %v8158_v35 = vsub.f32 %v885_v63, %v8120_v60  ;;  %v9267_v63 = vand.u32 4294901760, %v8146_v59 }
 0x204   :  { %3358 = vmatpush.msrb.mxu3 %v7959_v14  ;;  %3016 = vmatpush.msra.mxu1 %v7773_v3  ;;  %v8108_v8 = vadd.f32 %v2175_v51, %v2066_v18  ;;  %v9262_v3 = vand.u32 4294901760, %v8072_v10  ;;  %9560 = vst [vmem:[#allocation51_spill] sm:$0xff] %v8125_v32  ;;  %v3215_v47 = vand.u32 4294901760, %v3214_v19 }
 0x205   :  { %3020 = vmatmul.f32.vlgmr.msra.gmra.mxu1 %v2806_v2  ;;  %3153 = vmatpush.msrb.mxu0 %v8004_v16  ;;  %v9271_v45 = vand.u32 4294901760, %v8158_v35 }
 0x206   :  { %3198 = vmatpush.msrb.mxu1 %v3197_v33  ;;  %3306 = vmatpush.msrb.mxu2 %v7999_v15  ;;  %v1984_v2 = vpop.f32.mrf.mxu0  ;;  %v3232_v40 = vsub.f32 %v8072_v10, %v9262_v3  ;;  %v8154_v33 = vand.u32 4294901760, %v883_v17  ;;  %v911_v3 = vld [vmem:[#allocation3 + $0x190] sm:$0xff] }
 0x207   :  { %3360 = vmatpush.msrb.mxu3 %v7966_v22  ;;  %3155 = vmatpush.msrb.mxu0 %v8010_v34  ;;  %v1985_v62 = vadd.f32 %v1984_v2, %v8018_v58  ;;  %v3221_v58 = vand.u32 4294901760, %v3220_v21  ;;  %v8172_v21 = vsub.f32 %v884_v25, %v8142_v4  ;;  %v881_v2 = vld [vmem:[#allocation3 + $0x238] sm:$0xff]  ;;  %v3256_v23 = vsub.f32 %v8158_v35, %v9271_v45 }
 0x208   :  { %3204 = vmatpush.msrb.mxu1 %v3203_v20  ;;  %3309 = vmatpush.msrb.mxu2 %v8013_v29  ;;  %9561 = vst [vmem:[#allocation56_spill] sm:$0xff] %v8154_v33  ;;  %v9264_v20 = vand.u32 4294901760, %v8123_v52  ;;  %v880_v25 = vld [vmem:[#allocation3 + $0x1f8] sm:$0xff] }
 0x209   :  { %3362 = vmatpush.msrb.mxu3 %v7977_v53  ;;  %3157 = vmatpush.msrb.mxu0 %v8034_v31  ;;  %v2025_v18 = vpop.f32.mrf.mxu1  ;;  %9564 = vst [vmem:[#allocation59_spill] sm:$0xff] %v8172_v21  ;;  %v8200_v1 = vand.u32 4294901760, %v880_v25 }
 0x20a   :  { %3210 = vmatpush.msrb.mxu1 %v3209_v6  ;;  %3312 = vmatpush.msrb.mxu2 %v8037_v9  ;;  %v8160_v19 = vadd.f32 %v2025_v18, %v1985_v62  ;;  %v2074_v51 = vpop.f32.mrf.mxu2  ;;  %v3238_v6 = vsub.f32 %v8102_v24, %v9261_v7  ;;  %v3233_v62 = vand.u32 4294901760, %v3232_v40  ;;  %v8182_v7 = vsub.f32 %v883_v17, %v8154_v33 }
 0x20b   :  { %3364 = vmatpush.msrb.mxu3 %v7988_v0  ;;  %3159 = vmatpush.msrb.mxu0 %v8046_v57  ;;  %v8191_v40 = vsub.f32 %v882_v11, %v8164_v44  ;;  %v3250_v17 = vsub.f32 %v8146_v59, %v9267_v63  ;;  %9565 = vst [vmem:[#allocation46_spill] sm:$0xff] %v8200_v1  ;;  %v8202_v11 = vand.u32 4294901760, %v911_v3 }
 0x20c   :  { %9562 = vst [vmem:[#allocation45_spill] sm:$0xff] %v8160_v19  ;;  %3216 = vmatpush.msrb.mxu1 %v3215_v47  ;;  %3315 = vmatpush.msrb.mxu2 %v8050_v41  ;;  %v3244_v47 = vsub.f32 %v8123_v52, %v9264_v20  ;;  %v3239_v20 = vand.u32 4294901760, %v3238_v6  ;;  %v9274_v43 = vand.u32 4294901760, %v8182_v7 }
 0x20d   :  { %3366 = vmatpush.msrb.mxu3 %v8004_v16  ;;  %3161 = vmatpush.msrb.mxu0 %v8084_v38  ;;  %v2179_v18 = vpop.f32.mrf.mxu3 }
 0x20e   :  { %3222 = vmatpush.msrb.mxu1 %v3221_v58  ;;  %3318 = vmatpush.msrb.mxu2 %v8072_v10  ;;  %v8184_v30 = vadd.f32 %v2179_v18, %v2074_v51  ;;  %v8188_v58 = vand.u32 4294901760, %v881_v2  ;;  %v9273_v51 = vand.u32 4294901760, %v8172_v21  ;;  %v3245_v63 = vand.u32 4294901760, %v3244_v47 }
 0x20f   :  { %3368 = vmatpush.msrb.mxu3 %v8010_v34  ;;  %3163 = vmatpush.msrb.mxu0 %v8106_v27  ;;  %v3268_v19 = vsub.f32 %v8182_v7, %v9274_v43 }
 0x210   :  { %3228 = vmatpush.msrb.mxu1 %v3227_v55  ;;  %3321 = vmatpush.msrb.mxu2 %v8102_v24  ;;  %v717_v18 = vpop.xlane.xlu2 %716  ;;  %v2233_v37 = vpop.f32.mrf.mxu0  ;;  %v910_v55 = vld [vmem:[#allocation3 + $0x310] sm:$0xff] }
 0x211   :  { %3370 = vmatpush.msrb.mxu3 %v8034_v31  ;;  %3165 = vmatpush.msrb.mxu0 %v8120_v60  ;;  %4934 = vlog2.f32 %v717_v18  ;;  %v2234_v6 = vadd.f32 %v2233_v37, %v8108_v8  ;;  %v8213_v18 = vsub.f32 %v881_v2, %v8188_v58  ;;  %v909_v37 = vld [vmem:[#allocation3 + $0x270] sm:$0xff]  ;;  %v3251_v8 = vand.u32 4294901760, %v3250_v17  ;;  %v908_v17 = vld [vmem:[#allocation3 + $0x298] sm:$0xff] }
 0x212   :  { %3234 = vmatpush.msrb.mxu1 %v3233_v62  ;;  %3324 = vmatpush.msrb.mxu2 %v8123_v52  ;;  %v3262_v62 = vsub.f32 %v8172_v21, %v9273_v51  ;;  %v8220_v47 = vand.u32 4294901760, %v910_v55  ;;  %v8225_v2 = vsub.f32 %v880_v25, %v8200_v1  ;;  %v3257_v51 = vand.u32 4294901760, %v3256_v23 }
 0x213   :  { %3372 = vmatpush.msrb.mxu3 %v8046_v57  ;;  %3167 = vmatpush.msrb.mxu0 %v8142_v4  ;;  %v8234_v56 = vand.u32 4294901760, %v909_v37 }
 0x214   :  { %3240 = vmatpush.msrb.mxu1 %v3239_v20  ;;  %3327 = vmatpush.msrb.mxu2 %v8146_v59  ;;  %v2277_v45 = vpop.f32.mrf.mxu1  ;;  %v2352_v42 = vpop.f32.mrf.mxu2  ;;  %v8228_v20 = vsub.f32 %v911_v3, %v8202_v11  ;;  %v9567_v3 = vand.u32 4294901760, %v8191_v40  ;;  %v3263_v43 = vand.u32 4294901760, %v3262_v62  ;;  %v8244_v57 = vsub.f32 %v910_v55, %v8220_v47 }
 0x215   :  { %3374 = vmatpush.msrb.mxu3 %v8084_v38  ;;  %3169 = vmatpush.msrb.mxu0 %v8154_v33  ;;  %v2278_v39 = vadd.f32 %v2277_v45, %v2234_v6  ;;  %v907_v6 = vld [vmem:[#allocation3] sm:$0xff]  ;;  %v8255_v55 = vsub.f32 %v909_v37, %v8234_v56 }
 0x216   :  { %9566 = vst [vmem:[#allocation61_spill] sm:$0xff] %v8228_v20  ;;  %3246 = vmatpush.msrb.mxu1 %v3245_v63  ;;  %3330 = vmatpush.msrb.mxu2 %v8158_v35  ;;  %v3274_v45 = vsub.f32 %v8191_v40, %v9567_v3  ;;  %v9282_v3 = vand.u32 4294901760, %v8228_v20  ;;  %v906_v63 = vld [vmem:[#allocation3 + $0x68] sm:$0xff] }
 0x217   :  { %v4935_v32 = vpop.eup %4934  ;;  %3376 = vmatpush.msrb.mxu3 %v8106_v27  ;;  %3171 = vmatpush.msrb.mxu0 %v8164_v44  ;;  %v2353_v25 = vadd.f32 %v2352_v42, %v2278_v39  ;;  %v2393_v23 = vpop.f32.mrf.mxu3  ;;  %v8246_v27 = vand.u32 4294901760, %v908_v17  ;;  %v8273_v42 = vand.u32 4294901760, %v906_v63 }
 0x218   :  { %3252 = vmatpush.msrb.mxu1 %v3251_v8  ;;  %3333 = vmatpush.msrb.mxu2 %v8172_v21  ;;  %v749_v38 = vmul.f32 0.6931472, %v4935_v32  ;;  %v3269_v8 = vand.u32 4294901760, %v3268_v19  ;;  %v9568_v32 = vld [vmem:[#allocation43_spill] sm:$0xff]  ;;  %v8257_v21 = vand.u32 4294901760, %v907_v6  ;;  %v905_v19 = vld [vmem:[#allocation3 + $0xf8] sm:$0xff] }
 0x219   :  { %3378 = vmatpush.msrb.mxu3 %v8120_v60  ;;  %3173 = vmatpush.msrb.mxu0 %v8188_v58  ;;  %v2394_v39 = vadd.f32 %v2393_v23, %v2353_v25  ;;  %v5112_v60 = vld [vmem:[#allocation8 + $0x60] sm:$0xff]  ;;  %v3275_v25 = vand.u32 4294901760, %v3274_v45  ;;  %v8269_v37 = vsub.f32 %v908_v17, %v8246_v27  ;;  %v9570_v45 = vand.u32 4294901760, %v7980_v61  ;;  %v904_v61 = vld [vmem:[#allocation3 + $0x148] sm:$0xff] }
 0x21a   :  { %3258 = vmatpush.msrb.mxu1 %v3257_v51  ;;  %3336 = vmatpush.msrb.mxu2 %v8182_v7  ;;  %v774_v62 = vadd.f32 %v749_v38, %v9568_v32  ;;  %v8259_v31 = vand.u32 4294901760, %v5112_v60  ;;  %v9569_v51 = vand.u32 4294901760, %v8213_v18 }
 0x21b   :  { %3380 = vmatpush.msrb.mxu3 %v8142_v4  ;;  %3175 = vmatpush.msrb.mxu0 %v8200_v1 }
 0x21c   :  { %v3280_v23 = vsub.f32 %v8213_v18, %v9569_v51  ;;  %3264 = vmatpush.msrb.mxu1 %v3263_v43  ;;  %3339 = vmatpush.msrb.mxu2 %v8191_v40  ;;  %v8271_v32 = vsub.f32 %v2394_v39, %v774_v62  ;;  %v3568_v43 = vsub.f32 %v8228_v20, %v9282_v3  ;;  %v9571_v51 = vand.u32 4294901760, %v8225_v2 }
 0x21d   :  { %3382 = vmatpush.msrb.mxu3 %v8154_v33  ;;  %3405 = vmatpush.msra.mxu0 %v9570_v45  ;;  %v8287_v39 = vsub.f32 %v907_v6, %v8257_v21  ;;  %v8289_v62 = vand.u32 4294901760, %v905_v19  ;;  %v8293_v33 = vsub.f32 %v5112_v60, %v8259_v31  ;;  %v9572_v3 = vand.u32 4294901760, %v7984_v54 }
 0x21e   :  { %v3286_v38 = vsub.f32 %v8225_v2, %v9571_v51  ;;  %3270 = vmatpush.msrb.mxu1 %v3269_v8  ;;  %3342 = vmatpush.msrb.mxu2 %v8213_v18  ;;  %v3944_v45 = vrot.slane %v8271_v32, 5  ;;  %v3281_v8 = vand.u32 4294901760, %v3280_v23  ;;  %v3996_v51 = vrot.slane %v8271_v32, 6 }
 0x21f   :  { %3384 = vmatpush.msrb.mxu3 %v8164_v44  ;;  %3099 = vmatmul.f32.gmra.mxu2 %v7871_v28  ;;  %v9573_v6 = vand.u32 4294901760, %v8244_v57  ;;  %v8305_v60 = vsub.f32 %v906_v63, %v8273_v42  ;;  %v903_v44 = vld [vmem:[#allocation3 + $0x348] sm:$0xff]  ;;  %v3569_v54 = vand.u32 4294901760, %v3568_v43  ;;  %v9576_v63 = vand.u32 4294901760, %v8255_v55 }
 0x220   :  { %3409 = vmatpush.msra.mxu0 %v9572_v3  ;;  %3276 = vmatpush.msrb.mxu1 %v3275_v25  ;;  %v8309_v23 = vsel %vm3945_vm0, %v3944_v45, %v8041_v26  ;;  %v3287_v3 = vand.u32 4294901760, %v3286_v38  ;;  %v8313_v25 = vand.u32 4294901760, %v904_v61  ;;  %v8326_v20 = vsub.f32 %v905_v19, %v8289_v62 }
 0x221   :  { %v3574_v17 = vsub.f32 %v8244_v57, %v9573_v6  ;;  %9574 = vst [vmem:[#allocation43_spill] sm:$0xff] %v8309_v23  ;;  %3345 = vmatpush.msrb.mxu2 %v8225_v2  ;;  %3386 = vmatpush.msrb.mxu3 %v8188_v58  ;;  %v8317_v6 = vsel %vm3945_vm0, %v3996_v51, %v8076_v36  ;;  %v4043_v38 = vrot.slane %v8271_v32, 7  ;;  %v9577_v43 = vand.u32 4294901760, %v7999_v15  ;;  %v902_v51 = vld [vmem:[#allocation3 + $0x228] sm:$0xff] }
 0x222   :  { %9575 = vst [vmem:[#allocation62_spill] sm:$0xff] %v8317_v6  ;;  %2981 = vmatmul.f32.gmra.mxu0 %v7895_v5  ;;  %3140 = vmatmul.f32.gmra.mxu3 %v7871_v28  ;;  %v3580_v26 = vsub.f32 %v8255_v55, %v9576_v63  ;;  %v8332_v36 = vand.u32 4294901760, %v903_v44  ;;  %v8337_v28 = vsel %vm3945_vm0, %v8271_v32, %v8080_v49  ;;  %v4138_v63 = vrot.slane %v8271_v32, 1 }
 0x223   :  { %3413 = vmatpush.msra.mxu0 %v9577_v43  ;;  %3517 = vmatpush.msra.mxu2 %v8202_v11  ;;  %9578 = vst [vmem:[#allocation63_spill] sm:$0xff] %v8337_v28  ;;  %v4185_v19 = vrot.slane %v8271_v32, 2  ;;  %v3575_v45 = vand.u32 4294901760, %v3574_v17  ;;  %v9579_v15 = vand.u32 4294901760, %v8269_v37  ;;  %v9290_v6 = vand.u32 4294901760, %v8305_v60  ;;  %v901_v17 = vld [vmem:[#allocation3 + $0x360] sm:$0xff] }
 0x224   :  { %3282 = vmatpush.msrb.mxu1 %v3281_v8  ;;  %3388 = vmatpush.msrb.mxu3 %v8200_v1  ;;  %v8348_v23 = vsel %vm3945_vm0, %v4043_v38, %v8058_v50  ;;  %v9580_v49 = vand.u32 4294901760, %v7895_v5  ;;  %v9581_v28 = vand.u32 4294901760, %v8013_v29  ;;  %v8355_v8 = vsub.f32 %v904_v61, %v8313_v25 }
 0x225   :  { %v3586_v43 = vsub.f32 %v8269_v37, %v9579_v15  ;;  %v8359_v1 = vsel %vm3945_vm0, %v4138_v63, %v8088_v48  ;;  %v8363_v15 = vsel %vm3945_vm0, %v4185_v19, %v8092_v13  ;;  %v4232_v50 = vrot.slane %v8271_v32, 3  ;;  %3519 = vmatpush.msra.mxu2 %v8220_v47  ;;  %v900_v19 = vld [vmem:[#allocation3 + $0x278] sm:$0xff] }
 0x226   :  { %3026 = vmatmul.f32.gmra.mxu1 %v9580_v49  ;;  %3417 = vmatpush.msra.mxu0 %v9581_v28  ;;  %v3581_v5 = vand.u32 4294901760, %v3580_v26  ;;  %v8367_v29 = vand.u32 4294901760, %v902_v51  ;;  %v4279_v61 = vrot.slane %v8271_v32, 4  ;;  %v9582_v38 = vand.u32 4294901760, %v8037_v9  ;;  %v8387_v32 = vld [vmem:[#allocation8 + $0x68] sm:$0xff] }
 0x227   :  { %3570 = vmatpush.msra.mxu3 %v3569_v54  ;;  %3288 = vmatpush.msrb.mxu1 %v3287_v3  ;;  %v9583_v48 = vand.u32 4294901760, %v8287_v39  ;;  %v9289_v13 = vand.u32 4294901760, %v8326_v20  ;;  %v8377_v63 = vsub.f32 %v903_v44, %v8332_v36  ;;  %v8381_v54 = vsel %vm3945_vm0, %v4232_v50, %v8129_v12 }
 0x228   :  { %3421 = vmatpush.msra.mxu0 %v9582_v38  ;;  %3521 = vmatpush.msra.mxu2 %v8234_v56  ;;  %v8385_v9 = vand.u32 4294901760, %v901_v17  ;;  %v8391_v3 = vsel %vm3945_vm0, %v4279_v61, %v8133_v46  ;;  %v9584_v44 = vand.u32 4294901760, %v8050_v41  ;;  %v3587_v26 = vand.u32 4294901760, %v3586_v43  ;;  %v899_v41 = vld [vmem:[#allocation3 + $0xc8] sm:$0xff] }
 0x229   :  { %v3592_v28 = vsub.f32 %v8287_v39, %v9583_v48  ;;  %3476 = vmatpush.msra.mxu1 %v7959_v14  ;;  %3576 = vmatpush.msra.mxu3 %v3575_v45  ;;  %v3598_v12 = vsub.f32 %v8305_v60, %v9290_v6  ;;  %v9288_v14 = vand.u32 4294901760, %v8355_v8  ;;  %v9292_v49 = vand.u32 4294901760, %v8293_v33 }
 0x22a   :  { %3425 = vmatpush.msra.mxu0 %v9584_v44  ;;  %3523 = vmatpush.msra.mxu2 %v8246_v27  ;;  %v8403_v46 = vsub.f32 %v902_v51, %v8367_v29  ;;  %v8405_v45 = vand.u32 4294901760, %v900_v19  ;;  %v9585_v43 = vand.u32 4294901760, %v8072_v10  ;;  %v3604_v61 = vsub.f32 %v8326_v20, %v9289_v13 }
 0x22b   :  { %3478 = vmatpush.msra.mxu1 %v7966_v22  ;;  %3582 = vmatpush.msra.mxu3 %v3581_v5  ;;  %v3593_v50 = vand.u32 4294901760, %v3592_v28  ;;  %v9287_v38 = vand.u32 4294901760, %v8377_v63  ;;  %v8414_v22 = vand.u32 4294901760, %v8387_v32  ;;  %v8419_v51 = vsub.f32 %v901_v17, %v8385_v9 }
 0x22c   :  { %3429 = vmatpush.msra.mxu0 %v9585_v43  ;;  %3525 = vmatpush.msra.mxu2 %v8257_v21  ;;  %v9586_v10 = vand.u32 4294901760, %v8102_v24  ;;  %v3599_v5 = vand.u32 4294901760, %v3598_v12  ;;  %v3610_v48 = vsub.f32 %v8355_v8, %v9288_v14  ;;  %v3179_v28 = vsub.f32 %v8293_v33, %v9292_v49  ;;  %v896_v14 = vld [vmem:[#allocation3 + $0x78] sm:$0xff] }
 0x22d   :  { %3480 = vmatpush.msra.mxu1 %v7977_v53  ;;  %3588 = vmatpush.msra.mxu3 %v3587_v26  ;;  %v8429_v44 = vand.u32 4294901760, %v899_v41  ;;  %v898_v53 = vld [vmem:[#allocation3 + $0x370] sm:$0xff]  ;;  %v9291_v17 = vand.u32 4294901760, %v8403_v46  ;;  %v8435_v24 = vsub.f32 %v900_v19, %v8405_v45  ;;  %v9587_v26 = vand.u32 4294901760, %v8123_v52 }
 0x22e   :  { %3433 = vmatpush.msra.mxu0 %v9586_v10  ;;  %3527 = vmatpush.msra.mxu2 %v8273_v42  ;;  %v3605_v12 = vand.u32 4294901760, %v3604_v61  ;;  %v3616_v43 = vsub.f32 %v8377_v63, %v9287_v38  ;;  %v8444_v10 = vsub.f32 %v8387_v32, %v8414_v22  ;;  %v9293_v19 = vand.u32 4294901760, %v8419_v51 }
 0x22f   :  { %3482 = vmatpush.msra.mxu1 %v7988_v0  ;;  %3594 = vmatpush.msra.mxu3 %v3593_v50  ;;  %v897_v0 = vld [vmem:[#allocation3 + $0x308] sm:$0xff]  ;;  %v8449_v50 = vand.u32 4294901760, %v898_v53  ;;  %v9588_v52 = vand.u32 4294901760, %v8146_v59  ;;  %v3611_v61 = vand.u32 4294901760, %v3610_v48  ;;  %v8454_v38 = vsub.f32 %v899_v41, %v8429_v44 }
 0x230   :  { %3437 = vmatpush.msra.mxu0 %v9587_v26  ;;  %3529 = vmatpush.msra.mxu2 %v8289_v62  ;;  %v3180_v26 = vand.u32 4294901760, %v3179_v28  ;;  %v8462_v6 = vand.u32 4294901760, %v897_v0  ;;  %v9589_v41 = vand.u32 4294901760, %v8158_v35  ;;  %v3617_v48 = vand.u32 4294901760, %v3616_v43  ;;  %v9591_v43 = vld [vmem:[#allocation59_spill] sm:$0xff] }
 0x231   :  { %3484 = vmatpush.msra.mxu1 %v8004_v16  ;;  %3600 = vmatpush.msra.mxu3 %v3599_v5  ;;  %v2238_v13 = vpop.f32.mrf.mxu0  ;;  %v3622_v16 = vsub.f32 %v8403_v46, %v9291_v17  ;;  %v3633_v5 = vand.u32 4294901760, %v8435_v24  ;;  %v8474_v17 = vsub.f32 %v898_v53, %v8449_v50  ;;  %v8476_v49 = vand.u32 4294901760, %v896_v14 }
 0x232   :  { %3441 = vmatpush.msra.mxu0 %v9588_v52  ;;  %3531 = vmatpush.msra.mxu2 %v8313_v25  ;;  %v2239_v59 = vadd.f32 %v2238_v13, %v8184_v30  ;;  %v3628_v52 = vsub.f32 %v8419_v51, %v9293_v19  ;;  %v3639_v35 = vand.u32 4294901760, %v8454_v38  ;;  %v8486_v19 = vsub.f32 %v897_v0, %v8462_v6 }
 0x233   :  { %3486 = vmatpush.msra.mxu1 %v8010_v34  ;;  %3606 = vmatpush.msra.mxu3 %v3605_v12  ;;  %v9590_v34 = vld [vmem:[#allocation53_spill] sm:$0xff]  ;;  %v3623_v28 = vand.u32 4294901760, %v3622_v16  ;;  %v3634_v53 = vsub.f32 %v8435_v24, %v3633_v5 }
 0x234   :  { %3445 = vmatpush.msra.mxu0 %v9589_v41  ;;  %3533 = vmatpush.msra.mxu2 %v8332_v36  ;;  %v2283_v30 = vpop.f32.mrf.mxu1  ;;  %v9592_v41 = vand.u32 4294901760, %v9591_v43  ;;  %v3629_v16 = vand.u32 4294901760, %v3628_v52  ;;  %v3645_v43 = vand.u32 4294901760, %v8474_v17 }
 0x235   :  { %3488 = vmatpush.msra.mxu1 %v9590_v34  ;;  %3612 = vmatpush.msra.mxu3 %v3611_v61  ;;  %v2284_v13 = vadd.f32 %v2283_v30, %v2239_v59  ;;  %v2356_v12 = vpop.f32.mrf.mxu2  ;;  %v9593_v34 = vld [vmem:[#allocation44_spill] sm:$0xff]  ;;  %v9594_v61 = vand.u32 4294901760, %v8444_v10  ;;  %v9595_v30 = vand.u32 4294901760, %v8182_v7  ;;  %v9597_v7 = vand.u32 4294901760, %v8191_v40 }
 0x236   :  { %3181 = vmatmul.f32.vlgmr.msrb.gmra.mxu0 %v3180_v26  ;;  %3535 = vmatpush.msra.mxu2 %v8367_v29  ;;  %v3635_v52 = vand.u32 4294901760, %v3634_v53  ;;  %v9599_v40 = vand.u32 4294901760, %v8213_v18  ;;  %v9600_v53 = vld [vmem:[#allocation47_spill] sm:$0xff] }
 0x237   :  { %3449 = vmatpush.msra.mxu0 %v9592_v41  ;;  %3490 = vmatpush.msra.mxu1 %v9593_v34  ;;  %v3187_v26 = vsub.f32 %v8444_v10, %v9594_v61  ;;  %v2357_v59 = vadd.f32 %v2356_v12, %v2284_v13  ;;  %v8497_v41 = vsub.f32 %v896_v14, %v8476_v49  ;;  %v9596_v34 = vld [vmem:[#allocation54_spill] sm:$0xff]  ;;  %v3651_v12 = vand.u32 4294901760, %v8486_v19  ;;  %v9598_v14 = vld [vmem:[#allocation49_spill] sm:$0xff] }
 0x238   :  { %3618 = vmatpush.msra.mxu3 %v3617_v48  ;;  %3290 = vmatmul.f32.vlgmr.msrb.gmra.mxu1 %v8259_v31  ;;  %v2397_v0 = vpop.f32.mrf.mxu3  ;;  %v3640_v48 = vsub.f32 %v8454_v38, %v3639_v35 }
 0x239   :  { %3453 = vmatpush.msra.mxu0 %v9595_v30  ;;  %3492 = vmatpush.msra.mxu1 %v9596_v34  ;;  %v8504_v13 = vadd.f32 %v2397_v0, %v2357_v59  ;;  %v3188_v61 = vand.u32 4294901760, %v3187_v26  ;;  %v3646_v59 = vsub.f32 %v8474_v17, %v3645_v43  ;;  %v3652_v26 = vsub.f32 %v8486_v19, %v3651_v12 }
 0x23a   :  { %3537 = vmatpush.msra.mxu2 %v8385_v9  ;;  %3624 = vmatpush.msra.mxu3 %v3623_v28  ;;  %v3657_v28 = vand.u32 4294901760, %v8497_v41  ;;  %v3641_v30 = vand.u32 4294901760, %v3640_v48  ;;  %v9602_v0 = vand.u32 4294901760, %v8225_v2  ;;  %v9603_v48 = vld [vmem:[#allocation61_spill] sm:$0xff]  ;;  %v5113_v2 = vld [vmem:[#allocation8 + $0x70] sm:$0xff] }
 0x23b   :  { %3457 = vmatpush.msra.mxu0 %v9597_v7  ;;  %3494 = vmatpush.msra.mxu1 %v9598_v14  ;;  %v3647_v18 = vand.u32 4294901760, %v3646_v59  ;;  %v3653_v7 = vand.u32 4294901760, %v3652_v26  ;;  %v8539_v14 = vand.u32 4294901760, %v5113_v2  ;;  %v9607_v26 = vand.u32 4294901760, %v8244_v57 }
 0x23c   :  { %3539 = vmatpush.msra.mxu2 %v8405_v45  ;;  %3630 = vmatpush.msra.mxu3 %v3629_v16  ;;  %v9601_v16 = vand.u32 4294901760, %v8293_v33  ;;  %v3658_v34 = vsub.f32 %v8497_v41, %v3657_v28 }
 0x23d   :  { %3348 = vmatmul.f32.vlgmr.msrb.gmra.mxu2 %v8293_v33  ;;  %3461 = vmatpush.msra.mxu0 %v9599_v40  ;;  %v8534_v33 = vpop.permute.xlu0 %3911  ;;  %v9606_v40 = vand.u32 4294901760, %v9603_v48 }
 0x23e   :  { %3496 = vmatpush.msra.mxu1 %v9600_v53  ;;  %3541 = vmatpush.msra.mxu2 %v8429_v44 }
 0x23f   :  { %3636 = vmatpush.msra.mxu3 %v3635_v52  ;;  %3189 = vmatmul.f32.gmra.mxu0 %v3188_v61  ;;  %v9604_v52 = vld [vmem:[#allocation56_spill] sm:$0xff]  ;;  %v9605_v61 = vld [vmem:[#allocation58_spill] sm:$0xff] }
 0x240   :  { %3392 = vmatmul.f32.vlgmr.msrb.gmra.mxu3 %v9601_v16  ;;  %3465 = vmatpush.msra.mxu0 %v9602_v0  ;;  %v9608_v0 = vld [vmem:[#allocation46_spill] sm:$0xff] }
 0x241   :  { %3498 = vmatpush.msra.mxu1 %v8142_v4  ;;  %3543 = vmatpush.msra.mxu2 %v8449_v50  ;;  %v3659_v4 = vand.u32 4294901760, %v3658_v34 }
 0x242   :  { %3642 = vmatpush.msra.mxu3 %v3641_v30  ;;  %3294 = vmatmul.f32.gmra.mxu1 %v8414_v22  ;;  %v8549_v30 = vsub.f32 %v5113_v2, %v8539_v14  ;;  %v9614_v2 = vand.u32 4294901760, %v8326_v20 }
 0x243   :  { %3672 = vmatpush.msrb.mxu0 %v9603_v48  ;;  %3500 = vmatpush.msra.mxu1 %v9604_v52  ;;  %v9610_v48 = vand.u32 4294901760, %v8269_v37 }
 0x244   :  { %3545 = vmatpush.msra.mxu2 %v8462_v6  ;;  %3648 = vmatpush.msra.mxu3 %v3647_v18  ;;  %v9609_v18 = vand.u32 4294901760, %v8255_v55 }
 0x245   :  { %3675 = vmatpush.msrb.mxu0 %v8244_v57  ;;  %3502 = vmatpush.msra.mxu1 %v9605_v61  ;;  %v721_v34 = vpop.xlane.xlu0 %720  ;;  %v3550_v57 = vand.u32 4294901760, %v8549_v30 }
 0x246   :  { %3547 = vmatpush.msra.mxu2 %v8476_v49  ;;  %3654 = vmatpush.msra.mxu3 %v3653_v7  ;;  %v2438_v59 = vpop.f32.mrf.mxu0  ;;  %4936 = vlog2.f32 %v721_v34  ;;  %v9612_v7 = vand.u32 4294901760, %v8287_v39 }
 0x247   :  { %3678 = vmatpush.msrb.mxu0 %v8255_v55  ;;  %3504 = vmatpush.msra.mxu1 %v8188_v58  ;;  %v8558_v58 = vld [vmem:[#allocation8 + $0x78] sm:$0xff] }
 0x248   :  { %3777 = vmatpush.msrb.mxu2 %v9606_v40  ;;  %3660 = vmatpush.msra.mxu3 %v3659_v4  ;;  %v2547_v53 = vpop.f32.mrf.mxu1  ;;  %v9615_v40 = vand.u32 4294901760, %v8355_v8 }
 0x249   :  { %3467 = vmatmul.f32.vlgmr.msra.gmra.mxu0 %v8259_v31  ;;  %v2548_v16 = vadd.f32 %v2547_v53, %v2438_v59  ;;  %3506 = vmatpush.msra.mxu1 %v9608_v0  ;;  %v9617_v0 = vld [vmem:[#allocation48_spill] sm:$0xff] }
 0x24a   :  { %3681 = vmatpush.msrb.mxu0 %v8269_v37  ;;  %3781 = vmatpush.msrb.mxu2 %v9607_v26  ;;  %v9616_v26 = vand.u32 4294901760, %v8377_v63 }
 0x24b   :  { %3848 = vmatpush.msrb.mxu3 %v8202_v11  ;;  %3508 = vmatmul.f32.vlgmr.msra.gmra.mxu1 %v8259_v31  ;;  %v8569_v31 = vand.u32 4294901760, %v8558_v58 }
 0x24c   :  { %3684 = vmatpush.msrb.mxu0 %v8287_v39  ;;  %3730 = vmatpush.msrb.mxu1 %v8202_v11  ;;  %v9611_v11 = vand.u32 4294901760, %v8444_v10  ;;  %v4937_v59 = vpop.eup %4936 }
 0x24d   :  { %3785 = vmatpush.msrb.mxu2 %v9609_v18  ;;  %3850 = vmatpush.msrb.mxu3 %v8220_v47  ;;  %v8587_v37 = vsub.f32 %v8558_v58, %v8569_v31 }
 0x24e   :  { %3353 = vmatmul.f32.gmra.mxu2 %v8444_v10  ;;  %3687 = vmatpush.msrb.mxu0 %v8305_v60  ;;  %v9613_v10 = vand.u32 4294901760, %v8305_v60 }
 0x24f   :  { %3732 = vmatpush.msrb.mxu1 %v8220_v47  ;;  %3789 = vmatpush.msrb.mxu2 %v9610_v48  ;;  %v3551_v47 = vsub.f32 %v8549_v30, %v3550_v57 }
 0x250   :  { %3852 = vmatpush.msrb.mxu3 %v8234_v56  ;;  %3690 = vmatpush.msrb.mxu0 %v8326_v20  ;;  %v2446_v55 = vpop.f32.mrf.mxu0 }
 0x251   :  { %3398 = vmatmul.f32.gmra.mxu3 %v9611_v11  ;;  %3734 = vmatpush.msrb.mxu1 %v8234_v56  ;;  %v3552_v61 = vand.u32 4294901760, %v3551_v47 }
 0x252   :  { %3793 = vmatpush.msrb.mxu2 %v9612_v7  ;;  %3854 = vmatpush.msrb.mxu3 %v8246_v27 }
 0x253   :  { %3693 = vmatpush.msrb.mxu0 %v8355_v8  ;;  %3736 = vmatpush.msrb.mxu1 %v8246_v27  ;;  %v2551_v56 = vpop.f32.mrf.mxu1  ;;  %v2605_v39 = vpop.f32.mrf.mxu2  ;;  %v3558_v27 = vand.u32 4294901760, %v8587_v37 }
 0x254   :  { %3797 = vmatpush.msrb.mxu2 %v9613_v10  ;;  %3856 = vmatpush.msrb.mxu3 %v8257_v21  ;;  %v8594_v52 = vadd.f32 %v2551_v56, %v2446_v55  ;;  %v2606_v4 = vadd.f32 %v2605_v39, %v2548_v16  ;;  %v9621_v10 = vld [vmem:[#allocation62_spill] sm:$0xff]  ;;  %v9622_v39 = vld [vmem:[#allocation63_spill] sm:$0xff] }
 0x255   :  { %3696 = vmatpush.msrb.mxu0 %v8377_v63  ;;  %3738 = vmatpush.msrb.mxu1 %v8257_v21  ;;  %v753_v21 = vmul.f32 0.6931472, %v4937_v59 }
 0x256   :  { %3801 = vmatpush.msrb.mxu2 %v9614_v2  ;;  %3858 = vmatpush.msrb.mxu3 %v8273_v42  ;;  %v2649_v60 = vpop.f32.mrf.mxu3 }
 0x257   :  { %3699 = vmatpush.msrb.mxu0 %v8403_v46  ;;  %3740 = vmatpush.msrb.mxu1 %v8273_v42  ;;  %v2650_v53 = vadd.f32 %v2649_v60, %v2606_v4  ;;  %v3559_v42 = vsub.f32 %v8587_v37, %v3558_v27  ;;  %v776_v18 = vadd.f32 %v753_v21, %v9617_v0 }
 0x258   :  { %3805 = vmatpush.msrb.mxu2 %v9615_v40  ;;  %3860 = vmatpush.msrb.mxu3 %v8289_v62 }
 0x259   :  { %3471 = vmatmul.f32.gmra.mxu0 %v8414_v22  ;;  %3553 = vmatmul.f32.vlgmr.msra.gmra.mxu2 %v3552_v61  ;;  %v2724_v20 = vpop.f32.mrf.mxu0  ;;  %v3560_v63 = vand.u32 4294901760, %v3559_v42 }
 0x25a   :  { %3662 = vmatmul.f32.vlgmr.msra.gmra.mxu3 %v8539_v14  ;;  %3702 = vmatpush.msrb.mxu0 %v8419_v51  ;;  %v2725_v8 = vadd.f32 %v2724_v20, %v2650_v53  ;;  %v9623_v20 = vld [vmem:[#allocation52_spill] sm:$0xff] }
 0x25b   :  { %3742 = vmatpush.msrb.mxu1 %v8289_v62  ;;  %3809 = vmatpush.msrb.mxu2 %v9616_v26  ;;  %v9618_v62 = vand.u32 4294901760, %v8403_v46 }
 0x25c   :  { %3862 = vmatpush.msrb.mxu3 %v8313_v25  ;;  %3512 = vmatmul.f32.gmra.mxu1 %v8414_v22  ;;  %v2765_v16 = vpop.f32.mrf.mxu1  ;;  %v9619_v22 = vand.u32 4294901760, %v8419_v51 }
 0x25d   :  { %3705 = vmatpush.msrb.mxu0 %v8435_v24  ;;  %3744 = vmatpush.msrb.mxu1 %v8313_v25  ;;  %v2766_v34 = vadd.f32 %v2765_v16, %v2725_v8  ;;  %v9620_v24 = vld [vmem:[#allocation43_spill] sm:$0xff] }
 0x25e   :  { %3813 = vmatpush.msrb.mxu2 %v9618_v62  ;;  %3864 = vmatpush.msrb.mxu3 %v8332_v36 }
 0x25f   :  { %3708 = vmatpush.msrb.mxu0 %v8454_v38  ;;  %3746 = vmatpush.msrb.mxu1 %v8332_v36  ;;  %v3896_v48 = vsub.f32 %v2766_v34, %v776_v18 }
 0x260   :  { %3817 = vmatpush.msrb.mxu2 %v9619_v22  ;;  %3866 = vmatpush.msrb.mxu3 %v8367_v29 }
 0x261   :  { %3711 = vmatpush.msrb.mxu0 %v8474_v17  ;;  %3748 = vmatpush.msrb.mxu1 %v8367_v29  ;;  %v3947_v25 = vrot.slane %v3896_v48, 4  ;;  %v3998_v46 = vrot.slane %v3896_v48, 5  ;;  %v4045_v11 = vrot.slane %v3896_v48, 6  ;;  %v4092_v55 = vrot.slane %v3896_v48, 7  ;;  %v8642_v29 = vld [vmem:[%s9169_s3] sm:$0xff] }
 0x262   :  { %3821 = vmatpush.msrb.mxu2 %v3633_v5  ;;  %3868 = vmatpush.msrb.mxu3 %v8385_v9  ;;  %v8635_v36 = vsel %vm3948_vm5, %v3896_v48, %v8359_v1  ;;  %v4187_v51 = vrot.slane %v3896_v48, 1  ;;  %v4234_v7 = vrot.slane %v3896_v48, 2  ;;  %v4281_v47 = vrot.slane %v3896_v48, 3 }
 0x263   :  { %3561 = vmatmul.f32.gmra.mxu2 %v3560_v63  ;;  %3666 = vmatmul.f32.gmra.mxu3 %v8569_v31  ;;  %v8646_v5 = vsel %vm3948_vm5, %v3947_v25, %v9620_v24  ;;  %v8650_v1 = vsel %vm3948_vm5, %v3998_v46, %v9621_v10  ;;  %v8654_v56 = vsel %vm3948_vm5, %v4045_v11, %v8348_v23  ;;  %vm4881_vm7 = vcmp.gt.s32.totalorder %v8642_v29, 0 }
 0x264   :  { %3714 = vmatpush.msrb.mxu0 %v8486_v19  ;;  %3750 = vmatpush.msrb.mxu1 %v8385_v9  ;;  %v8661_v4 = vsel %vm3948_vm5, %v4092_v55, %v9622_v39  ;;  %v8665_v2 = vsel %vm3948_vm5, %v4187_v51, %v8363_v15  ;;  %v8669_v61 = vsel %vm3948_vm5, %v4234_v7, %v8381_v54  ;;  %vm4882_vm12 = vcmp.gt.s32.totalorder %v8642_v29, 1 }
 0x265   :  { %3825 = vmatpush.msrb.mxu2 %v3639_v35  ;;  %3870 = vmatpush.msrb.mxu3 %v8405_v45  ;;  %v8675_v23 = vsel %vm3948_vm5, %v4281_v47, %v8391_v3  ;;  %v5195_v3 = vmov 0   ;;  %vm4883_vm6 = vcmp.gt.s32.totalorder %v8642_v29, 2  ;;  %vm4884_vm3 = vcmp.gt.s32.totalorder %v8642_v29, 3 }
 0x266   :  { %3717 = vmatpush.msrb.mxu0 %v8497_v41  ;;  %3752 = vmatpush.msrb.mxu1 %v8405_v45  ;;  %v2610_v9 = vpop.f32.mrf.mxu2  ;;  %v3963_v45 = vsel %vm4881_vm7, 1, %v5195_v3  ;;  %vm4885_vm8 = vcmp.gt.s32.totalorder %v8642_v29, 4  ;;  %vm4886_vm1 = vcmp.gt.s32.totalorder %v8642_v29, 5  ;;  %vm4887_vm7 = vcmp.gt.s32.totalorder %v8642_v29, 6 }
 0x267   :  { %3829 = vmatpush.msrb.mxu2 %v3645_v43  ;;  %3872 = vmatpush.msrb.mxu3 %v8429_v44  ;;  %v2611_v15 = vadd.f32 %v2610_v9, %v8594_v52 }
 0x268   :  { %3720 = vmatmul.f32.vlgmr.msrb.gmra.mxu0 %v8549_v30  ;;  %3754 = vmatpush.msrb.mxu1 %v8429_v44 }
 0x269   :  { %3833 = vmatpush.msrb.mxu2 %v3651_v12  ;;  %3874 = vmatpush.msrb.mxu3 %v8449_v50  ;;  %v2655_v54 = vpop.f32.mrf.mxu3 }
 0x26a   :  { %4909 = vset.pattern.permute.xlu1 %v5195_v3  ;;  %3756 = vmatpush.msrb.mxu1 %v8449_v50  ;;  %v2656_v38 = vadd.f32 %v2655_v54, %v2611_v15  ;;  %v725_v50 = vpop.xlane.xlu1 %724  ;;  %v8738_v15 = vld [vmem:[#allocation4] sm:$0xff] }
 0x26b   :  { %3837 = vmatpush.msrb.mxu2 %v3657_v28  ;;  %3876 = vmatpush.msrb.mxu3 %v8462_v6  ;;  %4938 = vlog2.f32 %v725_v50  ;;  %v8744_v50 = vld [vmem:[#allocation2] sm:$0xff] }
 0x26c   :  { %3839 = vmatmul.f32.vlgmr.msrb.gmra.mxu2 %v8539_v14  ;;  %3758 = vmatpush.msrb.mxu1 %v8462_v6  ;;  %v4010_v6 = vsel %vm4882_vm12, 1, %v5195_v3 }
 0x26d   :  { %3965 = vperm.xlu1 %4909, %v3963_v45   ;;  %3878 = vmatpush.msrb.mxu3 %v8476_v49 }
 0x26e   :  { %4910 = vset.pattern.permute.xlu0 %v5195_v3  ;;  %3880 = vmatmul.f32.vlgmr.msrb.gmra.mxu3 %v8539_v14 }
 0x26f   :  { %3760 = vmatpush.msrb.mxu1 %v8476_v49  ;;  %v2810_v44 = vpop.f32.mrf.mxu2  ;;  %4911 = vset.pattern.permute.xlu2 %v5195_v3 }
 0x270   :  { %3725 = vmatmul.f32.gmra.mxu0 %v8587_v37  ;;  %3764 = vmatmul.f32.vlgmr.msrb.gmra.mxu1 %v3550_v57 }
 0x271   :  { %v4939_v57 = vpop.eup %4938 }
 0x272   :  { %v2919_v17 = vpop.f32.mrf.mxu3  ;;  %v757_v40 = vmul.f32 0.6931472, %v4939_v57 }
 0x273   :  { %v2920_v28 = vadd.f32 %v2919_v17, %v2810_v44  ;;  %v8742_v17 = vld [vmem:[#allocation5] sm:$0xff] }
 0x274   :  { %3843 = vmatmul.f32.gmra.mxu2 %v8569_v31  ;;  %v778_v37 = vadd.f32 %v757_v40, %v9623_v20 }
 0x275   :  { %4012 = vperm.xlu1 %4909, %v4010_v6   ;;  %v2728_v19 = vpop.f32.mrf.mxu0 }
 0x276   :  { %3884 = vmatmul.f32.gmra.mxu3 %v8569_v31  ;;  %v2729_v49 = vadd.f32 %v2728_v19, %v2656_v38  ;;  %v9624_v38 = vld [vmem:[#allocation51_spill] sm:$0xff] }
 0x277   :  { %v3910_v44 = vadd.f32 %v9624_v38, %v8738_v15 }
 0x278   :  { %3770 = vmatmul.f32.gmra.mxu1 %v3558_v27  ;;  %v2769_v35 = vpop.f32.mrf.mxu1  ;;  %v2818_v43 = vpop.f32.mrf.mxu2 }
 0x279   :  { %v8710_v41 = vadd.f32 %v2769_v35, %v2729_v49  ;;  %v3914_v35 = vmax.f32 %v8744_v50, %v3910_v44 }
 0x27b   :  { %v2923_v12 = vpop.f32.mrf.mxu3 }
 0x27c   :  { %v2924_v14 = vadd.f32 %v2923_v12, %v2818_v43  ;;  %v3913_v43 = vadd.f32 %v8534_v33, %v8742_v17 }
 0x27e   :  { %v8749_v57 = vmax.f32 %v3914_v35, %v3913_v43 }
 0x27f   :  { %v2977_v30 = vpop.f32.mrf.mxu0 }
 0x280   :  { %v2978_v52 = vadd.f32 %v2977_v30, %v2920_v28 }
 0x282   :  { %v3021_v59 = vpop.f32.mrf.mxu1  ;;  %v3096_v60 = vpop.f32.mrf.mxu2 }
 0x283   :  { %v3022_v31 = vadd.f32 %v3021_v59, %v2978_v52  ;;  %v9625_v52 = vld [vmem:[#allocation57_spill] sm:$0xff] }
 0x285   :  { %v3097_v53 = vadd.f32 %v3096_v60, %v3022_v31  ;;  %v3137_v21 = vpop.f32.mrf.mxu3  ;;  %v3916_v31 = vsub.f32 %v8744_v50, %v8749_v57 }
 0x287   :  { %v3138_v27 = vadd.f32 %v3137_v21, %v3097_v53 }
 0x289   :  { %v8713_v42 = vsub.f32 %v3138_v27, %v778_v37 }
 0x28b   :  { %v4000_v8 = vrot.slane %v8713_v42, 4  ;;  %v4047_v26 = vrot.slane %v8713_v42, 5  ;;  %v4094_v16 = vrot.slane %v8713_v42, 6  ;;  %v4141_v0 = vrot.slane %v8713_v42, 7 }
 0x28c   :  { %v4189_v18 = vsel %vm3951_vm13, %v8713_v42, %v8665_v2  ;;  %v4236_v62 = vrot.slane %v8713_v42, 1  ;;  %v4283_v34 = vrot.slane %v8713_v42, 2  ;;  %v729_v2 = vpop.xlane.xlu1 %728 }
 0x28d   :  { %v4001_v63 = vsel %vm3951_vm13, %v4000_v8, %v8650_v1  ;;  %v4048_v22 = vsel %vm3951_vm13, %v4047_v26, %v8654_v56  ;;  %v4095_v48 = vsel %vm3951_vm13, %v4094_v16, %v8661_v4  ;;  %v4142_v25 = vsel %vm3951_vm13, %v4141_v0, %v8635_v36 }
 0x28e   :  { %v4237_v46 = vsel %vm3951_vm13, %v4236_v62, %v8669_v61  ;;  %v4284_v11 = vsel %vm3951_vm13, %v4283_v34, %v8675_v23  ;;  %4940 = vlog2.f32 %v729_v2  ;;  %v3919_v26 = vsub.f32 %v3910_v44, %v8749_v57 }
 0x294   :  { %v4941_v6 = vpop.eup %4940 }
 0x295   :  { %v761_v12 = vmul.f32 0.6931472, %v4941_v6 }
 0x297   :  { %v780_v59 = vadd.f32 %v761_v12, %v9625_v52 }
 0x29f   :  { %v2982_v55 = vpop.f32.mrf.mxu0 }
 0x2a0   :  { %v2983_v51 = vadd.f32 %v2982_v55, %v2924_v14 }
 0x2a2   :  { %v3100_v47 = vpop.f32.mrf.mxu2 }
 0x2a3   :  { %v3027_v7 = vpop.f32.mrf.mxu1 }
 0x2a4   :  { %v3028_v24 = vadd.f32 %v3027_v7, %v2983_v51 }
 0x2a5   :  { %v3141_v1 = vpop.f32.mrf.mxu3 }
 0x2a6   :  { %v3101_v10 = vadd.f32 %v3100_v47, %v3028_v24  ;;  %v3917_v47 = vmul.f32 1.442695, %v3916_v31  ;;  %v3923_v24 = vsub.f32 %v3913_v43, %v8749_v57 }
 0x2a8   :  { %v8736_v56 = vadd.f32 %v3141_v1, %v3101_v10  ;;  %4942 = vpow2.f32 %v3917_v47 }
 0x2b3   :  { %v3182_v39 = vpop.f32.mrf.mxu0 }
 0x2b5   :  { %v3291_v4 = vpop.f32.mrf.mxu1 }
 0x2b6   :  { %v3292_v36 = vadd.f32 %v3291_v4, %v3182_v39  ;;  %v3924_v39 = vmul.f32 1.442695, %v3923_v24 }
 0x2bc   :  { %v3190_v9 = vpop.f32.mrf.mxu0 }
 0x2bf   :  { %v3295_v61 = vpop.f32.mrf.mxu1 }
 0x2c0   :  { %v3349_v54 = vpop.f32.mrf.mxu2  ;;  %v3296_v23 = vadd.f32 %v3295_v61, %v3190_v9 }
 0x2c1   :  { %v3350_v45 = vadd.f32 %v3349_v54, %v3292_v36  ;;  %v733_v54 = vpop.xlane.xlu1 %732 }
 0x2c3   :  { %v3393_v19 = vpop.f32.mrf.mxu3 }
 0x2c4   :  { %v3394_v49 = vadd.f32 %v3393_v19, %v3350_v45 }
 0x2c6   :  { %v3468_v28 = vpop.f32.mrf.mxu0 }
 0x2c7   :  { %v3469_v14 = vadd.f32 %v3468_v28, %v3394_v49 }
 0x2c8   :  { %v3509_v30 = vpop.f32.mrf.mxu1 }
 0x2c9   :  { %v3510_v60 = vadd.f32 %v3509_v30, %v3469_v14 }
 0x2cb   :  { %v8752_v40 = vsub.f32 %v3510_v60, %v780_v59  ;;  %v3950_v59 = vrot.slane %v8713_v42, 3 }
 0x2cd   :  { %v4002_v53 = vrot.slane %v8752_v40, 3  ;;  %v4049_v21 = vrot.slane %v8752_v40, 4  ;;  %v4096_v33 = vrot.slane %v8752_v40, 5  ;;  %v4143_v20 = vrot.slane %v8752_v40, 6 }
 0x2ce   :  { %v4190_v37 = vrot.slane %v8752_v40, 7  ;;  %v8763_v27 = vsel %vm3954_vm4, %v8752_v40, %v4237_v46  ;;  %v4285_v8 = vrot.slane %v8752_v40, 1 }
 0x2cf   :  { %v8768_v16 = vsel %vm3954_vm4, %v4002_v53, %v4001_v63  ;;  %v8771_v0 = vsel %vm3954_vm4, %v4049_v21, %v4048_v22  ;;  %v8774_v62 = vsel %vm3954_vm4, %v4096_v33, %v4095_v48  ;;  %v8777_v55 = vsel %vm3954_vm4, %v4143_v20, %v4142_v25  ;;  %v9626_v21 = vld [vmem:[#allocation55_spill] sm:$0xff] }
 0x2d0   :  { %v8780_v46 = vsel %vm3954_vm4, %v4190_v37, %v4189_v18  ;;  %v8783_v51 = vsel %vm3954_vm4, %v4285_v8, %v4284_v11  ;;  %v3920_v63 = vmul.f32 1.442695, %v3919_v26  ;;  %v4943_v18 = vpop.eup %4942  ;;  %v3953_v53 = vrot.slane %v8752_v40, 2 }
 0x2d1   :  { %v3354_v34 = vpop.f32.mrf.mxu2  ;;  %v3952_v8 = vsel %vm3951_vm13, %v3950_v59, %v8646_v5 }
 0x2d2   :  { %v3355_v7 = vadd.f32 %v3354_v34, %v3296_v23  ;;  %4944 = vpow2.f32 %v3920_v63  ;;  %v3955_v34 = vsel %vm3954_vm4, %v3953_v53, %v3952_v8 }
 0x2d3   :  { %4946 = vpow2.f32 %v3924_v39 }
 0x2d4   :  { %v3399_v22 = vpop.f32.mrf.mxu3  ;;  %4948 = vlog2.f32 %v733_v54 }
 0x2d5   :  { %v3400_v10 = vadd.f32 %v3399_v22, %v3355_v7 }
 0x2d6   :  { %v3472_v1 = vpop.f32.mrf.mxu0 }
 0x2d7   :  { %v3473_v48 = vadd.f32 %v3472_v1, %v3400_v10 }
 0x2d8   :  { %v4945_v36 = vpop.eup %4944 }
 0x2d9   :  { %v3513_v25 = vpop.f32.mrf.mxu1  ;;  %v3922_v9 = vadd.f32 %v4945_v36, %v4943_v18  ;;  %v4947_v61 = vpop.eup %4946 }
 0x2da   :  { %v8786_v4 = vadd.f32 %v3513_v25, %v3473_v48  ;;  %v4949_v49 = vpop.eup %4948 }
 0x2db   :  { %v3926_v23 = vadd.f32 %v4947_v61, %v3922_v9  ;;  %v765_v14 = vmul.f32 0.6931472, %v4949_v49 }
 0x2dc   :  { %v3554_v2 = vpop.f32.mrf.mxu2 }
 0x2dd   :  { %v3663_v11 = vpop.f32.mrf.mxu3  ;;  %4950 = vlog2.f32 %v3926_v23  ;;  %v782_v33 = vadd.f32 %v765_v14, %v9626_v21 }
 0x2de   :  { %v3664_v19 = vadd.f32 %v3663_v11, %v3554_v2 }
 0x2df   :  { %v3966_v7 = vpop.permute.xlu1 %3965 }
 0x2e0   :  { %vm3967_vm9 = vcmp.eq.s32.totalorder %v3966_v7, 1 }
 0x2e3   :  { %v4951_v28 = vpop.eup %4950 }
 0x2e4   :  { %v3928_v60 = vmul.f32 0.6931472, %v4951_v28 }
 0x2e5   :  { %v3721_v6 = vpop.f32.mrf.mxu0 }
 0x2e6   :  { %v3562_v45 = vpop.f32.mrf.mxu2  ;;  %v3667_v38 = vpop.f32.mrf.mxu3  ;;  %v3722_v35 = vadd.f32 %v3721_v6, %v3664_v19  ;;  %v3929_v26 = vadd.f32 %v3928_v60, %v8749_v57 }
 0x2e7   :  { %v8788_v44 = vadd.f32 %v3667_v38, %v3562_v45  ;;  %v4013_v28 = vpop.permute.xlu1 %4012 }
 0x2e8   :  { %vm4014_vm10 = vcmp.eq.s32.totalorder %v4013_v28, 1 }
 0x2ed   :  { %v3765_v43 = vpop.f32.mrf.mxu1 }
 0x2ee   :  { %v3766_v12 = vadd.f32 %v3765_v43, %v3722_v35 }
 0x2ef   :  { %v3840_v30 = vpop.f32.mrf.mxu2 }
 0x2f0   :  { %v3841_v52 = vadd.f32 %v3840_v30, %v3766_v12 }
 0x2f1   :  { %v3881_v31 = vpop.f32.mrf.mxu3 }
 0x2f2   :  { %v3882_v20 = vadd.f32 %v3881_v31, %v3841_v52 }
 0x2f4   :  { %v3902_v37 = vsub.f32 %v3882_v20, %v782_v33 }
 0x2f6   :  { %v3956_v47 = vrot.slane %v3902_v37, 1  ;;  %v4004_v63 = vrot.slane %v3902_v37, 2  ;;  %v4051_v42 = vrot.slane %v3902_v37, 3  ;;  %v4098_v24 = vrot.slane %v3902_v37, 4 }
 0x2f7   :  { %v4145_v22 = vrot.slane %v3902_v37, 5  ;;  %v4192_v40 = vrot.slane %v3902_v37, 6  ;;  %v4239_v10 = vrot.slane %v3902_v37, 7 }
 0x2f8   :  { %v3958_v1 = vsel %vm3957_vm15, %v3956_v47, %v3955_v34  ;;  %v4005_v48 = vsel %vm3957_vm15, %v4004_v63, %v8768_v16  ;;  %v8802_v5 = vsel %vm3957_vm15, %v4051_v42, %v8771_v0  ;;  %v8806_v57 = vsel %vm3957_vm15, %v4098_v24, %v8774_v62 }
 0x2f9   :  { %v3960_v39 = vadd.f32 %v3958_v1, %v3929_v26  ;;  %v8810_v25 = vsel %vm3957_vm15, %v4145_v22, %v8777_v55  ;;  %v8814_v18 = vsel %vm3957_vm15, %v4192_v40, %v8780_v46  ;;  %v8818_v16 = vsel %vm3957_vm15, %v4239_v10, %v8763_v27 }
 0x2fa   :  { %v8822_v0 = vsel %vm3957_vm15, %v3902_v37, %v8783_v51  ;;  %v4057_v27 = vsel %vm4883_vm6, 1, %v5195_v3 }
 0x2fb   :  { %v3968_v62 = vsel %vm3967_vm9, %v3960_v39, %v8744_v50 }
 0x2fc   :  { %3973 = vrot.lane.b32.xlu0 %v3968_v62, %s5194_s28  ;;  %3970 = vrot.lane.b32.xlu2 %v3968_v62, %s5193_s0 }
 0x304   :  { %4059 = vperm.xlu0 %4910, %v4057_v27  }
 0x356   :  { %v3971_v55 = vpop.permute.xlu2 %3970 }
 0x357   :  { %v3972_v2 = vadd.f32 %v3971_v55, %v8738_v15  ;;  %v4104_v55 = vsel %vm4884_vm3, 1, %v5195_v3 }
 0x359   :  { %v3976_v46 = vmax.f32 %v3968_v62, %v3972_v2 }
 0x36e   :  { %v3974_v11 = vpop.permute.xlu0 %3973 }
 0x36f   :  { %v3975_v36 = vadd.f32 %v3974_v11, %v8742_v17  ;;  %v4198_v11 = vsel %vm4886_vm1, 1, %v5195_v3  ;;  %vm4890_vm1 = vcmp.gt.s32.totalorder %v8642_v29, 9 }
 0x371   :  { %v3977_v9 = vmax.f32 %v3976_v46, %v3975_v36  ;;  %v8846_v46 = vld [vmem:[#allocation8 + $0x18] sm:$0xff] }
 0x373   :  { %v3978_v51 = vsub.f32 %v3968_v62, %v3977_v9  ;;  %v3981_v61 = vsub.f32 %v3972_v2, %v3977_v9  ;;  %v3985_v54 = vsub.f32 %v3975_v36, %v3977_v9  ;;  %v4151_v2 = vsel %vm4885_vm8, 1, %v5195_v3  ;;  %v8849_v36 = vld [vmem:[#allocation8 + $0x48] sm:$0xff] }
 0x374   :  { %vm4889_vm8 = vcmp.gt.s32.totalorder %v8642_v29, 8 }
 0x375   :  { %v3979_v50 = vmul.f32 1.442695, %v3978_v51  ;;  %v3982_v23 = vmul.f32 1.442695, %v3981_v61  ;;  %v3986_v45 = vmul.f32 1.442695, %v3985_v54 }
 0x376   :  { %v4060_v10 = vpop.permute.xlu0 %4059 }
 0x377   :  { %4952 = vpow2.f32 %v3979_v50  ;;  %vm4061_vm14 = vcmp.eq.s32.totalorder %v4060_v10, 1 }
 0x378   :  { %4954 = vpow2.f32 %v3982_v23 }
 0x379   :  { %4956 = vpow2.f32 %v3986_v45 }
 0x37d   :  { %v4953_v38 = vpop.eup %4952 }
 0x37e   :  { %v4955_v6 = vpop.eup %4954 }
 0x37f   :  { %v3984_v19 = vadd.f32 %v4955_v6, %v4953_v38  ;;  %v4957_v49 = vpop.eup %4956 }
 0x381   :  { %v3988_v35 = vadd.f32 %v4957_v49, %v3984_v19 }
 0x383   :  { %4958 = vlog2.f32 %v3988_v35 }
 0x389   :  { %v4959_v43 = vpop.eup %4958 }
 0x38a   :  { %v3990_v12 = vmul.f32 0.6931472, %v4959_v43 }
 0x38c   :  { %v3991_v14 = vadd.f32 %v3990_v12, %v3977_v9 }
 0x38e   :  { %v4007_v30 = vadd.f32 %v4005_v48, %v3991_v14 }
 0x390   :  { %v4015_v52 = vsel %vm4014_vm10, %v4007_v30, %v3968_v62  ;;  %vm4888_vm10 = vcmp.gt.s32.totalorder %v8642_v29, 7 }
 0x391   :  { %4020 = vrot.lane.b32.xlu2 %v4015_v52, %s5194_s28  ;;  %4017 = vrot.lane.b32.xlu1 %v4015_v52, %s5193_s0 }
 0x3eb   :  { %v4021_v59 = vpop.permute.xlu2 %4020 }
 0x3ec   :  { %v4022_v53 = vadd.f32 %v4021_v59, %v8742_v17 }
 0x403   :  { %v4018_v60 = vpop.permute.xlu1 %4017 }
 0x404   :  { %v4019_v31 = vadd.f32 %v4018_v60, %v8738_v15 }
 0x406   :  { %v4023_v21 = vmax.f32 %v4015_v52, %v4019_v31 }
 0x408   :  { %v4024_v33 = vmax.f32 %v4023_v21, %v4022_v53 }
 0x40a   :  { %v4025_v20 = vsub.f32 %v4015_v52, %v4024_v33  ;;  %v4028_v37 = vsub.f32 %v4019_v31, %v4024_v33  ;;  %v4032_v8 = vsub.f32 %v4022_v53, %v4024_v33 }
 0x40c   :  { %v4026_v26 = vmul.f32 1.442695, %v4025_v20  ;;  %v4029_v34 = vmul.f32 1.442695, %v4028_v37  ;;  %v4033_v7 = vmul.f32 1.442695, %v4032_v8 }
 0x40e   :  { %4960 = vpow2.f32 %v4026_v26 }
 0x40f   :  { %4962 = vpow2.f32 %v4029_v34 }
 0x410   :  { %4964 = vpow2.f32 %v4033_v7 }
 0x414   :  { %v4961_v47 = vpop.eup %4960 }
 0x415   :  { %v4963_v63 = vpop.eup %4962 }
 0x416   :  { %v4031_v42 = vadd.f32 %v4963_v63, %v4961_v47  ;;  %v4965_v24 = vpop.eup %4964 }
 0x418   :  { %v4035_v22 = vadd.f32 %v4965_v24, %v4031_v42 }
 0x41a   :  { %4966 = vlog2.f32 %v4035_v22 }
 0x420   :  { %v4967_v40 = vpop.eup %4966 }
 0x421   :  { %v4037_v1 = vmul.f32 0.6931472, %v4967_v40 }
 0x423   :  { %v4038_v48 = vadd.f32 %v4037_v1, %v4024_v33 }
 0x425   :  { %v4054_v39 = vadd.f32 %v8802_v5, %v4038_v48  ;;  %v4245_v5 = vsel %vm4887_vm7, 1, %v5195_v3 }
 0x427   :  { %v4062_v62 = vsel %vm4061_vm14, %v4054_v39, %v4015_v52 }
 0x428   :  { %4067 = vrot.lane.b32.xlu2 %v4062_v62, %s5194_s28  ;;  %4064 = vrot.lane.b32.xlu1 %v4062_v62, %s5193_s0 }
 0x430   :  { %4106 = vperm.xlu1 %4909, %v4104_v55  }
 0x438   :  { %4153 = vperm.xlu1 %4909, %v4151_v2  }
 0x440   :  { %4200 = vperm.xlu1 %4909, %v4198_v11  }
 0x448   :  { %4247 = vperm.xlu1 %4909, %v4245_v5  }
 0x472   :  { %630 = vmax.xlane.f32.xlu1 %v8846_v46 }
 0x47a   :  { %642 = vmax.xlane.f32.xlu1 %v8849_v36 }
 0x482   :  { %650 = vmax.xlane.f32.xlu1 %v8387_v32  ;;  %v4068_v9 = vpop.permute.xlu2 %4067 }
 0x483   :  { %v4069_v61 = vadd.f32 %v4068_v9, %v8742_v17 }
 0x49a   :  { %v4065_v27 = vpop.permute.xlu1 %4064 }
 0x49b   :  { %v4066_v51 = vadd.f32 %v4065_v27, %v8738_v15 }
 0x49d   :  { %v4070_v54 = vmax.f32 %v4062_v62, %v4066_v51 }
 0x49f   :  { %v4071_v50 = vmax.f32 %v4070_v54, %v4069_v61 }
 0x4a1   :  { %v4072_v23 = vsub.f32 %v4062_v62, %v4071_v50  ;;  %v4075_v45 = vsub.f32 %v4066_v51, %v4071_v50  ;;  %v4079_v38 = vsub.f32 %v4069_v61, %v4071_v50 }
 0x4a2   :  { %v4107_v59 = vpop.permute.xlu1 %4106 }
 0x4a3   :  { %v4073_v6 = vmul.f32 1.442695, %v4072_v23  ;;  %v4076_v19 = vmul.f32 1.442695, %v4075_v45  ;;  %v4080_v49 = vmul.f32 1.442695, %v4079_v38 }
 0x4a4   :  { %vm4108_vm12 = vcmp.eq.s32.totalorder %v4107_v59, 1  ;;  %v5117_v59 = vld [vmem:[#allocation8 + $0x28] sm:$0xff] }
 0x4a5   :  { %4968 = vpow2.f32 %v4073_v6 }
 0x4a6   :  { %4970 = vpow2.f32 %v4076_v19 }
 0x4a7   :  { %4972 = vpow2.f32 %v4080_v49 }
 0x4aa   :  { %v4154_v39 = vpop.permute.xlu1 %4153 }
 0x4ab   :  { %v4969_v35 = vpop.eup %4968  ;;  %vm4155_vm9 = vcmp.eq.s32.totalorder %v4154_v39, 1 }
 0x4ac   :  { %v4971_v43 = vpop.eup %4970 }
 0x4ad   :  { %v4078_v32 = vadd.f32 %v4971_v43, %v4969_v35  ;;  %v4973_v12 = vpop.eup %4972 }
 0x4af   :  { %v4082_v28 = vadd.f32 %v4973_v12, %v4078_v32 }
 0x4b1   :  { %4974 = vlog2.f32 %v4082_v28 }
 0x4b2   :  { %v4201_v28 = vpop.permute.xlu1 %4200 }
 0x4b3   :  { %vm4202_vm6 = vcmp.eq.s32.totalorder %v4201_v28, 1 }
 0x4b7   :  { %v4975_v14 = vpop.eup %4974 }
 0x4b8   :  { %v4084_v30 = vmul.f32 0.6931472, %v4975_v14 }
 0x4ba   :  { %v4085_v52 = vadd.f32 %v4084_v30, %v4071_v50  ;;  %v4248_v39 = vpop.permute.xlu1 %4247 }
 0x4bb   :  { %vm4249_vm14 = vcmp.eq.s32.totalorder %v4248_v39, 1 }
 0x4bc   :  { %v4101_v60 = vadd.f32 %v8806_v57, %v4085_v52 }
 0x4be   :  { %v4109_v31 = vsel %vm4108_vm12, %v4101_v60, %v4062_v62  ;;  %v5118_v60 = vld [vmem:[#allocation8 + $0x8] sm:$0xff] }
 0x4bf   :  { %4114 = vrot.lane.b32.xlu0 %v4109_v31, %s5194_s28  ;;  %4111 = vrot.lane.b32.xlu2 %v4109_v31, %s5193_s0 }
 0x519   :  { %v4112_v53 = vpop.permute.xlu2 %4111 }
 0x51a   :  { %v4113_v21 = vadd.f32 %v4112_v53, %v8738_v15  ;;  %v4292_v53 = vsel %vm4888_vm10, 1, %v5195_v3 }
 0x51c   :  { %v4117_v20 = vmax.f32 %v4109_v31, %v4113_v21 }
 0x531   :  { %v4115_v33 = vpop.permute.xlu0 %4114 }
 0x532   :  { %v4116_v37 = vadd.f32 %v4115_v33, %v8742_v17 }
 0x534   :  { %v4118_v8 = vmax.f32 %v4117_v20, %v4116_v37 }
 0x536   :  { %v4119_v26 = vsub.f32 %v4109_v31, %v4118_v8  ;;  %v4122_v34 = vsub.f32 %v4113_v21, %v4118_v8  ;;  %v4126_v7 = vsub.f32 %v4116_v37, %v4118_v8 }
 0x538   :  { %v4120_v47 = vmul.f32 1.442695, %v4119_v26  ;;  %v4123_v63 = vmul.f32 1.442695, %v4122_v34  ;;  %v4127_v57 = vmul.f32 1.442695, %v4126_v7 }
 0x53a   :  { %4976 = vpow2.f32 %v4120_v47 }
 0x53b   :  { %4978 = vpow2.f32 %v4123_v63 }
 0x53c   :  { %4980 = vpow2.f32 %v4127_v57 }
 0x540   :  { %v4977_v42 = vpop.eup %4976 }
 0x541   :  { %v4979_v24 = vpop.eup %4978 }
 0x542   :  { %v4125_v22 = vadd.f32 %v4979_v24, %v4977_v42  ;;  %v4981_v40 = vpop.eup %4980 }
 0x544   :  { %v4129_v10 = vadd.f32 %v4981_v40, %v4125_v22 }
 0x546   :  { %4982 = vlog2.f32 %v4129_v10 }
 0x54c   :  { %v4983_v1 = vpop.eup %4982 }
 0x54d   :  { %v4131_v48 = vmul.f32 0.6931472, %v4983_v1 }
 0x54f   :  { %v4132_v62 = vadd.f32 %v4131_v48, %v4118_v8 }
 0x551   :  { %v4148_v55 = vadd.f32 %v8810_v25, %v4132_v62 }
 0x553   :  { %v4156_v2 = vsel %vm4155_vm9, %v4148_v55, %v4109_v31  ;;  %v8868_v31 = vld [vmem:[#allocation8 + $0x38] sm:$0xff] }
 0x554   :  { %4161 = vrot.lane.b32.xlu0 %v4156_v2, %s5194_s28  ;;  %4158 = vrot.lane.b32.xlu2 %v4156_v2, %s5193_s0 }
 0x5ae   :  { %v4159_v11 = vpop.permute.xlu2 %4158 }
 0x5af   :  { %v4160_v5 = vadd.f32 %v4159_v11, %v8738_v15  ;;  %v8882_v11 = vpop.xlane.xlu1 %630 }
 0x5b1   :  { %v4164_v27 = vmax.f32 %v4156_v2, %v4160_v5 }
 0x5c6   :  { %v4162_v9 = vpop.permute.xlu0 %4161 }
 0x5c7   :  { %v4163_v51 = vadd.f32 %v4162_v9, %v8742_v17 }
 0x5c9   :  { %v4165_v61 = vmax.f32 %v4164_v27, %v4163_v51 }
 0x5cb   :  { %v4166_v54 = vsub.f32 %v4156_v2, %v4165_v61  ;;  %v4169_v50 = vsub.f32 %v4160_v5, %v4165_v61  ;;  %v4173_v23 = vsub.f32 %v4163_v51, %v4165_v61  ;;  %v659_v5 = vsub.f32 %v8846_v46, %v8882_v11  ;;  %v8889_v51 = vld [vmem:[#allocation8 + $0x58] sm:$0xff]  ;;  %v8896_v46 = vpop.xlane.xlu1 %642 }
 0x5cd   :  { %v4167_v45 = vmul.f32 1.442695, %v4166_v54  ;;  %v4170_v38 = vmul.f32 1.442695, %v4169_v50  ;;  %v4174_v25 = vmul.f32 1.442695, %v4173_v23 }
 0x5ce   :  { %v678_v9 = vmul.f32 1.442695, %v659_v5 }
 0x5cf   :  { %4984 = vpow2.f32 %v4167_v45 }
 0x5d0   :  { %4986 = vpow2.f32 %v4170_v38 }
 0x5d1   :  { %4988 = vpow2.f32 %v4174_v25  ;;  %v665_v25 = vsub.f32 %v8849_v36, %v8896_v46 }
 0x5d5   :  { %v4985_v6 = vpop.eup %4984 }
 0x5d6   :  { %v4987_v19 = vpop.eup %4986 }
 0x5d7   :  { %v4172_v49 = vadd.f32 %v4987_v19, %v4985_v6  ;;  %v4989_v35 = vpop.eup %4988  ;;  %v690_v6 = vmul.f32 1.442695, %v665_v25  ;;  %v8900_v19 = vpop.xlane.xlu1 %650 }
 0x5d9   :  { %v4176_v43 = vadd.f32 %v4989_v35, %v4172_v49  ;;  %v5121_v49 = vld [vmem:[#allocation8 + $0x68] sm:$0xff] }
 0x5da   :  { %v669_v35 = vsub.f32 %v5121_v49, %v8900_v19 }
 0x5db   :  { %4990 = vlog2.f32 %v4176_v43 }
 0x5dc   :  { %v698_v43 = vmul.f32 1.442695, %v669_v35  ;;  %v9627_v35 = vld [vmem:[#allocation60_spill] sm:$0xff] }
 0x5e1   :  { %v4991_v32 = vpop.eup %4990 }
 0x5e2   :  { %v4178_v12 = vmul.f32 0.6931472, %v4991_v32 }
 0x5e4   :  { %v4179_v14 = vadd.f32 %v4178_v12, %v4165_v61 }
 0x5e6   :  { %v4195_v30 = vadd.f32 %v8814_v18, %v4179_v14 }
 0x5e8   :  { %v4203_v52 = vsel %vm4202_vm6, %v4195_v30, %v4156_v2 }
 0x5e9   :  { %4208 = vrot.lane.b32.xlu0 %v4203_v52, %s5194_s28  ;;  %4205 = vrot.lane.b32.xlu2 %v4203_v52, %s5193_s0 }
 0x612   :  { %634 = vmax.xlane.f32.xlu2 %v5117_v59 }
 0x613   :  { %626 = vmax.xlane.f32.xlu0 %v5118_v60 }
 0x61a   :  { %638 = vmax.xlane.f32.xlu2 %v8868_v31 }
 0x627   :  { %4294 = vperm.xlu0 %4910, %v4292_v53  }
 0x643   :  { %v4206_v18 = vpop.permute.xlu2 %4205 }
 0x644   :  { %v4207_v21 = vadd.f32 %v4206_v18, %v8738_v15 }
 0x646   :  { %v4211_v20 = vmax.f32 %v4203_v52, %v4207_v21 }
 0x65b   :  { %v4209_v33 = vpop.permute.xlu0 %4208 }
 0x65c   :  { %v4210_v37 = vadd.f32 %v4209_v33, %v8742_v17 }
 0x65e   :  { %v4212_v8 = vmax.f32 %v4211_v20, %v4210_v37 }
 0x660   :  { %v4213_v26 = vsub.f32 %v4203_v52, %v4212_v8  ;;  %v4216_v34 = vsub.f32 %v4207_v21, %v4212_v8  ;;  %v4220_v7 = vsub.f32 %v4210_v37, %v4212_v8 }
 0x662   :  { %v4214_v47 = vmul.f32 1.442695, %v4213_v26  ;;  %v4217_v63 = vmul.f32 1.442695, %v4216_v34  ;;  %v4221_v57 = vmul.f32 1.442695, %v4220_v7 }
 0x664   :  { %4992 = vpow2.f32 %v4214_v47 }
 0x665   :  { %4994 = vpow2.f32 %v4217_v63 }
 0x666   :  { %4996 = vpow2.f32 %v4221_v57 }
 0x66a   :  { %v4993_v42 = vpop.eup %4992 }
 0x66b   :  { %v4995_v24 = vpop.eup %4994 }
 0x66c   :  { %v4219_v22 = vadd.f32 %v4995_v24, %v4993_v42  ;;  %v4997_v40 = vpop.eup %4996 }
 0x66e   :  { %v4223_v10 = vadd.f32 %v4997_v40, %v4219_v22 }
 0x670   :  { %4998 = vlog2.f32 %v4223_v10 }
 0x671   :  { %5000 = vpow2.f32 %v678_v9 }
 0x676   :  { %v4999_v1 = vpop.eup %4998 }
 0x677   :  { %v4225_v48 = vmul.f32 0.6931472, %v4999_v1  ;;  %v5001_v54 = vpop.eup %5000  ;;  %v5122_v1 = vld [vmem:[#allocation8 + $0x78] sm:$0xff] }
 0x679   :  { %v4226_v62 = vadd.f32 %v4225_v48, %v4212_v8 }
 0x67b   :  { %v4242_v55 = vadd.f32 %v8818_v16, %v4226_v62 }
 0x67d   :  { %v8876_v2 = vsel %vm4249_vm14, %v4242_v55, %v4203_v52 }
 0x67e   :  { %4255 = vrot.lane.b32.xlu0 %v8876_v2, %s5194_s28  ;;  %4252 = vrot.lane.b32.xlu2 %v8876_v2, %s5193_s0 }
 0x685   :  { %v8886_v27 = vpop.xlane.xlu2 %634 }
 0x686   :  { %v661_v16 = vsub.f32 %v5117_v59, %v8886_v27  ;;  %v8893_v50 = vpop.xlane.xlu0 %626 }
 0x687   :  { %v657_v23 = vsub.f32 %v5118_v60, %v8893_v50 }
 0x688   :  { %v682_v61 = vmul.f32 1.442695, %v661_v16 }
 0x689   :  { %v674_v45 = vmul.f32 1.442695, %v657_v23 }
 0x68a   :  { %5002 = vpow2.f32 %v682_v61 }
 0x68b   :  { %5004 = vpow2.f32 %v674_v45 }
 0x68c   :  { %5006 = vpow2.f32 %v690_v6 }
 0x68d   :  { %5008 = vpow2.f32 %v698_v43  ;;  %v8903_v28 = vpop.xlane.xlu2 %638 }
 0x68e   :  { %v663_v9 = vsub.f32 %v8868_v31, %v8903_v28 }
 0x690   :  { %v5003_v38 = vpop.eup %5002 }
 0x699   :  { %v4295_v14 = vpop.permute.xlu0 %4294 }
 0x69a   :  { %vm4296_vm3 = vcmp.eq.s32.totalorder %v4295_v14, 1  ;;  %v9628_v14 = vld [vmem:[#allocation45_spill] sm:$0xff] }
 0x6a7   :  { %646 = vmax.xlane.f32.xlu2 %v8889_v51 }
 0x6a8   :  { %654 = vmax.xlane.f32.xlu0 %v8558_v58  ;;  %v5005_v58 = vpop.eup %5004 }
 0x6a9   :  { %v5007_v32 = vpop.eup %5006 }
 0x6aa   :  { %v5009_v12 = vpop.eup %5008 }
 0x6b0   :  { %710 = vadd.xlane.f32.xlu0 %v5001_v54  ;;  %v686_v54 = vmul.f32 1.442695, %v663_v9 }
 0x6b8   :  { %714 = vadd.xlane.f32.xlu0 %v5003_v38 }
 0x6c0   :  { %706 = vadd.xlane.f32.xlu0 %v5005_v58  ;;  %v4347_v58 = vsel %vm4889_vm8, 1, %v5195_v3 }
 0x6c8   :  { %722 = vadd.xlane.f32.xlu0 %v5007_v32 }
 0x6d0   :  { %730 = vadd.xlane.f32.xlu0 %v5009_v12 }
 0x6d8   :  { %v4253_v36 = vpop.permute.xlu2 %4252 }
 0x6d9   :  { %v4254_v30 = vadd.f32 %v4253_v36, %v8738_v15 }
 0x6db   :  { %v4258_v59 = vmax.f32 %v8876_v2, %v4254_v30 }
 0x6f0   :  { %v4256_v52 = vpop.permute.xlu0 %4255 }
 0x6f1   :  { %v4257_v60 = vadd.f32 %v4256_v52, %v8742_v17 }
 0x6f3   :  { %v4259_v53 = vmax.f32 %v4258_v59, %v4257_v60 }
 0x6f5   :  { %v4260_v18 = vsub.f32 %v8876_v2, %v4259_v53  ;;  %v4263_v21 = vsub.f32 %v4254_v30, %v4259_v53  ;;  %v4267_v33 = vsub.f32 %v4257_v60, %v4259_v53  ;;  %v9629_v60 = vld [vmem:[#allocation50_spill] sm:$0xff] }
 0x6f7   :  { %v4261_v20 = vmul.f32 1.442695, %v4260_v18  ;;  %v4264_v37 = vmul.f32 1.442695, %v4263_v21  ;;  %v4268_v8 = vmul.f32 1.442695, %v4267_v33 }
 0x6f9   :  { %5010 = vpow2.f32 %v4261_v20 }
 0x6fa   :  { %5012 = vpow2.f32 %v4264_v37 }
 0x6fb   :  { %5014 = vpow2.f32 %v4268_v8 }
 0x6ff   :  { %v5011_v26 = vpop.eup %5010 }
 0x700   :  { %v5013_v34 = vpop.eup %5012 }
 0x701   :  { %v4266_v7 = vadd.f32 %v5013_v34, %v5011_v26  ;;  %v5015_v47 = vpop.eup %5014 }
 0x703   :  { %v4270_v63 = vadd.f32 %v5015_v47, %v4266_v7 }
 0x705   :  { %5016 = vlog2.f32 %v4270_v63 }
 0x70b   :  { %v5017_v57 = vpop.eup %5016 }
 0x70c   :  { %v4272_v42 = vmul.f32 0.6931472, %v5017_v57 }
 0x70e   :  { %v4273_v24 = vadd.f32 %v4272_v42, %v4259_v53 }
 0x710   :  { %v4289_v22 = vadd.f32 %v8822_v0, %v4273_v24 }
 0x712   :  { %v8911_v40 = vsel %vm4296_vm3, %v4289_v22, %v8876_v2 }
 0x713   :  { %4302 = vrot.lane.b32.xlu1 %v8911_v40, %s5194_s28  ;;  %4299 = vrot.lane.b32.xlu2 %v8911_v40, %s5193_s0 }
 0x71a   :  { %v8920_v0 = vpop.xlane.xlu2 %646 }
 0x71b   :  { %v8917_v10 = vpop.xlane.xlu0 %654  ;;  %v667_v5 = vsub.f32 %v8889_v51, %v8920_v0 }
 0x71c   :  { %v671_v48 = vsub.f32 %v5122_v1, %v8917_v10 }
 0x71d   :  { %v694_v61 = vmul.f32 1.442695, %v667_v5 }
 0x71e   :  { %v702_v39 = vmul.f32 1.442695, %v671_v48 }
 0x720   :  { %5018 = vpow2.f32 %v702_v39 }
 0x723   :  { %v711_v62 = vpop.xlane.xlu0 %710 }
 0x724   :  { %5020 = vlog2.f32 %v711_v62 }
 0x726   :  { %v5019_v55 = vpop.eup %5018 }
 0x727   :  { %734 = vadd.xlane.f32.xlu0 %v5019_v55 }
 0x72a   :  { %v5021_v16 = vpop.eup %5020 }
 0x72b   :  { %v715_v2 = vpop.xlane.xlu0 %714  ;;  %v743_v45 = vmul.f32 0.6931472, %v5021_v16 }
 0x72c   :  { %5022 = vlog2.f32 %v715_v2 }
 0x72d   :  { %5024 = vpow2.f32 %v694_v61  ;;  %v771_v6 = vadd.f32 %v743_v45, %v8882_v11  ;;  %v4394_v11 = vsel %vm4890_vm1, 1, %v5195_v3 }
 0x72f   :  { %v3891_v43 = vsub.f32 %v9627_v35, %v771_v6 }
 0x731   :  { %v4424_v52 = vrot.slane %v3891_v43, 1  ;;  %v4471_v59 = vrot.slane %v3891_v43, 2  ;;  %v4518_v18 = vrot.slane %v3891_v43, 3  ;;  %v4565_v21 = vrot.slane %v3891_v43, 4 }
 0x732   :  { %v5023_v23 = vpop.eup %5022  ;;  %v4612_v33 = vrot.slane %v3891_v43, 5  ;;  %v4659_v61 = vrot.slane %v3891_v43, 6 }
 0x733   :  { %v707_v38 = vpop.xlane.xlu0 %706  ;;  %v747_v25 = vmul.f32 0.6931472, %v5023_v23  ;;  %v5025_v49 = vpop.eup %5024 }
 0x734   :  { %5026 = vlog2.f32 %v707_v38 }
 0x735   :  { %5028 = vpow2.f32 %v686_v54  ;;  %v773_v51 = vadd.f32 %v747_v25, %v8886_v27  ;;  %v4329_v27 = vrot.slane %v3891_v43, 7 }
 0x737   :  { %v3893_v36 = vsub.f32 %v9628_v14, %v773_v51 }
 0x739   :  { %v4331_v20 = vrot.slane %v3893_v36, 6  ;;  %v4378_v37 = vrot.slane %v3893_v36, 7  ;;  %v4473_v8 = vrot.slane %v3893_v36, 1  ;;  %v4520_v29 = vrot.slane %v3893_v36, 2 }
 0x73a   :  { %v5027_v31 = vpop.eup %5026  ;;  %v4567_v48 = vrot.slane %v3893_v36, 3  ;;  %v4614_v2 = vrot.slane %v3893_v36, 4  ;;  %v4661_v6 = vrot.slane %v3893_v36, 5 }
 0x73b   :  { %v5029_v32 = vpop.eup %5028  ;;  %v739_v12 = vmul.f32 0.6931472, %v5027_v31  ;;  %4349 = vperm.xlu0 %4910, %v4347_v58  }
 0x73c   :  { %718 = vadd.xlane.f32.xlu2 %v5029_v32 }
 0x73d   :  { %v769_v30 = vadd.f32 %v739_v12, %v8893_v50  ;;  %726 = vadd.xlane.f32.xlu1 %v5025_v49  ;;  %v723_v12 = vpop.xlane.xlu0 %722 }
 0x73f   :  { %v3889_v53 = vsub.f32 %v9629_v60, %v769_v30 }
 0x741   :  { %v4330_v26 = vsel %vm3939_vm2, %v4329_v27, %v3889_v53  ;;  %v4376_v34 = vrot.slane %v3889_v53, 1  ;;  %v4423_v7 = vrot.slane %v3889_v53, 2  ;;  %v4470_v50 = vrot.slane %v3889_v53, 3 }
 0x742   :  { %v8938_v47 = vsel %vm3942_vm11, %v4331_v20, %v4330_v26  ;;  %v4517_v63 = vrot.slane %v3889_v53, 4  ;;  %v4564_v57 = vrot.slane %v3889_v53, 5  ;;  %v4611_v42 = vrot.slane %v3889_v53, 6 }
 0x743   :  { %4396 = vperm.xlu0 %4910, %v4394_v11   ;;  %v4377_v24 = vsel %vm3939_vm2, %v3891_v43, %v4376_v34  ;;  %v4425_v22 = vsel %vm3939_vm2, %v4424_v52, %v4423_v7  ;;  %v4472_v1 = vsel %vm3939_vm2, %v4471_v59, %v4470_v50  ;;  %v4658_v38 = vrot.slane %v3889_v53, 7 }
 0x744   :  { %v8944_v39 = vsel %vm3942_vm11, %v4378_v37, %v4377_v24  ;;  %v8947_v62 = vsel %vm3942_vm11, %v3893_v36, %v4425_v22  ;;  %v8950_v55 = vsel %vm3942_vm11, %v4473_v8, %v4472_v1  ;;  %v4519_v5 = vsel %vm3939_vm2, %v4518_v18, %v4517_v63  ;;  %v3771_v37 = vpop.f32.mrf.mxu1  ;;  %v3844_v63 = vpop.f32.mrf.mxu2 }
 0x745   :  { %v4566_v9 = vsel %vm3939_vm2, %v4565_v21, %v4564_v57  ;;  %v4613_v16 = vsel %vm3939_vm2, %v4612_v33, %v4611_v42  ;;  %v8956_v54 = vsel %vm3942_vm11, %v4520_v29, %v4519_v5  ;;  %v4660_v25 = vsel %vm3939_vm2, %v4659_v61, %v4658_v38  ;;  %v731_v27 = vpop.xlane.xlu0 %730  ;;  %v3726_v33 = vpop.f32.mrf.mxu0 }
 0x746   :  { %v8959_v23 = vsel %vm3942_vm11, %v4567_v48, %v4566_v9  ;;  %v8962_v45 = vsel %vm3942_vm11, %v4614_v2, %v4613_v16  ;;  %v8966_v51 = vsel %vm3942_vm11, %v4661_v6, %v4660_v25  ;;  %v3727_v26 = vadd.f32 %v3726_v33, %v8788_v44  ;;  %v3885_v2 = vpop.f32.mrf.mxu3 }
 0x748   :  { %v3772_v50 = vadd.f32 %v3771_v37, %v3727_v26 }
 0x74a   :  { %v3845_v48 = vadd.f32 %v3844_v63, %v3772_v50 }
 0x76d   :  { %v4300_v58 = vpop.permute.xlu2 %4299 }
 0x76e   :  { %v4301_v31 = vadd.f32 %v4300_v58, %v8738_v15 }
 0x770   :  { %v4305_v43 = vmax.f32 %v8911_v40, %v4301_v31 }
 0x785   :  { %v4303_v49 = vpop.permute.xlu1 %4302 }
 0x786   :  { %v4304_v35 = vadd.f32 %v4303_v49, %v8742_v17 }
 0x788   :  { %v8971_v32 = vmax.f32 %v4305_v43, %v4304_v35 }
 0x78a   :  { %v4307_v14 = vsub.f32 %v8911_v40, %v8971_v32  ;;  %v4310_v30 = vsub.f32 %v4301_v31, %v8971_v32  ;;  %v4314_v52 = vsub.f32 %v4304_v35, %v8971_v32 }
 0x78c   :  { %v4308_v36 = vmul.f32 1.442695, %v4307_v14  ;;  %v4311_v11 = vmul.f32 1.442695, %v4310_v30  ;;  %v4315_v15 = vmul.f32 1.442695, %v4314_v52 }
 0x78e   :  { %5030 = vpow2.f32 %v4308_v36 }
 0x78f   :  { %5032 = vpow2.f32 %v4311_v11 }
 0x790   :  { %5034 = vlog2.f32 %v723_v12 }
 0x791   :  { %5036 = vlog2.f32 %v731_v27 }
 0x792   :  { %5038 = vpow2.f32 %v4315_v15 }
 0x794   :  { %v5031_v17 = vpop.eup %5030 }
 0x795   :  { %v5033_v59 = vpop.eup %5032 }
 0x796   :  { %v4313_v53 = vadd.f32 %v5033_v59, %v5031_v17  ;;  %v5035_v18 = vpop.eup %5034 }
 0x797   :  { %v5037_v21 = vpop.eup %5036  ;;  %v755_v8 = vmul.f32 0.6931472, %v5035_v18 }
 0x798   :  { %v5039_v20 = vpop.eup %5038  ;;  %v763_v7 = vmul.f32 0.6931472, %v5037_v21 }
 0x799   :  { %v4317_v29 = vadd.f32 %v5039_v20, %v4313_v53  ;;  %v777_v57 = vadd.f32 %v755_v8, %v8896_v46  ;;  %v3886_v46 = vadd.f32 %v3885_v2, %v3845_v48 }
 0x79a   :  { %v735_v60 = vpop.xlane.xlu0 %734  ;;  %v781_v22 = vadd.f32 %v763_v7, %v8900_v19 }
 0x79b   :  { %5040 = vlog2.f32 %v735_v60  ;;  %v8981_v5 = vsub.f32 %v8710_v41, %v777_v57 }
 0x79c   :  { %5042 = vlog2.f32 %v4317_v29  ;;  %v8985_v16 = vsub.f32 %v8786_v4, %v781_v22 }
 0x79d   :  { %v4335_v38 = vrot.slane %v8981_v5, 4  ;;  %v4382_v19 = vrot.slane %v8981_v5, 5  ;;  %v4429_v25 = vrot.slane %v8981_v5, 6  ;;  %v4476_v6 = vrot.slane %v8981_v5, 7 }
 0x79e   :  { %v4339_v4 = vrot.slane %v8985_v16, 2  ;;  %v4618_v43 = vrot.slane %v8981_v5, 2  ;;  %v4665_v12 = vrot.slane %v8981_v5, 3  ;;  %v4386_v30 = vrot.slane %v8985_v16, 3 }
 0x79f   :  { %v4433_v36 = vrot.slane %v8985_v16, 4  ;;  %v4480_v11 = vrot.slane %v8985_v16, 5  ;;  %v4527_v15 = vrot.slane %v8985_v16, 6  ;;  %v4574_v17 = vrot.slane %v8985_v16, 7 }
 0x7a0   :  { %v4669_v59 = vrot.slane %v8985_v16, 1 }
 0x7a1   :  { %v5041_v34 = vpop.eup %5040 }
 0x7a2   :  { %v767_v42 = vmul.f32 0.6931472, %v5041_v34  ;;  %v5043_v9 = vpop.eup %5042 }
 0x7a3   :  { %v4319_v49 = vmul.f32 0.6931472, %v5043_v9 }
 0x7a4   :  { %v783_v44 = vadd.f32 %v767_v42, %v8917_v10  ;;  %v4571_v10 = vrot.slane %v8981_v5, 1 }
 0x7a5   :  { %v4320_v60 = vadd.f32 %v4319_v49, %v8971_v32 }
 0x7a6   :  { %v8991_v41 = vsub.f32 %v3886_v46, %v783_v44 }
 0x7a8   :  { %v4388_v18 = vrot.slane %v8991_v41, 2  ;;  %v4435_v33 = vrot.slane %v8991_v41, 3  ;;  %v4529_v20 = vrot.slane %v8991_v41, 5 }
 0x7ad   :  { %v4350_v27 = vpop.permute.xlu0 %4349 }
 0x7ae   :  { %vm4351_vm2 = vcmp.eq.s32.totalorder %v4350_v27, 1  ;;  %v4576_v27 = vrot.slane %v8991_v41, 6 }
 0x7af   :  { %v719_v24 = vpop.xlane.xlu2 %718 }
 0x7b0   :  { %5044 = vlog2.f32 %v719_v24  ;;  %v727_v1 = vpop.xlane.xlu1 %726 }
 0x7b1   :  { %5046 = vlog2.f32 %v727_v1 }
 0x7b6   :  { %v5045_v61 = vpop.eup %5044 }
 0x7b7   :  { %v5047_v58 = vpop.eup %5046  ;;  %v751_v31 = vmul.f32 0.6931472, %v5045_v61 }
 0x7b8   :  { %v759_v35 = vmul.f32 0.6931472, %v5047_v58 }
 0x7b9   :  { %v775_v14 = vadd.f32 %v751_v31, %v8903_v28  ;;  %v4341_v28 = vrot.slane %v8991_v41, 1 }
 0x7ba   :  { %v779_v52 = vadd.f32 %v759_v35, %v8920_v0  ;;  %v4482_v0 = vrot.slane %v8991_v41, 4 }
 0x7bb   :  { %v3895_v53 = vsub.f32 %v8504_v13, %v775_v14 }
 0x7bc   :  { %v9010_v21 = vsub.f32 %v8736_v56, %v779_v52 }
 0x7bd   :  { %v4333_v37 = vrot.slane %v3895_v53, 5  ;;  %v4380_v8 = vrot.slane %v3895_v53, 6  ;;  %v4427_v29 = vrot.slane %v3895_v53, 7  ;;  %v4475_v13 = vsel %vm3945_vm0, %v3895_v53, %v8950_v55 }
 0x7be   :  { %v4337_v32 = vrot.slane %v9010_v21, 3  ;;  %v4384_v26 = vrot.slane %v9010_v21, 4  ;;  %v4431_v56 = vrot.slane %v9010_v21, 5  ;;  %v4477_v34 = vsel %vm3948_vm5, %v4476_v6, %v4475_v13  ;;  %v9110_v13 = vld [vmem:[#allocation5] sm:$0xff] }
 0x7bf   :  { %v4334_v7 = vsel %vm3945_vm0, %v4333_v37, %v8938_v47  ;;  %v4381_v50 = vsel %vm3945_vm0, %v4380_v8, %v8944_v39  ;;  %v4428_v63 = vsel %vm3945_vm0, %v4427_v29, %v8947_v62  ;;  %v4478_v57 = vrot.slane %v9010_v21, 6 }
 0x7c0   :  { %v4336_v55 = vsel %vm3948_vm5, %v4335_v38, %v4334_v7  ;;  %v4383_v42 = vsel %vm3948_vm5, %v4382_v19, %v4381_v50  ;;  %v4430_v24 = vsel %vm3948_vm5, %v4429_v25, %v4428_v63  ;;  %v4522_v22 = vrot.slane %v3895_v53, 1  ;;  %v5125_v50 = vld [vmem:[%s9169_s3] sm:$0xff] }
 0x7c1   :  { %v4338_v1 = vsel %vm3951_vm13, %v4337_v32, %v4336_v55  ;;  %v4385_v48 = vsel %vm3951_vm13, %v4384_v26, %v4383_v42  ;;  %v4432_v47 = vsel %vm3951_vm13, %v4431_v56, %v4430_v24  ;;  %v4479_v39 = vsel %vm3951_vm13, %v4478_v57, %v4477_v34 }
 0x7c2   :  { %v4340_v2 = vsel %vm3954_vm4, %v4339_v4, %v4338_v1  ;;  %v4387_v62 = vsel %vm3954_vm4, %v4386_v30, %v4385_v48  ;;  %v4434_v44 = vsel %vm3954_vm4, %v4433_v36, %v4432_v47  ;;  %v4481_v9 = vsel %vm3954_vm4, %v4480_v11, %v4479_v39 }
 0x7c3   :  { %v4342_v46 = vsel %vm3957_vm15, %v4341_v28, %v4340_v2  ;;  %v9041_v61 = vsel %vm3957_vm15, %v4388_v18, %v4387_v62  ;;  %v9044_v38 = vsel %vm3957_vm15, %v4435_v33, %v4434_v44  ;;  %v9047_v19 = vsel %vm3957_vm15, %v4482_v0, %v4481_v9  ;;  %v4397_v2 = vpop.permute.xlu0 %4396 }
 0x7c4   :  { %v4344_v25 = vadd.f32 %v4342_v46, %v4320_v60  ;;  %v4523_v6 = vsel %vm3945_vm0, %v4522_v22, %v8956_v54  ;;  %v4525_v58 = vrot.slane %v9010_v21, 7  ;;  %v4569_v49 = vrot.slane %v3895_v53, 2 }
 0x7c5   :  { %v4524_v31 = vsel %vm3948_vm5, %v8981_v5, %v4523_v6  ;;  %v4616_v35 = vrot.slane %v3895_v53, 3  ;;  %v4620_v4 = vrot.slane %v9010_v21, 1  ;;  %v4663_v14 = vrot.slane %v3895_v53, 4 }
 0x7c6   :  { %v9057_v30 = vsel %vm4351_vm2, %v4344_v25, %v8911_v40  ;;  %v4526_v36 = vsel %vm3951_vm13, %v4525_v58, %v4524_v31  ;;  %v4570_v11 = vsel %vm3945_vm0, %v4569_v49, %v8959_v23  ;;  %v4667_v54 = vrot.slane %v9010_v21, 2 }
 0x7c7   :  { %4357 = vrot.lane.b32.xlu1 %v9057_v30, %s5194_s28  ;;  %4354 = vrot.lane.b32.xlu2 %v9057_v30, %s5193_s0  ;;  %v4528_v52 = vsel %vm3954_vm4, %v4527_v15, %v4526_v36  ;;  %v4572_v40 = vsel %vm3948_vm5, %v4571_v10, %v4570_v11  ;;  %v4617_v60 = vsel %vm3945_vm0, %v4616_v35, %v8962_v45  ;;  %v4623_v33 = vrot.slane %v8991_v41, 7 }
 0x7c8   :  { %v9075_v23 = vsel %vm3957_vm15, %v4529_v20, %v4528_v52  ;;  %v4573_v53 = vsel %vm3951_vm13, %v9010_v21, %v4572_v40  ;;  %v4619_v28 = vsel %vm3948_vm5, %v4618_v43, %v4617_v60  ;;  %v4664_v15 = vsel %vm3945_vm0, %v4663_v14, %v8966_v51  ;;  %v9106_v20 = vld [vmem:[#allocation4] sm:$0xff] }
 0x7c9   :  { %v4575_v10 = vsel %vm3954_vm4, %v4574_v17, %v4573_v53  ;;  %v4621_v18 = vsel %vm3951_vm13, %v4620_v4, %v4619_v28  ;;  %v4666_v45 = vsel %vm3948_vm5, %v4665_v12, %v4664_v15  ;;  %vm4891_vm11 = vcmp.gt.s32.totalorder %v5125_v50, 10 }
 0x7ca   :  { %v9091_v0 = vsel %vm3957_vm15, %v4576_v27, %v4575_v10  ;;  %v4622_v21 = vsel %vm3954_vm4, %v8985_v16, %v4621_v18  ;;  %v4668_v43 = vsel %vm3951_vm13, %v4667_v54, %v4666_v45  ;;  %v4441_v63 = vsel %vm4891_vm11, 1, %v5195_v3 }
 0x7cb   :  { %v9097_v51 = vsel %vm3957_vm15, %v4623_v33, %v4622_v21  ;;  %v4670_v17 = vsel %vm3954_vm4, %v4669_v59, %v4668_v43  ;;  %vm4892_vm0 = vcmp.gt.s32.totalorder %v5125_v50, 11  ;;  %vm4893_vm5 = vcmp.gt.s32.totalorder %v5125_v50, 12 }
 0x7cc   :  { %v9104_v5 = vsel %vm3957_vm15, %v8991_v41, %v4670_v17  ;;  %v4488_v22 = vsel %vm4892_vm0, 1, %v5195_v3  ;;  %v4535_v48 = vsel %vm4893_vm5, 1, %v5195_v3  ;;  %vm4894_vm13 = vcmp.gt.s32.totalorder %v5125_v50, 13 }
 0x7cd   :  { %vm4398_vm4 = vcmp.eq.s32.totalorder %v4397_v2, 1  ;;  %v4582_v46 = vsel %vm4894_vm13, 1, %v5195_v3  ;;  %vm4895_vm15 = vcmp.gt.s32.totalorder %v5125_v50, 14  ;;  %vm4896_vm7 = vcmp.gt.s32.totalorder %v5125_v50, 15 }
 0x7ce   :  { %v4629_v25 = vsel %vm4895_vm15, 1, %v5195_v3  ;;  %v4676_v6 = vsel %vm4896_vm7, 1, %v5195_v3 }
 0x7cf   :  { %4443 = vperm.xlu2 %4911, %v4441_v63  }
 0x7d7   :  { %4490 = vperm.xlu2 %4911, %v4488_v22  }
 0x7df   :  { %4537 = vperm.xlu2 %4911, %v4535_v48  }
 0x7e7   :  { %4584 = vperm.xlu2 %4911, %v4582_v46  }
 0x7ef   :  { %4631 = vperm.xlu2 %4911, %v4629_v25  }
 0x7f7   :  { %4678 = vperm.xlu2 %4911, %v4676_v6  }
 0x821   :  { %v4355_v12 = vpop.permute.xlu2 %4354 }
 0x822   :  { %v4356_v37 = vadd.f32 %v9106_v20, %v4355_v12 }
 0x824   :  { %v4360_v29 = vmax.f32 %v9057_v30, %v4356_v37 }
 0x829   :  { %v4444_v10 = vpop.permute.xlu2 %4443 }
 0x82a   :  { %vm4445_vm12 = vcmp.eq.s32.totalorder %v4444_v10, 1 }
 0x839   :  { %v4358_v8 = vpop.permute.xlu1 %4357 }
 0x83a   :  { %v4359_v32 = vadd.f32 %v9110_v13, %v4358_v8 }
 0x83c   :  { %v4361_v26 = vmax.f32 %v4360_v29, %v4359_v32 }
 0x83e   :  { %v4362_v16 = vsub.f32 %v9057_v30, %v4361_v26  ;;  %v4365_v59 = vsub.f32 %v4356_v37, %v4361_v26  ;;  %v4369_v56 = vsub.f32 %v4359_v32, %v4361_v26 }
 0x840   :  { %v4363_v34 = vmul.f32 1.442695, %v4362_v16  ;;  %v4366_v41 = vmul.f32 1.442695, %v4365_v59  ;;  %v4370_v7 = vmul.f32 1.442695, %v4369_v56 }
 0x842   :  { %5048 = vpow2.f32 %v4363_v34 }
 0x843   :  { %5050 = vpow2.f32 %v4366_v41 }
 0x844   :  { %5052 = vpow2.f32 %v4370_v7 }
 0x848   :  { %v5049_v57 = vpop.eup %5048 }
 0x849   :  { %v5051_v55 = vpop.eup %5050 }
 0x84a   :  { %v4368_v42 = vadd.f32 %v5051_v55, %v5049_v57  ;;  %v5053_v24 = vpop.eup %5052 }
 0x84c   :  { %v4372_v1 = vadd.f32 %v5053_v24, %v4368_v42  ;;  %v4491_v42 = vpop.permute.xlu2 %4490 }
 0x84d   :  { %vm4492_vm9 = vcmp.eq.s32.totalorder %v4491_v42, 1 }
 0x84e   :  { %5054 = vlog2.f32 %v4372_v1 }
 0x854   :  { %v5055_v47 = vpop.eup %5054 }
 0x855   :  { %v4374_v39 = vmul.f32 0.6931472, %v5055_v47 }
 0x857   :  { %v4375_v62 = vadd.f32 %v4374_v39, %v4361_v26 }
 0x859   :  { %v4391_v44 = vadd.f32 %v9041_v61, %v4375_v62 }
 0x85b   :  { %v4399_v9 = vsel %vm4398_vm4, %v4391_v44, %v9057_v30 }
 0x85c   :  { %4401 = vrot.lane.b32.xlu0 %v4399_v9, %s5193_s0 }
 0x864   :  { %4404 = vrot.lane.b32.xlu0 %v4399_v9, %s5194_s28 }
 0x8ce   :  { %v4402_v58 = vpop.permute.xlu0 %4401 }
 0x8cf   :  { %v4403_v61 = vadd.f32 %v9106_v20, %v4402_v58 }
 0x8d1   :  { %v4407_v31 = vmax.f32 %v4399_v9, %v4403_v61 }
 0x8d6   :  { %v4405_v49 = vpop.permute.xlu0 %4404 }
 0x8d7   :  { %v4406_v35 = vadd.f32 %v9110_v13, %v4405_v49 }
 0x8d9   :  { %v4408_v4 = vmax.f32 %v4407_v31, %v4406_v35 }
 0x8db   :  { %v4409_v14 = vsub.f32 %v4399_v9, %v4408_v4  ;;  %v4412_v30 = vsub.f32 %v4403_v61, %v4408_v4  ;;  %v4416_v36 = vsub.f32 %v4406_v35, %v4408_v4 }
 0x8dd   :  { %v4410_v11 = vmul.f32 1.442695, %v4409_v14  ;;  %v4413_v54 = vmul.f32 1.442695, %v4412_v30  ;;  %v4417_v52 = vmul.f32 1.442695, %v4416_v36  ;;  %v4538_v36 = vpop.permute.xlu2 %4537 }
 0x8de   :  { %vm4539_vm6 = vcmp.eq.s32.totalorder %v4538_v36, 1 }
 0x8df   :  { %5056 = vpow2.f32 %v4410_v11 }
 0x8e0   :  { %5058 = vpow2.f32 %v4413_v54 }
 0x8e1   :  { %5060 = vpow2.f32 %v4417_v52 }
 0x8e5   :  { %v5057_v40 = vpop.eup %5056 }
 0x8e6   :  { %v5059_v3 = vpop.eup %5058 }
 0x8e7   :  { %v4415_v27 = vadd.f32 %v5059_v3, %v5057_v40  ;;  %v5061_v60 = vpop.eup %5060 }
 0x8e9   :  { %v4419_v53 = vadd.f32 %v5061_v60, %v4415_v27 }
 0x8eb   :  { %5062 = vlog2.f32 %v4419_v53 }
 0x8f1   :  { %v5063_v28 = vpop.eup %5062 }
 0x8f2   :  { %v4421_v15 = vmul.f32 0.6931472, %v5063_v28 }
 0x8f4   :  { %v4422_v18 = vadd.f32 %v4421_v15, %v4408_v4 }
 0x8f6   :  { %v4438_v33 = vadd.f32 %v9044_v38, %v4422_v18 }
 0x8f8   :  { %v4446_v45 = vsel %vm4445_vm12, %v4438_v33, %v4399_v9 }
 0x8f9   :  { %4451 = vrot.lane.b32.xlu0 %v4446_v45, %s5194_s28  ;;  %4448 = vrot.lane.b32.xlu1 %v4446_v45, %s5193_s0 }
 0x96b   :  { %v4452_v21 = vpop.permute.xlu0 %4451  ;;  %v4449_v43 = vpop.permute.xlu1 %4448 }
 0x96c   :  { %v4450_v17 = vadd.f32 %v9106_v20, %v4449_v43  ;;  %v4453_v12 = vadd.f32 %v9110_v13, %v4452_v21 }
 0x96e   :  { %v4454_v37 = vmax.f32 %v4446_v45, %v4450_v17 }
 0x970   :  { %v4455_v8 = vmax.f32 %v4454_v37, %v4453_v12 }
 0x972   :  { %v4456_v29 = vsub.f32 %v4446_v45, %v4455_v8  ;;  %v4459_v32 = vsub.f32 %v4450_v17, %v4455_v8  ;;  %v4463_v26 = vsub.f32 %v4453_v12, %v4455_v8 }
 0x974   :  { %v4457_v16 = vmul.f32 1.442695, %v4456_v29  ;;  %v4460_v59 = vmul.f32 1.442695, %v4459_v32  ;;  %v4464_v56 = vmul.f32 1.442695, %v4463_v26  ;;  %v4585_v32 = vpop.permute.xlu2 %4584 }
 0x975   :  { %vm4586_vm10 = vcmp.eq.s32.totalorder %v4585_v32, 1 }
 0x976   :  { %5064 = vpow2.f32 %v4457_v16 }
 0x977   :  { %5066 = vpow2.f32 %v4460_v59 }
 0x978   :  { %5068 = vpow2.f32 %v4464_v56 }
 0x97c   :  { %v5065_v38 = vpop.eup %5064 }
 0x97d   :  { %v5067_v34 = vpop.eup %5066 }
 0x97e   :  { %v4462_v41 = vadd.f32 %v5067_v34, %v5065_v38  ;;  %v5069_v7 = vpop.eup %5068 }
 0x980   :  { %v4466_v50 = vadd.f32 %v5069_v7, %v4462_v41 }
 0x982   :  { %5070 = vlog2.f32 %v4466_v50 }
 0x988   :  { %v5071_v63 = vpop.eup %5070 }
 0x989   :  { %v4468_v57 = vmul.f32 0.6931472, %v5071_v63 }
 0x98b   :  { %v4469_v55 = vadd.f32 %v4468_v57, %v4455_v8 }
 0x98d   :  { %v4485_v24 = vadd.f32 %v9047_v19, %v4469_v55 }
 0x98f   :  { %v4493_v22 = vsel %vm4492_vm9, %v4485_v24, %v4446_v45 }
 0x990   :  { %4498 = vrot.lane.b32.xlu0 %v4493_v22, %s5194_s28  ;;  %4495 = vrot.lane.b32.xlu1 %v4493_v22, %s5193_s0 }
 0xa02   :  { %v4499_v1 = vpop.permute.xlu0 %4498  ;;  %v4496_v48 = vpop.permute.xlu1 %4495 }
 0xa03   :  { %v4497_v47 = vadd.f32 %v9106_v20, %v4496_v48  ;;  %v4500_v39 = vadd.f32 %v9110_v13, %v4499_v1 }
 0xa05   :  { %v4501_v2 = vmax.f32 %v4493_v22, %v4497_v47 }
 0xa07   :  { %v4502_v62 = vmax.f32 %v4501_v2, %v4500_v39 }
 0xa09   :  { %v4503_v44 = vsub.f32 %v4493_v22, %v4502_v62  ;;  %v4506_v9 = vsub.f32 %v4497_v47, %v4502_v62  ;;  %v4510_v46 = vsub.f32 %v4500_v39, %v4502_v62 }
 0xa0b   :  { %v4504_v25 = vmul.f32 1.442695, %v4503_v44  ;;  %v4507_v6 = vmul.f32 1.442695, %v4506_v9  ;;  %v4511_v19 = vmul.f32 1.442695, %v4510_v46  ;;  %v4632_v44 = vpop.permute.xlu2 %4631 }
 0xa0c   :  { %vm4633_vm14 = vcmp.eq.s32.totalorder %v4632_v44, 1 }
 0xa0d   :  { %5072 = vpow2.f32 %v4504_v25 }
 0xa0e   :  { %5074 = vpow2.f32 %v4507_v6 }
 0xa0f   :  { %5076 = vpow2.f32 %v4511_v19 }
 0xa13   :  { %v5073_v58 = vpop.eup %5072 }
 0xa14   :  { %v5075_v61 = vpop.eup %5074 }
 0xa15   :  { %v4509_v49 = vadd.f32 %v5075_v61, %v5073_v58  ;;  %v5077_v31 = vpop.eup %5076 }
 0xa17   :  { %v4513_v35 = vadd.f32 %v5077_v31, %v4509_v49 }
 0xa19   :  { %5078 = vlog2.f32 %v4513_v35 }
 0xa1f   :  { %v5079_v4 = vpop.eup %5078 }
 0xa20   :  { %v4515_v14 = vmul.f32 0.6931472, %v5079_v4 }
 0xa22   :  { %v4516_v30 = vadd.f32 %v4515_v14, %v4502_v62 }
 0xa24   :  { %v4532_v11 = vadd.f32 %v9075_v23, %v4516_v30 }
 0xa26   :  { %v4540_v54 = vsel %vm4539_vm6, %v4532_v11, %v4493_v22 }
 0xa27   :  { %4545 = vrot.lane.b32.xlu0 %v4540_v54, %s5194_s28  ;;  %4542 = vrot.lane.b32.xlu1 %v4540_v54, %s5193_s0 }
 0xa99   :  { %v4546_v52 = vpop.permute.xlu0 %4545  ;;  %v4543_v40 = vpop.permute.xlu1 %4542 }
 0xa9a   :  { %v4544_v3 = vadd.f32 %v9106_v20, %v4543_v40  ;;  %v4547_v27 = vadd.f32 %v9110_v13, %v4546_v52 }
 0xa9c   :  { %v4548_v60 = vmax.f32 %v4540_v54, %v4544_v3 }
 0xa9e   :  { %v4549_v53 = vmax.f32 %v4548_v60, %v4547_v27 }
 0xaa0   :  { %v4550_v28 = vsub.f32 %v4540_v54, %v4549_v53  ;;  %v4553_v15 = vsub.f32 %v4544_v3, %v4549_v53  ;;  %v4557_v10 = vsub.f32 %v4547_v27, %v4549_v53 }
 0xaa2   :  { %v4551_v18 = vmul.f32 1.442695, %v4550_v28  ;;  %v4554_v33 = vmul.f32 1.442695, %v4553_v15  ;;  %v4558_v23 = vmul.f32 1.442695, %v4557_v10 }
 0xaa4   :  { %5080 = vpow2.f32 %v4551_v18 }
 0xaa5   :  { %5082 = vpow2.f32 %v4554_v33 }
 0xaa6   :  { %5084 = vpow2.f32 %v4558_v23 }
 0xaaa   :  { %v5081_v45 = vpop.eup %5080 }
 0xaab   :  { %v5083_v21 = vpop.eup %5082 }
 0xaac   :  { %v4556_v43 = vadd.f32 %v5083_v21, %v5081_v45  ;;  %v5085_v17 = vpop.eup %5084 }
 0xaae   :  { %v4560_v12 = vadd.f32 %v5085_v17, %v4556_v43 }
 0xab0   :  { %5086 = vlog2.f32 %v4560_v12 }
 0xab6   :  { %v5087_v37 = vpop.eup %5086 }
 0xab7   :  { %v4562_v8 = vmul.f32 0.6931472, %v5087_v37 }
 0xab9   :  { %v4563_v29 = vadd.f32 %v4562_v8, %v4549_v53 }
 0xabb   :  { %v4579_v26 = vadd.f32 %v9091_v0, %v4563_v29 }
 0xabd   :  { %v4587_v16 = vsel %vm4586_vm10, %v4579_v26, %v4540_v54 }
 0xabe   :  { %4592 = vrot.lane.b32.xlu0 %v4587_v16, %s5194_s28  ;;  %4589 = vrot.lane.b32.xlu1 %v4587_v16, %s5193_s0 }
 0xb30   :  { %v4593_v59 = vpop.permute.xlu0 %4592  ;;  %v4590_v56 = vpop.permute.xlu1 %4589 }
 0xb31   :  { %v4591_v38 = vadd.f32 %v9106_v20, %v4590_v56  ;;  %v4594_v34 = vadd.f32 %v9110_v13, %v4593_v59 }
 0xb33   :  { %v4595_v41 = vmax.f32 %v4587_v16, %v4591_v38 }
 0xb35   :  { %v4596_v7 = vmax.f32 %v4595_v41, %v4594_v34 }
 0xb37   :  { %v4597_v50 = vsub.f32 %v4587_v16, %v4596_v7  ;;  %v4600_v63 = vsub.f32 %v4591_v38, %v4596_v7  ;;  %v4604_v57 = vsub.f32 %v4594_v34, %v4596_v7 }
 0xb39   :  { %v4598_v55 = vmul.f32 1.442695, %v4597_v50  ;;  %v4601_v42 = vmul.f32 1.442695, %v4600_v63  ;;  %v4605_v0 = vmul.f32 1.442695, %v4604_v57 }
 0xb3b   :  { %5088 = vpow2.f32 %v4598_v55 }
 0xb3c   :  { %5090 = vpow2.f32 %v4601_v42 }
 0xb3d   :  { %5092 = vpow2.f32 %v4605_v0 }
 0xb41   :  { %v5089_v24 = vpop.eup %5088 }
 0xb42   :  { %v5091_v22 = vpop.eup %5090 }
 0xb43   :  { %v4603_v1 = vadd.f32 %v5091_v22, %v5089_v24  ;;  %v5093_v48 = vpop.eup %5092 }
 0xb45   :  { %v4607_v47 = vadd.f32 %v5093_v48, %v4603_v1 }
 0xb47   :  { %5094 = vlog2.f32 %v4607_v47 }
 0xb4d   :  { %v5095_v39 = vpop.eup %5094 }
 0xb4e   :  { %v4609_v2 = vmul.f32 0.6931472, %v5095_v39 }
 0xb50   :  { %v4610_v62 = vadd.f32 %v4609_v2, %v4596_v7 }
 0xb52   :  { %v4626_v9 = vadd.f32 %v9097_v51, %v4610_v62 }
 0xb54   :  { %v4634_v46 = vsel %vm4633_vm14, %v4626_v9, %v4587_v16 }
 0xb55   :  { %4639 = vrot.lane.b32.xlu0 %v4634_v46, %s5194_s28  ;;  %4636 = vrot.lane.b32.xlu1 %v4634_v46, %s5193_s0 }
 0xbc7   :  { %v4640_v25 = vpop.permute.xlu0 %4639  ;;  %v4637_v6 = vpop.permute.xlu1 %4636 }
 0xbc8   :  { %v4638_v19 = vadd.f32 %v9106_v20, %v4637_v6  ;;  %v4641_v58 = vadd.f32 %v9110_v13, %v4640_v25  ;;  %v4679_v13 = vpop.permute.xlu2 %4678 }
 0xbc9   :  { %vm4680_vm3 = vcmp.eq.s32.totalorder %v4679_v13, 1 }
 0xbca   :  { %v4642_v61 = vmax.f32 %v4634_v46, %v4638_v19 }
 0xbcc   :  { %v4643_v49 = vmax.f32 %v4642_v61, %v4641_v58 }
 0xbce   :  { %v4644_v31 = vsub.f32 %v4634_v46, %v4643_v49  ;;  %v4647_v35 = vsub.f32 %v4638_v19, %v4643_v49  ;;  %v4651_v4 = vsub.f32 %v4641_v58, %v4643_v49 }
 0xbd0   :  { %v4645_v14 = vmul.f32 1.442695, %v4644_v31  ;;  %v4648_v30 = vmul.f32 1.442695, %v4647_v35  ;;  %v4652_v51 = vmul.f32 1.442695, %v4651_v4 }
 0xbd2   :  { %5096 = vpow2.f32 %v4645_v14 }
 0xbd3   :  { %5098 = vpow2.f32 %v4648_v30 }
 0xbd4   :  { %5100 = vpow2.f32 %v4652_v51 }
 0xbd8   :  { %v5097_v36 = vpop.eup %5096 }
 0xbd9   :  { %v5099_v11 = vpop.eup %5098 }
 0xbda   :  { %v4650_v54 = vadd.f32 %v5099_v11, %v5097_v36  ;;  %v5101_v52 = vpop.eup %5100 }
 0xbdc   :  { %v4654_v40 = vadd.f32 %v5101_v52, %v4650_v54 }
 0xbde   :  { %5102 = vlog2.f32 %v4654_v40 }
 0xbe4   :  { %v5103_v20 = vpop.eup %5102 }
 0xbe5   :  { %v4656_v3 = vmul.f32 0.6931472, %v5103_v20 }
 0xbe7   :  { %v4657_v27 = vadd.f32 %v4656_v3, %v4643_v49 }
 0xbe9   :  { %v4673_v60 = vadd.f32 %v9104_v5, %v4657_v27 }
 0xbeb   :  { %v4681_v53 = vsel %vm4680_vm3, %v4673_v60, %v4634_v46 }
 0xbec   :  { %4682 = vst [vmem:[#allocation2] sm:$0xff] %v4681_v53 }
 0xbed PF:  { %v4688_v28 = vld [vmem:[%s9170_s4] sm:$0xff]  ;;  %v5196_v15 = vmov 0   ;;  %s5197_s11 = smov [#allocation11]   ;;  %s4741_s15 = sshll.u32 %s9171_s5, 4  ;;  %s4742_s15 = int_to_ptr.hbm [resolvable:$true] %s4741_s15 }
 0xbee   :  { %5126 = vset.pattern.permute.xlu0 %v5196_v15  ;;  %v4689_v10 = vmul.u32 2, %v4688_v28  ;;  %5127 = vset.pattern.permute.xlu1 %v5196_v15  ;;  %vm4702_vm8 = vcmp.gt.s32.totalorder %v4688_v28, 0  ;;  %v9630_v45 = vld [vmem:[#allocation14_spill] sm:$0xff]  ;;  %s4739_s12 = sshll.u32 %s5197_s11, 4  ;;  %s4740_s12 = int_to_ptr.vmem [resolvable:$true] %s4739_s12 }
 0xbef   :  { %5128 = vset.pattern.permute.xlu2 %v5196_v15  ;;  %v4703_v33 = vsel %vm4702_vm8, 1, %v5196_v15  ;;  %v4687_v50 = vld [vmem:[%s9169_s3] sm:$0xff] }
 0xbf0   :  { %v4897_v18 = vadd.s32 4294967295, %v4689_v10  ;;  %4691 = vperm.xlu1 %5127, %v4689_v10   ;;  %vm4724_vm5 = vcmp.gt.s32.totalorder %v4687_v50, 0 }
 0xbf2   :  { %4699 = vperm.xlu0 %5126, %v4897_v18  }
 0xbf3   :  { %v4686_v5 = vld [vmem:[#allocation2] sm:$0xff] }
 0xbfa   :  { %4705 = vperm.xlu0 %5126, %v4703_v33  }
 0xc62   :  { %v4692_v23 = vpop.permute.xlu1 %4691 }
 0xc63   :  { %vm4693_vm1 = vcmp.eq.s32.totalorder %v9630_v45, %v4692_v23 }
 0xc64   :  { %v4700_v21 = vpop.permute.xlu0 %4699  ;;  %v4694_v43 = vsel %vm4693_vm1, %v4686_v5, -1e+30 }
 0xc65   :  { %4695 = vmax.xlane.f32.xlu1 %v4694_v43  ;;  %vm4701_vm2 = vcmp.eq.s32.totalorder %v9630_v45, %v4700_v21 }
 0xc6c   :  { %v4706_v17 = vpop.permute.xlu0 %4705 }
 0xc6d   :  { %vm4707_vm11 = vcmp.eq.s32.totalorder %v4706_v17, 1 }
 0xc6e   :  { %vm4708_vm0 = vmand %vm4701_vm2, %vm4707_vm11 }
 0xc6f   :  { %v4709_v12 = vsel %vm4708_vm0, %v4686_v5, -1e+30 }
 0xc70   :  { %4710 = vmax.xlane.f32.xlu2 %v4709_v12 }
 0xcd8   :  { %v4696_v37 = vpop.xlane.xlu1 %4695 }
 0xce3   :  { %v4711_v8 = vpop.xlane.xlu2 %4710 }
 0xce4   :  { %v4712_v29 = vmax.f32 %v4696_v37, %v4711_v8 }
 0xce6   :  { %v4713_v32 = vsub.f32 %v4696_v37, %v4712_v29  ;;  %v4716_v26 = vsub.f32 %v4711_v8, %v4712_v29 }
 0xce8   :  { %v4714_v16 = vmul.f32 1.442695, %v4713_v32  ;;  %v4717_v59 = vmul.f32 1.442695, %v4716_v26 }
 0xcea   :  { %5129 = vpow2.f32 %v4714_v16 }
 0xceb   :  { %5131 = vpow2.f32 %v4717_v59 }
 0xcf0   :  { %v5130_v56 = vpop.eup %5129 }
 0xcf1   :  { %v5132_v38 = vpop.eup %5131 }
 0xcf2   :  { %v4719_v34 = vadd.f32 %v5132_v38, %v5130_v56 }
 0xcf4   :  { %5133 = vlog2.f32 %v4719_v34 }
 0xcfa   :  { %v5134_v41 = vpop.eup %5133 }
 0xcfb   :  { %v4721_v7 = vmul.f32 0.6931472, %v5134_v41 }
 0xcfd   :  { %v4722_v63 = vadd.f32 %v4721_v7, %v4712_v29 }
 0xcff   :  { %v4723_v57 = vsub.f32 0.0, %v4722_v63 }
 0xd01   :  { %vm4725_vm13 = vcmp.lt.f32.partialorder %v4723_v57, 1e+29 }
 0xd02   :  { %vm4726_vm4 = vmand %vm4724_vm5, %vm4725_vm13 }
 0xd03   :  { %v4727_v55 = vsel %vm4726_vm4, %v4723_v57, 0.0 }
 0xd04   :  { %4730 = vperm.xlu2 %5128, %v4727_v55  }
 0xd5e   :  { %v4731_v42 = vpop.permute.xlu2 %4730 }
 0xd5f   :  { %4733 = vst [vmem:[#allocation11] sm:$0xff] %v4731_v42 }
 0xd60   :  { %4744 = dma.vmem_to_hbm [thread:$0]  %s4740_s12, 128, %s4742_s15, [#allocation10]  }
 0xd61   :  { %5185 = dma.done.wait [#allocation10], 128  }
 0xd62   :  { %5186 = vsyncadd [#allocation10], 4294967168 }
 0xd63   :  { %4749 = vsyncpa [#allocation9], 1 }
 0xd64   :  { %4750 = vsyncpa [#allocation10], 1 }

</bundles_post_ra>
